<compile_context>
chip_gen: v7x
topology: tpu7x:2x2x1
jax: 0.10.0
libtpu: 0.0.40
codegen_flags: <defaults>
</compile_context>

<pallas_src>
import functools

import jax
import jax.numpy as jnp
from jax.experimental import pallas as pl
from jax.experimental.pallas import tpu as pltpu

BN_EPS = 1e-3   # norm_layer = partial(BatchNorm2d, eps=0.001)
LANE = 128
VMEM_LIMIT = 48 * 1024 * 1024


def _round_up(x, m):
    return (x + m - 1) // m * m


def _cpad(c):
    return _round_up(c, LANE)


def _bn_scale():
    # gamma / sqrt(running_var + eps) with synthetic eval stats (gamma=1, var=1).
    return 1.0 / (1.0 + BN_EPS) ** 0.5


# ----------------------------- Pallas kernels ------------------------------

def _mm_kernel(x_ref, w_ref, b_ref, o_ref, *, act):
    # x: (tm, K) bf16   w: (K, tn) bf16 (BN scale pre-folded)   b: (1, tn) f32
    y = jnp.dot(x_ref[...], w_ref[...], preferred_element_type=jnp.float32)
    y = y + b_ref[...]
    if act == "silu":
        y = y * jax.nn.sigmoid(y)
    o_ref[...] = y.astype(o_ref.dtype)


def _mm_res_kernel(x_ref, w_ref, b_ref, r_ref, o_ref, *, act):
    # Same as above with the residual add fused in (r: (tm, tn) bf16).
    y = jnp.dot(x_ref[...], w_ref[...], preferred_element_type=jnp.float32)
    y = y + b_ref[...]
    if act == "silu":
        y = y * jax.nn.sigmoid(y)
    o_ref[...] = (y + r_ref[...].astype(jnp.float32)).astype(o_ref.dtype)


def _conv_s1_kernel(xp_ref, w_ref, b_ref, o_ref, *, k, Ho, Wo, act):
    # Stride-1 k x k conv + folded BN (+SiLU) as k*k shifted sub-matmuls on
    # the padded image (no HBM im2col).  xp: (1, Hp, Wp, C) bf16,
    # w: (k*k*C, tn) bf16 (tap-major), b: (1, tn) f32, o: (1, Ho*Wo, tn) bf16.
    C = xp_ref.shape[3]
    acc = None
    for kh in range(k):
        for kw in range(k):
            # TODO(synk): the kw shifts are sublane-offset slices; a
            # pltpu.roll-based variant would move that work onto the XLU.
            tap = xp_ref[0, kh:kh + Ho, kw:kw + Wo, :].reshape(Ho * Wo, C)
            wpart = w_ref[(kh * k + kw) * C:(kh * k + kw + 1) * C, :]
            t = jnp.dot(tap, wpart, preferred_element_type=jnp.float32)
            acc = t if acc is None else acc + t
    y = acc + b_ref[...]
    if act == "silu":
        y = y * jax.nn.sigmoid(y)
    o_ref[0] = y.astype(o_ref.dtype)


def _conv_s1_res_kernel(xp_ref, w_ref, b_ref, r_ref, o_ref, *, k, Ho, Wo, act):
    # Same as _conv_s1_kernel with the residual add fused (r: (1, Ho*Wo, tn)).
    C = xp_ref.shape[3]
    acc = None
    for kh in range(k):
        for kw in range(k):
            tap = xp_ref[0, kh:kh + Ho, kw:kw + Wo, :].reshape(Ho * Wo, C)
            wpart = w_ref[(kh * k + kw) * C:(kh * k + kw + 1) * C, :]
            t = jnp.dot(tap, wpart, preferred_element_type=jnp.float32)
            acc = t if acc is None else acc + t
    y = acc + b_ref[...]
    if act == "silu":
        y = y * jax.nn.sigmoid(y)
    o_ref[0] = (y + r_ref[0].astype(jnp.float32)).astype(o_ref.dtype)


def _dw_s1_kernel(xp_ref, w_ref, b_ref, o_ref, *, k, Ho, Wo):
    # Stride-1 depthwise conv + folded BN + SiLU, one (image, channel-tile)
    # per grid step.  xp: (1, Hp, Wp, tc) bf16, w: (k*k, 1, tc) f32, b: (1, tc).
    acc = None
    for kh in range(k):
        for kw in range(k):
            tap = xp_ref[0, kh:kh + Ho, kw:kw + Wo, :].astype(jnp.float32)
            term = tap * w_ref[kh * k + kw]                     # (Ho, Wo, tc)
            acc = term if acc is None else acc + term
    y = acc + b_ref[...]
    y = y * jax.nn.sigmoid(y)
    o_ref[0] = y.astype(o_ref.dtype)


def _dw_taps_kernel(p_ref, w_ref, b_ref, o_ref, *, kk):
    # Stride-2 depthwise conv on pre-extracted bf16 tap slabs: p: (kk, tm, tc).
    acc = p_ref[0].astype(jnp.float32) * w_ref[0]
    for t in range(1, kk):
        acc = acc + p_ref[t].astype(jnp.float32) * w_ref[t]
    y = acc + b_ref[...]
    y = y * jax.nn.sigmoid(y)
    o_ref[...] = y.astype(o_ref.dtype)


def _se_proj_kernel(x_ref, w1_ref, b1_ref, w2_ref, b2_ref, w_ref, b_ref, o_ref):
    # SqueezeExcite fully fused into the 1x1 project conv for one image.
    # x: (1, HW, Cexp) bf16 (resident in VMEM), SE weights bf16, proj w bf16.
    x = x_ref[0]
    m = jnp.mean(x.astype(jnp.float32), axis=0, keepdims=True)          # (1, C)
    s = jnp.dot(m.astype(jnp.bfloat16), w1_ref[...],
                preferred_element_type=jnp.float32) + b1_ref[...]
    s = s * jax.nn.sigmoid(s)                                           # SiLU
    g = jnp.dot(s.astype(jnp.bfloat16), w2_ref[...],
                preferred_element_type=jnp.float32) + b2_ref[...]
    g = jax.nn.sigmoid(g)                                               # gate
    xg = (x * g).astype(jnp.bfloat16)                                   # (HW, C)
    y = jnp.dot(xg, w_ref[...], preferred_element_type=jnp.float32) + b_ref[...]
    o_ref[0] = y.astype(o_ref.dtype)


def _se_proj_res_kernel(x_ref, w1_ref, b1_ref, w2_ref, b2_ref, w_ref, b_ref,
                        r_ref, o_ref):
    x = x_ref[0]
    m = jnp.mean(x.astype(jnp.float32), axis=0, keepdims=True)
    s = jnp.dot(m.astype(jnp.bfloat16), w1_ref[...],
                preferred_element_type=jnp.float32) + b1_ref[...]
    s = s * jax.nn.sigmoid(s)
    g = jnp.dot(s.astype(jnp.bfloat16), w2_ref[...],
                preferred_element_type=jnp.float32) + b2_ref[...]
    g = jax.nn.sigmoid(g)
    xg = (x * g).astype(jnp.bfloat16)
    y = jnp.dot(xg, w_ref[...], preferred_element_type=jnp.float32) + b_ref[...]
    o_ref[0] = (y + r_ref[0].astype(jnp.float32)).astype(o_ref.dtype)


def _pool_fc_kernel(x_ref, w_ref, b_ref, o_ref):
    # Batched global average pool + Linear classifier (whole batch at once).
    m = jnp.mean(x_ref[...].astype(jnp.float32), axis=1)                # (B, F)
    o_ref[...] = jnp.dot(m, w_ref[...],
                         preferred_element_type=jnp.float32) + b_ref[...]


# ------------------------------ kernel wrappers -----------------------------

def mm_bn_act(cols, w, bias, act, residual=None, tm_max=256, tn_max=256):
    """cols:(M,K) bf16, w:(K,N) bf16, bias:(1,N) f32, residual:(M,N) bf16 -> (M,N) bf16."""
    M, K = cols.shape
    N = w.shape[1]                                  # multiple of 128
    if M <= tm_max:
        tm, Mp = M, M                               # full-M block, no pad pass
    elif M % 256 == 0:
        tm, Mp = 256, M
    elif M % 128 == 0:
        tm, Mp = 128, M
    else:
        tm = tm_max
        Mp = _round_up(M, tm)
        cols = jnp.pad(cols, ((0, Mp - M), (0, 0)))
        if residual is not None:
            residual = jnp.pad(residual, ((0, Mp - M), (0, 0)))
    tn = N if N <= tn_max else (tn_max if N % tn_max == 0 else 128)
    grid = (Mp // tm, N // tn)

    in_specs = [
        pl.BlockSpec((tm, K), lambda i, j: (i, 0)),
        pl.BlockSpec((K, tn), lambda i, j: (0, j)),
        pl.BlockSpec((1, tn), lambda i, j: (0, j)),
    ]
    args = [cols, w, bias]
    if residual is not None:
        in_specs.append(pl.BlockSpec((tm, tn), lambda i, j: (i, j)))
        args.append(residual)
        kernel = functools.partial(_mm_res_kernel, act=act)
    else:
        kernel = functools.partial(_mm_kernel, act=act)

    y = pl.pallas_call(
        kernel,
        out_shape=jax.ShapeDtypeStruct((Mp, N), jnp.bfloat16),
        grid=grid,
        in_specs=in_specs,
        out_specs=pl.BlockSpec((tm, tn), lambda i, j: (i, j)),
        compiler_params=pltpu.CompilerParams(
            dimension_semantics=("parallel", "parallel")),
    )(*args)
    return y[:M] if Mp != M else y


def _im2col(x, k, stride):
    """NHWC -> (B*Ho*Wo, k*k*C) bf16 columns, (kh, kw, c)-major, SAME-style pad.

    Only used for stride-2 spatial convs (stem + first block of a
    downsampling stage); stride-1 k>1 convs use the in-kernel tap matmuls.
    """
    pad = (k - 1) // 2
    B, H, W, C = x.shape
    xp = jnp.pad(x, ((0, 0), (pad, pad), (pad, pad), (0, 0)))
    Ho = (H + 2 * pad - k) // stride + 1
    Wo = (W + 2 * pad - k) // stride + 1
    taps = []
    for kh in range(k):
        for kw in range(k):
            taps.append(xp[:, kh:kh + (Ho - 1) * stride + 1:stride,
                           kw:kw + (Wo - 1) * stride + 1:stride, :])
    cols = jnp.stack(taps, axis=3)                       # (B, Ho, Wo, KK, C)
    return cols.reshape(B * Ho * Wo, k * k * C), Ho, Wo


def conv_s1_taps(x, p, k, act, residual=None):
    """Stride-1 k x k conv via in-kernel tap matmuls on the padded image."""
    B, H, W, C = x.shape
    pad = (k - 1) // 2
    Hp, Wp = H + 2 * pad, W + 2 * pad
    xp = jnp.pad(x, ((0, 0), (pad, pad), (pad, pad), (0, 0)))
    N = p["w"].shape[1]
    tn = N if N <= 256 else (256 if N % 256 == 0 else 128)
    grid = (B, N // tn)
    # TODO(synk): for very large feature maps also tile output rows (with the
    # padded image kept resident) to deepen the pipeline further.
    in_specs = [
        pl.BlockSpec((1, Hp, Wp, C), lambda b, j: (b, 0, 0, 0)),
        pl.BlockSpec((k * k * C, tn), lambda b, j: (0, j)),
        pl.BlockSpec((1, tn), lambda b, j: (0, j)),
    ]
    args = [xp, p["w"], p["b"]]
    if residual is not None:
        in_specs.append(pl.BlockSpec((1, H * W, tn), lambda b, j: (b, 0, j)))
        args.append(residual.reshape(B, H * W, N))
        kernel = functools.partial(_conv_s1_res_kernel, k=k, Ho=H, Wo=W, act=act)
    else:
        kernel = functools.partial(_conv_s1_kernel, k=k, Ho=H, Wo=W, act=act)
    y = pl.pallas_call(
        kernel,
        out_shape=jax.ShapeDtypeStruct((B, H * W, N), jnp.bfloat16),
        grid=grid,
        in_specs=in_specs,
        out_specs=pl.BlockSpec((1, H * W, tn), lambda b, j: (b, 0, j)),
        compiler_params=pltpu.CompilerParams(
            dimension_semantics=("parallel", "parallel"),
            vmem_limit_bytes=VMEM_LIMIT),
    )(*args)
    return y.reshape(B, H, W, N)


def conv_bn_act(x, p, k, stride, act, residual=None):
    B, H, W, C = x.shape
    N = p["w"].shape[1]
    if k == 1 and stride == 1:
        cols, Ho, Wo = x.reshape(B * H * W, C), H, W     # free reshape
    elif stride == 1:
        return conv_s1_taps(x, p, k, act, residual=residual)
    else:
        cols, Ho, Wo = _im2col(x, k, stride)             # bf16, output /4 rows
    res2d = residual.reshape(B * Ho * Wo, N) if residual is not None else None
    y = mm_bn_act(cols, p["w"], p["b"], act, residual=res2d)
    return y.reshape(B, Ho, Wo, N)


def dwconv_bn_silu(x, p, k, stride):
    B, H, W, C = x.shape
    pad = (k - 1) // 2
    xp = jnp.pad(x, ((0, 0), (pad, pad), (pad, pad), (0, 0)))
    if stride == 1:
        # Grid over (batch, 128-channel tiles): good pipeline depth, bounded
        # per-step VMEM, no k*k inflation in HBM.
        Hp, Wp = H + 2 * pad, W + 2 * pad
        tc = LANE
        grid = (B, C // tc)
        return pl.pallas_call(
            functools.partial(_dw_s1_kernel, k=k, Ho=H, Wo=W),
            out_shape=jax.ShapeDtypeStruct((B, H, W, C), jnp.bfloat16),
            grid=grid,
            in_specs=[
                pl.BlockSpec((1, Hp, Wp, tc), lambda b, c: (b, 0, 0, c)),
                pl.BlockSpec((k * k, 1, tc), lambda b, c: (0, 0, c)),
                pl.BlockSpec((1, tc), lambda b, c: (0, c)),
            ],
            out_specs=pl.BlockSpec((1, H, W, tc), lambda b, c: (b, 0, 0, c)),
            compiler_params=pltpu.CompilerParams(
                dimension_semantics=("parallel", "parallel")),
        )(xp, p["w"], p["b"])

    # stride 2: per-tap strided slabs in bf16 (output spatial is 4x smaller so
    # the k*k inflation is ~k*k/8 of the input activation in f32-equivalent
    # bytes), tiled over (rows, channel tiles).
    # TODO(synk): extract the stride-2 taps in-kernel to remove this slab too.
    Ho = (H + 2 * pad - k) // stride + 1
    Wo = (W + 2 * pad - k) // stride + 1
    taps = []
    for kh in range(k):
        for kw in range(k):
            taps.append(xp[:, kh:kh + (Ho - 1) * stride + 1:stride,
                           kw:kw + (Wo - 1) * stride + 1:stride, :])
    taps = jnp.stack(taps, axis=0).reshape(k * k, B * Ho * Wo, C)   # bf16
    M = B * Ho * Wo
    if M <= 512:
        tm, Mp = M, M
    elif M % 256 == 0:
        tm, Mp = 256, M
    elif M % 128 == 0:
        tm, Mp = 128, M
    else:
        tm = 256
        Mp = _round_up(M, tm)
        taps = jnp.pad(taps, ((0, 0), (0, Mp - M), (0, 0)))
    tc = LANE
    grid = (Mp // tm, C // tc)
    y = pl.pallas_call(
        functools.partial(_dw_taps_kernel, kk=k * k),
        out_shape=jax.ShapeDtypeStruct((Mp, C), jnp.bfloat16),
        grid=grid,
        in_specs=[
            pl.BlockSpec((k * k, tm, tc), lambda i, c: (0, i, c)),
            pl.BlockSpec((k * k, 1, tc), lambda i, c: (0, 0, c)),
            pl.BlockSpec((1, tc), lambda i, c: (0, c)),
        ],
        out_specs=pl.BlockSpec((tm, tc), lambda i, c: (i, c)),
        compiler_params=pltpu.CompilerParams(
            dimension_semantics=("parallel", "parallel")),
    )(taps, p["w"], p["b"])
    y = y[:M] if Mp != M else y
    return y.reshape(B, Ho, Wo, C)


def gated_project(x, se_p, proj_p, residual=None):
    """SqueezeExcite + 1x1 project conv (+ optional residual) in one kernel."""
    B, H, W, C = x.shape
    HW = H * W
    x3 = x.reshape(B, HW, C)
    N = proj_p["w"].shape[1]
    sq = se_p["w1"].shape[1]
    in_specs = [
        pl.BlockSpec((1, HW, C), lambda b: (b, 0, 0)),
        pl.BlockSpec((C, sq), lambda b: (0, 0)),
        pl.BlockSpec((1, sq), lambda b: (0, 0)),
        pl.BlockSpec((sq, C), lambda b: (0, 0)),
        pl.BlockSpec((1, C), lambda b: (0, 0)),
        pl.BlockSpec((C, N), lambda b: (0, 0)),
        pl.BlockSpec((1, N), lambda b: (0, 0)),
    ]
    args = [x3, se_p["w1"], se_p["b1"], se_p["w2"], se_p["b2"],
            proj_p["w"], proj_p["b"]]
    if residual is not None:
        in_specs.append(pl.BlockSpec((1, HW, N), lambda b: (b, 0, 0)))
        args.append(residual.reshape(B, HW, N))
        kernel = _se_proj_res_kernel
    else:
        kernel = _se_proj_kernel
    y = pl.pallas_call(
        kernel,
        out_shape=jax.ShapeDtypeStruct((B, HW, N), jnp.bfloat16),
        grid=(B,),
        in_specs=in_specs,
        out_specs=pl.BlockSpec((1, HW, N), lambda b: (b, 0, 0)),
        compiler_params=pltpu.CompilerParams(
            dimension_semantics=("parallel",),
            vmem_limit_bytes=VMEM_LIMIT),
    )(*args)
    return y.reshape(B, H, W, N)


def pool_fc(x, w, b):
    """Batched global average pool + Linear classifier (single kernel call)."""
    B, H, W, F = x.shape
    x3 = x.reshape(B, H * W, F)
    NCp = w.shape[1]
    return pl.pallas_call(
        _pool_fc_kernel,
        out_shape=jax.ShapeDtypeStruct((B, NCp), jnp.float32),
    )(x3, w, b)


# --------------------------- parameter builders -----------------------------

def init_convbn(key, cin, cin_lane, cout, k):
    """Conv weight (kh,kw,cin)-major, zero-padded to lane multiples, BN folded."""
    cout_lane = _cpad(cout)
    fan_out = k * k * cout                       # kaiming_normal_ mode='fan_out'
    w_real = jax.random.normal(key, (k, k, cin, cout), jnp.float32) * (2.0 / fan_out) ** 0.5
    w = jnp.zeros((k, k, cin_lane, cout_lane), jnp.float32)
    w = w.at[:, :, :cin, :cout].set(w_real)
    w = (w * _bn_scale()).reshape(k * k * cin_lane, cout_lane).astype(jnp.bfloat16)
    b = jnp.zeros((1, cout_lane), jnp.float32)   # beta - mean*scale == 0 here
    return {"w": w, "b": b}


def init_dwconvbn(key, c, c_lane, k):
    fan_out = k * k                              # groups == c -> fan_out = k*k
    w_real = jax.random.normal(key, (k * k, c), jnp.float32) * (2.0 / fan_out) ** 0.5
    w = jnp.zeros((k * k, 1, c_lane), jnp.float32).at[:, 0, :c].set(w_real) * _bn_scale()
    b = jnp.zeros((1, c_lane), jnp.float32)
    return {"w": w, "b": b}


def init_se(key, input_c, expand_c, expand_c_lane, se_ratio):
    sq = max(1, int(input_c * se_ratio))
    k1, k2 = jax.random.split(key)
    w1r = jax.random.normal(k1, (expand_c, sq), jnp.float32) * (2.0 / sq) ** 0.5
    w1 = jnp.zeros((expand_c_lane, sq), jnp.float32).at[:expand_c].set(w1r)
    b1 = jnp.zeros((1, sq), jnp.float32)
    w2r = jax.random.normal(k2, (sq, expand_c), jnp.float32) * (2.0 / expand_c) ** 0.5
    w2 = jnp.zeros((sq, expand_c_lane), jnp.float32).at[:, :expand_c].set(w2r)
    b2 = jnp.zeros((1, expand_c_lane), jnp.float32)
    return {"w1": w1.astype(jnp.bfloat16), "b1": b1,
            "w2": w2.astype(jnp.bfloat16), "b2": b2}


def build_model(key, model_cnf, num_classes, num_features):
    keys = iter(jax.random.split(key, 256))
    params = {"num_classes": num_classes}
    stem_c = model_cnf[0][4]
    params["stem"] = init_convbn(next(keys), 3, 3, stem_c, 3)

    blocks = []
    for cnf in model_cnf:
        assert len(cnf) == 8
        repeats, k, stride, expand, in_c, out_c, op, se = cnf
        for i in range(repeats):
            bin_c = in_c if i == 0 else out_c
            bstride = stride if i == 0 else 1
            bp = {}
            if op == 0:  # FusedMBConv (se_ratio must be 0)
                assert se == 0
                if expand != 1:
                    bp["expand"] = init_convbn(next(keys), bin_c, _cpad(bin_c),
                                               bin_c * expand, k)
                    bp["project"] = init_convbn(next(keys), bin_c * expand,
                                                _cpad(bin_c * expand), out_c, 1)
                else:
                    bp["project"] = init_convbn(next(keys), bin_c, _cpad(bin_c), out_c, k)
                blocks.append(dict(type="fused", k=k, stride=bstride, in_c=bin_c,
                                   out_c=out_c, expand=expand, has_se=False, params=bp))
            else:        # MBConv
                assert expand != 1
                exp_c = bin_c * expand
                bp["expand"] = init_convbn(next(keys), bin_c, _cpad(bin_c), exp_c, 1)
                bp["dw"] = init_dwconvbn(next(keys), exp_c, _cpad(exp_c), k)
                if se > 0:
                    bp["se"] = init_se(next(keys), bin_c, exp_c, _cpad(exp_c), se)
                bp["project"] = init_convbn(next(keys), exp_c, _cpad(exp_c), out_c, 1)
                blocks.append(dict(type="mb", k=k, stride=bstride, in_c=bin_c,
                                   out_c=out_c, expand=expand, has_se=se > 0, params=bp))
    params["blocks"] = blocks

    head_in = model_cnf[-1][5]
    params["head_project"] = init_convbn(next(keys), head_in, _cpad(head_in),
                                         num_features, 1)
    f_lane = _cpad(num_features)
    nc_lane = _cpad(num_classes)                 # lane-dense classifier store
    fcw = jax.random.normal(next(keys), (num_features, num_classes), jnp.float32) * 0.01
    params["fc_w"] = jnp.zeros((f_lane, nc_lane), jnp.float32).at[
        :num_features, :num_classes].set(fcw)
    params["fc_b"] = jnp.zeros((1, nc_lane), jnp.float32)
    return params


# ------------------------------ forward pass -------------------------------

def forward(params, x_nchw):
    # NCHW (PyTorch convention) -> NHWC bf16 internal layout.
    x = jnp.transpose(x_nchw, (0, 2, 3, 1)).astype(jnp.bfloat16)

    # stem: Conv3x3 s2 + BN + SiLU
    x = conv_bn_act(x, params["stem"], 3, 2, "silu")

    for blk in params["blocks"]:
        p = blk["params"]
        shortcut = (blk["stride"] == 1 and blk["in_c"] == blk["out_c"])
        res = x if shortcut else None
        # TODO(synk): DropPath (stochastic depth) is identity in eval mode.
        if blk["type"] == "fused":
            if blk["expand"] != 1:
                r = conv_bn_act(x, p["expand"], blk["k"], blk["stride"], "silu")
                x = conv_bn_act(r, p["project"], 1, 1, "none", residual=res)
            else:
                x = conv_bn_act(x, p["project"], blk["k"], blk["stride"], "silu",
                                residual=res)
        else:  # MBConv
            r = conv_bn_act(x, p["expand"], 1, 1, "silu")
            r = dwconv_bn_silu(r, p["dw"], blk["k"], blk["stride"])
            if blk["has_se"]:
                x = gated_project(r, p["se"], p["project"], residual=res)
            else:
                x = conv_bn_act(r, p["project"], 1, 1, "none", residual=res)

    # head: 1x1 Conv+BN+SiLU -> global avg pool -> flatten -> Linear
    x = conv_bn_act(x, params["head_project"], 1, 1, "silu")
    # TODO(synk): head nn.Dropout(p=0.2) is identity in eval/inference mode.
    logits = pool_fc(x, params["fc_w"], params["fc_b"])
    return logits[:, :params["num_classes"]]


# ---------------------------------- main -----------------------------------

if __name__ == "__main__":
    # model_cnf rows: [repeats, kernel, stride, expand_ratio, in_c, out_c, op(0=Fused,1=MB), se_ratio]
    model_cnf = [
        [1, 3, 1, 1, 16, 16, 0, 0.0],     # FusedMBConv, no expansion, shortcut
        [1, 3, 2, 4, 16, 24, 0, 0.0],     # FusedMBConv, expansion, stride 2
        [2, 3, 2, 4, 24, 32, 1, 0.25],    # MBConv + SE (stride 2, then stride 1 w/ shortcut)
    ]
    num_classes = 10
    num_features = 64

    key = jax.random.PRNGKey(0)
    pkey, xkey = jax.random.split(key)
    params = build_model(pkey, model_cnf, num_classes, num_features)

    # Input matches PyTorch NCHW: batch=2, channels=3 (stem expects 3), spatial=16.
    x = jax.random.normal(xkey, (2, 3, 16, 16), jnp.float32)

    fwd = jax.jit(lambda inp: forward(params, inp))
    out = jax.block_until_ready(fwd(x))
    assert out.shape == (2, num_classes), out.shape
    assert bool(jnp.all(jnp.isfinite(out)))
    print("KERNEL_OK")
</pallas_src>

<mosaic_0001>
module attributes {stable_mosaic.version = 11 : i64} {
  func.func @_mm_kernel(%arg0: i32, %arg1: i32, %arg2: memref<128x27xbf16, #tpu.memory_space<vmem>>, %arg3: memref<27x128xbf16, #tpu.memory_space<vmem>>, %arg4: memref<1x128xf32, #tpu.memory_space<vmem>>, %arg5: memref<128x128xbf16, #tpu.memory_space<vmem>>) attributes {dimension_semantics = [#tpu.dimension_semantics<parallel>, #tpu.dimension_semantics<parallel>], iteration_bounds = array<i64: 1, 1>, scalar_prefetch = 0 : i64, scratch_operands = 0 : i64, tpu.core_type = #tpu.core_type<tc>, window_params = [{transform_indices = @transform_0, window_bounds = array<i64: 128, 27>}, {transform_indices = @transform_1, window_bounds = array<i64: 27, 128>}, {transform_indices = @transform_2, window_bounds = array<i64: 1, 128>}, {transform_indices = @transform_3, window_bounds = array<i64: 128, 128>}]} {
    %c0 = arith.constant 0 : index
    %c0_0 = arith.constant 0 : index
    %0 = vector.load %arg2[%c0, %c0_0] : memref<128x27xbf16, #tpu.memory_space<vmem>>, vector<128x27xbf16>
    %c0_1 = arith.constant 0 : index
    %c0_2 = arith.constant 0 : index
    %1 = vector.load %arg3[%c0_1, %c0_2] : memref<27x128xbf16, #tpu.memory_space<vmem>>, vector<27x128xbf16>
    %cst = arith.constant dense<0.000000e+00> : vector<128x128xf32>
    %2 = tpu.matmul %0, %1, %cst {dimension_numbers = #tpu.dot_dimension_numbers<[1], [0], [0], [1], [0, 0, 1, 1], [], []>} : vector<128x27xbf16>, vector<27x128xbf16>, vector<128x128xf32> -> vector<128x128xf32>
    %c0_3 = arith.constant 0 : index
    %c0_4 = arith.constant 0 : index
    %3 = vector.load %arg4[%c0_3, %c0_4] : memref<1x128xf32, #tpu.memory_space<vmem>>, vector<1x128xf32>
    %4 = vector.broadcast %3 : vector<1x128xf32> to vector<128x128xf32>
    %5 = arith.addf %2, %4 : vector<128x128xf32>
    %6 = arith.negf %5 : vector<128x128xf32>
    %7 = math.exp %6 : vector<128x128xf32>
    %cst_5 = arith.constant 1.000000e+00 : f32
    %8 = vector.broadcast %cst_5 : f32 to vector<128x128xf32>
    %9 = arith.addf %8, %7 : vector<128x128xf32>
    %10 = arith.divf %8, %9 : vector<128x128xf32>
    %11 = arith.mulf %5, %10 : vector<128x128xf32>
    %12 = arith.truncf %11 : vector<128x128xf32> to vector<128x128xbf16>
    %c0_6 = arith.constant 0 : index
    %c0_7 = arith.constant 0 : index
    %13 = vector.load %arg5[%c0_6, %c0_7] : memref<128x128xbf16, #tpu.memory_space<vmem>>, vector<128x128xbf16>
    tpu.vector_store %arg5[%c0_6, %c0_7], %12 {strides = array<i32>} : memref<128x128xbf16, #tpu.memory_space<vmem>>, vector<128x128xbf16>,
    return
  }
  func.func @transform_0(%arg0: i32, %arg1: i32) -> (i32, i32) {
    %c0_i32 = arith.constant 0 : i32
    %c0_i32_0 = arith.constant 0 : i32
    return %arg0, %c0_i32 : i32, i32
  }
  func.func @transform_1(%arg0: i32, %arg1: i32) -> (i32, i32) {
    %c0_i32 = arith.constant 0 : i32
    %c0_i32_0 = arith.constant 0 : i32
    return %c0_i32, %arg1 : i32, i32
  }
  func.func @transform_2(%arg0: i32, %arg1: i32) -> (i32, i32) {
    %c0_i32 = arith.constant 0 : i32
    %c0_i32_0 = arith.constant 0 : i32
    return %c0_i32, %arg1 : i32, i32
  }
  func.func @transform_3(%arg0: i32, %arg1: i32) -> (i32, i32) {
    %c0_i32 = arith.constant 0 : i32
    return %arg0, %arg1 : i32, i32
  }
}

module attributes {stable_mosaic.version = 11 : i64} {
  func.func @_conv_s1_res_kernel(%arg0: i32, %arg1: i32, %arg2: memref<1x10x10x128xbf16, #tpu.memory_space<vmem>>, %arg3: memref<1152x128xbf16, #tpu.memory_space<vmem>>, %arg4: memref<1x128xf32, #tpu.memory_space<vmem>>, %arg5: memref<1x64x128xbf16, #tpu.memory_space<vmem>>, %arg6: memref<1x64x128xbf16, #tpu.memory_space<vmem>>) attributes {dimension_semantics = [#tpu.dimension_semantics<parallel>, #tpu.dimension_semantics<parallel>], iteration_bounds = array<i64: 2, 1>, scalar_prefetch = 0 : i64, scratch_operands = 0 : i64, tpu.core_type = #tpu.core_type<tc>, window_params = [{transform_indices = @transform_0, window_bounds = array<i64: 1, 10, 10, 128>}, {transform_indices = @transform_1, window_bounds = array<i64: 1152, 128>}, {transform_indices = @transform_2, window_bounds = array<i64: 1, 128>}, {transform_indices = @transform_3, window_bounds = array<i64: 1, 64, 128>}, {transform_indices = @transform_4, window_bounds = array<i64: 1, 64, 128>}]} {
    %c0 = arith.constant 0 : index
    %c0_0 = arith.constant 0 : index
    %c0_1 = arith.constant 0 : index
    %c0_2 = arith.constant 0 : index
    %0 = vector.load %arg2[%c0, %c0_0, %c0_1, %c0_2] : memref<1x10x10x128xbf16, #tpu.memory_space<vmem>>, vector<1x8x8x128xbf16>
    %1 = vector.shape_cast %0 : vector<1x8x8x128xbf16> to vector<8x8x128xbf16>
    %2 = vector.shape_cast %1 : vector<8x8x128xbf16> to vector<64x128xbf16>
    %c0_3 = arith.constant 0 : index
    %c0_4 = arith.constant 0 : index
    %3 = vector.load %arg3[%c0_3, %c0_4] : memref<1152x128xbf16, #tpu.memory_space<vmem>>, vector<128x128xbf16>
    %cst = arith.constant dense<0.000000e+00> : vector<64x128xf32>
    %4 = tpu.matmul %2, %3, %cst {dimension_numbers = #tpu.dot_dimension_numbers<[1], [0], [0], [1], [0, 0, 1, 1], [], []>} : vector<64x128xbf16>, vector<128x128xbf16>, vector<64x128xf32> -> vector<64x128xf32>
    %c0_5 = arith.constant 0 : index
    %c0_6 = arith.constant 0 : index
    %c1 = arith.constant 1 : index
    %c0_7 = arith.constant 0 : index
    %5 = vector.load %arg2[%c0_5, %c0_6, %c1, %c0_7] : memref<1x10x10x128xbf16, #tpu.memory_space<vmem>>, vector<1x8x8x128xbf16>
    %6 = vector.shape_cast %5 : vector<1x8x8x128xbf16> to vector<8x8x128xbf16>
    %7 = vector.shape_cast %6 : vector<8x8x128xbf16> to vector<64x128xbf16>
    %c128 = arith.constant 128 : index
    %c0_8 = arith.constant 0 : index
    %8 = vector.load %arg3[%c128, %c0_8] : memref<1152x128xbf16, #tpu.memory_space<vmem>>, vector<128x128xbf16>
    %cst_9 = arith.constant dense<0.000000e+00> : vector<64x128xf32>
    %9 = tpu.matmul %7, %8, %cst_9 {dimension_numbers = #tpu.dot_dimension_numbers<[1], [0], [0], [1], [0, 0, 1, 1], [], []>} : vector<64x128xbf16>, vector<128x128xbf16>, vector<64x128xf32> -> vector<64x128xf32>
    %10 = arith.addf %4, %9 : vector<64x128xf32>
    %c0_10 = arith.constant 0 : index
    %c0_11 = arith.constant 0 : index
    %c2 = arith.constant 2 : index
    %c0_12 = arith.constant 0 : index
    %11 = vector.load %arg2[%c0_10, %c0_11, %c2, %c0_12] : memref<1x10x10x128xbf16, #tpu.memory_space<vmem>>, vector<1x8x8x128xbf16>
    %12 = vector.shape_cast %11 : vector<1x8x8x128xbf16> to vector<8x8x128xbf16>
    %13 = vector.shape_cast %12 : vector<8x8x128xbf16> to vector<64x128xbf16>
    %c256 = arith.constant 256 : index
    %c0_13 = arith.constant 0 : index
    %14 = vector.load %arg3[%c256, %c0_13] : memref<1152x128xbf16, #tpu.memory_space<vmem>>, vector<128x128xbf16>
    %cst_14 = arith.constant dense<0.000000e+00> : vector<64x128xf32>
    %15 = tpu.matmul %13, %14, %cst_14 {dimension_numbers = #tpu.dot_dimension_numbers<[1], [0], [0], [1], [0, 0, 1, 1], [], []>} : vector<64x128xbf16>, vector<128x128xbf16>, vector<64x128xf32> -> vector<64x128xf32>
    %16 = arith.addf %10, %15 : vector<64x128xf32>
    %c0_15 = arith.constant 0 : index
    %c1_16 = arith.constant 1 : index
    %c0_17 = arith.constant 0 : index
    %c0_18 = arith.constant 0 : index
    %17 = vector.load %arg2[%c0_15, %c1_16, %c0_17, %c0_18] : memref<1x10x10x128xbf16, #tpu.memory_space<vmem>>, vector<1x8x8x128xbf16>
    %18 = vector.shape_cast %17 : vector<1x8x8x128xbf16> to vector<8x8x128xbf16>
    %19 = vector.shape_cast %18 : vector<8x8x128xbf16> to vector<64x128xbf16>
    %c384 = arith.constant 384 : index
    %c0_19 = arith.constant 0 : index
    %20 = vector.load %arg3[%c384, %c0_19] : memref<1152x128xbf16, #tpu.memory_space<vmem>>, vector<128x128xbf16>
    %cst_20 = arith.constant dense<0.000000e+00> : vector<64x128xf32>
    %21 = tpu.matmul %19, %20, %cst_20 {dimension_numbers = #tpu.dot_dimension_numbers<[1], [0], [0], [1], [0, 0, 1, 1], [], []>} : vector<64x128xbf16>, vector<128x128xbf16>, vector<64x128xf32> -> vector<64x128xf32>
    %22 = arith.addf %16, %21 : vector<64x128xf32>
    %c0_21 = arith.constant 0 : index
    %c1_22 = arith.constant 1 : index
    %c1_23 = arith.constant 1 : index
    %c0_24 = arith.constant 0 : index
    %23 = vector.load %arg2[%c0_21, %c1_22, %c1_23, %c0_24] : memref<1x10x10x128xbf16, #tpu.memory_space<vmem>>, vector<1x8x8x128xbf16>
    %24 = vector.shape_cast %23 : vector<1x8x8x128xbf16> to vector<8x8x128xbf16>
    %25 = vector.shape_cast %24 : vector<8x8x128xbf16> to vector<64x128xbf16>
    %c512 = arith.constant 512 : index
    %c0_25 = arith.constant 0 : index
    %26 = vector.load %arg3[%c512, %c0_25] : memref<1152x128xbf16, #tpu.memory_space<vmem>>, vector<128x128xbf16>
    %cst_26 = arith.constant dense<0.000000e+00> : vector<64x128xf32>
    %27 = tpu.matmul %25, %26, %cst_26 {dimension_numbers = #tpu.dot_dimension_numbers<[1], [0], [0], [1], [0, 0, 1, 1], [], []>} : vector<64x128xbf16>, vector<128x128xbf16>, vector<64x128xf32> -> vector<64x128xf32>
    %28 = arith.addf %22, %27 : vector<64x128xf32>
    %c0_27 = arith.constant 0 : index
    %c1_28 = arith.constant 1 : index
    %c2_29 = arith.constant 2 : index
    %c0_30 = arith.constant 0 : index
    %29 = vector.load %arg2[%c0_27, %c1_28, %c2_29, %c0_30] : memref<1x10x10x128xbf16, #tpu.memory_space<vmem>>, vector<1x8x8x128xbf16>
    %30 = vector.shape_cast %29 : vector<1x8x8x128xbf16> to vector<8x8x128xbf16>
    %31 = vector.shape_cast %30 : vector<8x8x128xbf16> to vector<64x128xbf16>
    %c640 = arith.constant 640 : index
    %c0_31 = arith.constant 0 : index
    %32 = vector.load %arg3[%c640, %c0_31] : memref<1152x128xbf16, #tpu.memory_space<vmem>>, vector<128x128xbf16>
    %cst_32 = arith.constant dense<0.000000e+00> : vector<64x128xf32>
    %33 = tpu.matmul %31, %32, %cst_32 {dimension_numbers = #tpu.dot_dimension_numbers<[1], [0], [0], [1], [0, 0, 1, 1], [], []>} : vector<64x128xbf16>, vector<128x128xbf16>, vector<64x128xf32> -> vector<64x128xf32>
    %34 = arith.addf %28, %33 : vector<64x128xf32>
    %c0_33 = arith.constant 0 : index
    %c2_34 = arith.constant 2 : index
    %c0_35 = arith.constant 0 : index
    %c0_36 = arith.constant 0 : index
    %35 = vector.load %arg2[%c0_33, %c2_34, %c0_35, %c0_36] : memref<1x10x10x128xbf16, #tpu.memory_space<vmem>>, vector<1x8x8x128xbf16>
    %36 = vector.shape_cast %35 : vector<1x8x8x128xbf16> to vector<8x8x128xbf16>
    %37 = vector.shape_cast %36 : vector<8x8x128xbf16> to vector<64x128xbf16>
    %c768 = arith.constant 768 : index
    %c0_37 = arith.constant 0 : index
    %38 = vector.load %arg3[%c768, %c0_37] : memref<1152x128xbf16, #tpu.memory_space<vmem>>, vector<128x128xbf16>
    %cst_38 = arith.constant dense<0.000000e+00> : vector<64x128xf32>
    %39 = tpu.matmul %37, %38, %cst_38 {dimension_numbers = #tpu.dot_dimension_numbers<[1], [0], [0], [1], [0, 0, 1, 1], [], []>} : vector<64x128xbf16>, vector<128x128xbf16>, vector<64x128xf32> -> vector<64x128xf32>
    %40 = arith.addf %34, %39 : vector<64x128xf32>
    %c0_39 = arith.constant 0 : index
    %c2_40 = arith.constant 2 : index
    %c1_41 = arith.constant 1 : index
    %c0_42 = arith.constant 0 : index
    %41 = vector.load %arg2[%c0_39, %c2_40, %c1_41, %c0_42] : memref<1x10x10x128xbf16, #tpu.memory_space<vmem>>, vector<1x8x8x128xbf16>
    %42 = vector.shape_cast %41 : vector<1x8x8x128xbf16> to vector<8x8x128xbf16>
    %43 = vector.shape_cast %42 : vector<8x8x128xbf16> to vector<64x128xbf16>
    %c896 = arith.constant 896 : index
    %c0_43 = arith.constant 0 : index
    %44 = vector.load %arg3[%c896, %c0_43] : memref<1152x128xbf16, #tpu.memory_space<vmem>>, vector<128x128xbf16>
    %cst_44 = arith.constant dense<0.000000e+00> : vector<64x128xf32>
    %45 = tpu.matmul %43, %44, %cst_44 {dimension_numbers = #tpu.dot_dimension_numbers<[1], [0], [0], [1], [0, 0, 1, 1], [], []>} : vector<64x128xbf16>, vector<128x128xbf16>, vector<64x128xf32> -> vector<64x128xf32>
    %46 = arith.addf %40, %45 : vector<64x128xf32>
    %c0_45 = arith.constant 0 : index
    %c2_46 = arith.constant 2 : index
    %c2_47 = arith.constant 2 : index
    %c0_48 = arith.constant 0 : index
    %47 = vector.load %arg2[%c0_45, %c2_46, %c2_47, %c0_48] : memref<1x10x10x128xbf16, #tpu.memory_space<vmem>>, vector<1x8x8x128xbf16>
    %48 = vector.shape_cast %47 : vector<1x8x8x128xbf16> to vector<8x8x128xbf16>
    %49 = vector.shape_cast %48 : vector<8x8x128xbf16> to vector<64x128xbf16>
    %c1024 = arith.constant 1024 : index
    %c0_49 = arith.constant 0 : index
    %50 = vector.load %arg3[%c1024, %c0_49] : memref<1152x128xbf16, #tpu.memory_space<vmem>>, vector<128x128xbf16>
    %cst_50 = arith.constant dense<0.000000e+00> : vector<64x128xf32>
    %51 = tpu.matmul %49, %50, %cst_50 {dimension_numbers = #tpu.dot_dimension_numbers<[1], [0], [0], [1], [0, 0, 1, 1], [], []>} : vector<64x128xbf16>, vector<128x128xbf16>, vector<64x128xf32> -> vector<64x128xf32>
    %52 = arith.addf %46, %51 : vector<64x128xf32>
    %c0_51 = arith.constant 0 : index
    %c0_52 = arith.constant 0 : index
    %53 = vector.load %arg4[%c0_51, %c0_52] : memref<1x128xf32, #tpu.memory_space<vmem>>, vector<1x128xf32>
    %54 = vector.broadcast %53 : vector<1x128xf32> to vector<64x128xf32>
    %55 = arith.addf %52, %54 : vector<64x128xf32>
    %56 = arith.negf %55 : vector<64x128xf32>
    %57 = math.exp %56 : vector<64x128xf32>
    %cst_53 = arith.constant 1.000000e+00 : f32
    %58 = vector.broadcast %cst_53 : f32 to vector<64x128xf32>
    %59 = arith.addf %58, %57 : vector<64x128xf32>
    %60 = arith.divf %58, %59 : vector<64x128xf32>
    %61 = arith.mulf %55, %60 : vector<64x128xf32>
    %c0_54 = arith.constant 0 : index
    %c0_55 = arith.constant 0 : index
    %c0_56 = arith.constant 0 : index
    %62 = vector.load %arg5[%c0_54, %c0_55, %c0_56] : memref<1x64x128xbf16, #tpu.memory_space<vmem>>, vector<1x64x128xbf16>
    %63 = vector.shape_cast %62 : vector<1x64x128xbf16> to vector<64x128xbf16>
    %64 = arith.extf %63 : vector<64x128xbf16> to vector<64x128xf32>
    %65 = arith.addf %61, %64 : vector<64x128xf32>
    %66 = arith.truncf %65 : vector<64x128xf32> to vector<64x128xbf16>
    %c0_57 = arith.constant 0 : index
    %c0_58 = arith.constant 0 : index
    %c0_59 = arith.constant 0 : index
    %67 = vector.load %arg6[%c0_57, %c0_58, %c0_59] : memref<1x64x128xbf16, #tpu.memory_space<vmem>>, vector<1x64x128xbf16>
    %68 = vector.shape_cast %67 : vector<1x64x128xbf16> to vector<64x128xbf16>
    %69 = vector.shape_cast %66 : vector<64x128xbf16> to vector<1x64x128xbf16>
    tpu.vector_store %arg6[%c0_57, %c0_58, %c0_59], %69 {strides = array<i32>} : memref<1x64x128xbf16, #tpu.memory_space<vmem>>, vector<1x64x128xbf16>,
    return
  }
  func.func @transform_0(%arg0: i32, %arg1: i32) -> (i32, i32, i32, i32) {
    %c0_i32 = arith.constant 0 : i32
    %c0_i32_0 = arith.constant 0 : i32
    %c0_i32_1 = arith.constant 0 : i32
    %c0_i32_2 = arith.constant 0 : i32
    return %arg0, %c0_i32, %c0_i32_0, %c0_i32_1 : i32, i32, i32, i32
  }
  func.func @transform_1(%arg0: i32, %arg1: i32) -> (i32, i32) {
    %c0_i32 = arith.constant 0 : i32
    %c0_i32_0 = arith.constant 0 : i32
    return %c0_i32, %arg1 : i32, i32
  }
  func.func @transform_2(%arg0: i32, %arg1: i32) -> (i32, i32) {
    %c0_i32 = arith.constant 0 : i32
    %c0_i32_0 = arith.constant 0 : i32
    return %c0_i32, %arg1 : i32, i32
  }
  func.func @transform_3(%arg0: i32, %arg1: i32) -> (i32, i32, i32) {
    %c0_i32 = arith.constant 0 : i32
    %c0_i32_0 = arith.constant 0 : i32
    return %arg0, %c0_i32, %arg1 : i32, i32, i32
  }
  func.func @transform_4(%arg0: i32, %arg1: i32) -> (i32, i32, i32) {
    %c0_i32 = arith.constant 0 : i32
    %c0_i32_0 = arith.constant 0 : i32
    return %arg0, %c0_i32, %arg1 : i32, i32, i32
  }
}

module attributes {stable_mosaic.version = 11 : i64} {
  func.func @_mm_kernel(%arg0: i32, %arg1: i32, %arg2: memref<32x1152xbf16, #tpu.memory_space<vmem>>, %arg3: memref<1152x128xbf16, #tpu.memory_space<vmem>>, %arg4: memref<1x128xf32, #tpu.memory_space<vmem>>, %arg5: memref<32x128xbf16, #tpu.memory_space<vmem>>) attributes {dimension_semantics = [#tpu.dimension_semantics<parallel>, #tpu.dimension_semantics<parallel>], iteration_bounds = array<i64: 1, 1>, scalar_prefetch = 0 : i64, scratch_operands = 0 : i64, tpu.core_type = #tpu.core_type<tc>, window_params = [{transform_indices = @transform_0, window_bounds = array<i64: 32, 1152>}, {transform_indices = @transform_1, window_bounds = array<i64: 1152, 128>}, {transform_indices = @transform_2, window_bounds = array<i64: 1, 128>}, {transform_indices = @transform_3, window_bounds = array<i64: 32, 128>}]} {
    %c0 = arith.constant 0 : index
    %c0_0 = arith.constant 0 : index
    %0 = vector.load %arg2[%c0, %c0_0] : memref<32x1152xbf16, #tpu.memory_space<vmem>>, vector<32x1152xbf16>
    %c0_1 = arith.constant 0 : index
    %c0_2 = arith.constant 0 : index
    %1 = vector.load %arg3[%c0_1, %c0_2] : memref<1152x128xbf16, #tpu.memory_space<vmem>>, vector<1152x128xbf16>
    %cst = arith.constant dense<0.000000e+00> : vector<32x128xf32>
    %2 = tpu.matmul %0, %1, %cst {dimension_numbers = #tpu.dot_dimension_numbers<[1], [0], [0], [1], [0, 0, 1, 1], [], []>} : vector<32x1152xbf16>, vector<1152x128xbf16>, vector<32x128xf32> -> vector<32x128xf32>
    %c0_3 = arith.constant 0 : index
    %c0_4 = arith.constant 0 : index
    %3 = vector.load %arg4[%c0_3, %c0_4] : memref<1x128xf32, #tpu.memory_space<vmem>>, vector<1x128xf32>
    %4 = vector.broadcast %3 : vector<1x128xf32> to vector<32x128xf32>
    %5 = arith.addf %2, %4 : vector<32x128xf32>
    %6 = arith.negf %5 : vector<32x128xf32>
    %7 = math.exp %6 : vector<32x128xf32>
    %cst_5 = arith.constant 1.000000e+00 : f32
    %8 = vector.broadcast %cst_5 : f32 to vector<32x128xf32>
    %9 = arith.addf %8, %7 : vector<32x128xf32>
    %10 = arith.divf %8, %9 : vector<32x128xf32>
    %11 = arith.mulf %5, %10 : vector<32x128xf32>
    %12 = arith.truncf %11 : vector<32x128xf32> to vector<32x128xbf16>
    %c0_6 = arith.constant 0 : index
    %c0_7 = arith.constant 0 : index
    %13 = vector.load %arg5[%c0_6, %c0_7] : memref<32x128xbf16, #tpu.memory_space<vmem>>, vector<32x128xbf16>
    tpu.vector_store %arg5[%c0_6, %c0_7], %12 {strides = array<i32>} : memref<32x128xbf16, #tpu.memory_space<vmem>>, vector<32x128xbf16>,
    return
  }
  func.func @transform_0(%arg0: i32, %arg1: i32) -> (i32, i32) {
    %c0_i32 = arith.constant 0 : i32
    %c0_i32_0 = arith.constant 0 : i32
    return %arg0, %c0_i32 : i32, i32
  }
  func.func @transform_1(%arg0: i32, %arg1: i32) -> (i32, i32) {
    %c0_i32 = arith.constant 0 : i32
    %c0_i32_0 = arith.constant 0 : i32
    return %c0_i32, %arg1 : i32, i32
  }
  func.func @transform_2(%arg0: i32, %arg1: i32) -> (i32, i32) {
    %c0_i32 = arith.constant 0 : i32
    %c0_i32_0 = arith.constant 0 : i32
    return %c0_i32, %arg1 : i32, i32
  }
  func.func @transform_3(%arg0: i32, %arg1: i32) -> (i32, i32) {
    %c0_i32 = arith.constant 0 : i32
    return %arg0, %arg1 : i32, i32
  }
}

module attributes {stable_mosaic.version = 11 : i64} {
  func.func @_mm_kernel(%arg0: i32, %arg1: i32, %arg2: memref<32x128xbf16, #tpu.memory_space<vmem>>, %arg3: memref<128x128xbf16, #tpu.memory_space<vmem>>, %arg4: memref<1x128xf32, #tpu.memory_space<vmem>>, %arg5: memref<32x128xbf16, #tpu.memory_space<vmem>>) attributes {dimension_semantics = [#tpu.dimension_semantics<parallel>, #tpu.dimension_semantics<parallel>], iteration_bounds = array<i64: 1, 1>, scalar_prefetch = 0 : i64, scratch_operands = 0 : i64, tpu.core_type = #tpu.core_type<tc>, window_params = [{transform_indices = @transform_0, window_bounds = array<i64: 32, 128>}, {transform_indices = @transform_1, window_bounds = array<i64: 128, 128>}, {transform_indices = @transform_2, window_bounds = array<i64: 1, 128>}, {transform_indices = @transform_3, window_bounds = array<i64: 32, 128>}]} {
    %c0 = arith.constant 0 : index
    %c0_0 = arith.constant 0 : index
    %0 = vector.load %arg2[%c0, %c0_0] : memref<32x128xbf16, #tpu.memory_space<vmem>>, vector<32x128xbf16>
    %c0_1 = arith.constant 0 : index
    %c0_2 = arith.constant 0 : index
    %1 = vector.load %arg3[%c0_1, %c0_2] : memref<128x128xbf16, #tpu.memory_space<vmem>>, vector<128x128xbf16>
    %cst = arith.constant dense<0.000000e+00> : vector<32x128xf32>
    %2 = tpu.matmul %0, %1, %cst {dimension_numbers = #tpu.dot_dimension_numbers<[1], [0], [0], [1], [0, 0, 1, 1], [], []>} : vector<32x128xbf16>, vector<128x128xbf16>, vector<32x128xf32> -> vector<32x128xf32>
    %c0_3 = arith.constant 0 : index
    %c0_4 = arith.constant 0 : index
    %3 = vector.load %arg4[%c0_3, %c0_4] : memref<1x128xf32, #tpu.memory_space<vmem>>, vector<1x128xf32>
    %4 = vector.broadcast %3 : vector<1x128xf32> to vector<32x128xf32>
    %5 = arith.addf %2, %4 : vector<32x128xf32>
    %6 = arith.negf %5 : vector<32x128xf32>
    %7 = math.exp %6 : vector<32x128xf32>
    %cst_5 = arith.constant 1.000000e+00 : f32
    %8 = vector.broadcast %cst_5 : f32 to vector<32x128xf32>
    %9 = arith.addf %8, %7 : vector<32x128xf32>
    %10 = arith.divf %8, %9 : vector<32x128xf32>
    %11 = arith.mulf %5, %10 : vector<32x128xf32>
    %12 = arith.truncf %11 : vector<32x128xf32> to vector<32x128xbf16>
    %c0_6 = arith.constant 0 : index
    %c0_7 = arith.constant 0 : index
    %13 = vector.load %arg5[%c0_6, %c0_7] : memref<32x128xbf16, #tpu.memory_space<vmem>>, vector<32x128xbf16>
    tpu.vector_store %arg5[%c0_6, %c0_7], %12 {strides = array<i32>} : memref<32x128xbf16, #tpu.memory_space<vmem>>, vector<32x128xbf16>,
    return
  }
  func.func @transform_0(%arg0: i32, %arg1: i32) -> (i32, i32) {
    %c0_i32 = arith.constant 0 : i32
    %c0_i32_0 = arith.constant 0 : i32
    return %arg0, %c0_i32 : i32, i32
  }
  func.func @transform_1(%arg0: i32, %arg1: i32) -> (i32, i32) {
    %c0_i32 = arith.constant 0 : i32
    %c0_i32_0 = arith.constant 0 : i32
    return %c0_i32, %arg1 : i32, i32
  }
  func.func @transform_2(%arg0: i32, %arg1: i32) -> (i32, i32) {
    %c0_i32 = arith.constant 0 : i32
    %c0_i32_0 = arith.constant 0 : i32
    return %c0_i32, %arg1 : i32, i32
  }
  func.func @transform_3(%arg0: i32, %arg1: i32) -> (i32, i32) {
    %c0_i32 = arith.constant 0 : i32
    return %arg0, %arg1 : i32, i32
  }
}

module attributes {stable_mosaic.version = 11 : i64} {
  func.func @_mm_kernel(%arg0: i32, %arg1: i32, %arg2: memref<32x128xbf16, #tpu.memory_space<vmem>>, %arg3: memref<128x128xbf16, #tpu.memory_space<vmem>>, %arg4: memref<1x128xf32, #tpu.memory_space<vmem>>, %arg5: memref<32x128xbf16, #tpu.memory_space<vmem>>) attributes {dimension_semantics = [#tpu.dimension_semantics<parallel>, #tpu.dimension_semantics<parallel>], iteration_bounds = array<i64: 1, 1>, scalar_prefetch = 0 : i64, scratch_operands = 0 : i64, tpu.core_type = #tpu.core_type<tc>, window_params = [{transform_indices = @transform_0, window_bounds = array<i64: 32, 128>}, {transform_indices = @transform_1, window_bounds = array<i64: 128, 128>}, {transform_indices = @transform_2, window_bounds = array<i64: 1, 128>}, {transform_indices = @transform_3, window_bounds = array<i64: 32, 128>}]} {
    %c0 = arith.constant 0 : index
    %c0_0 = arith.constant 0 : index
    %0 = vector.load %arg2[%c0, %c0_0] : memref<32x128xbf16, #tpu.memory_space<vmem>>, vector<32x128xbf16>
    %c0_1 = arith.constant 0 : index
    %c0_2 = arith.constant 0 : index
    %1 = vector.load %arg3[%c0_1, %c0_2] : memref<128x128xbf16, #tpu.memory_space<vmem>>, vector<128x128xbf16>
    %cst = arith.constant dense<0.000000e+00> : vector<32x128xf32>
    %2 = tpu.matmul %0, %1, %cst {dimension_numbers = #tpu.dot_dimension_numbers<[1], [0], [0], [1], [0, 0, 1, 1], [], []>} : vector<32x128xbf16>, vector<128x128xbf16>, vector<32x128xf32> -> vector<32x128xf32>
    %c0_3 = arith.constant 0 : index
    %c0_4 = arith.constant 0 : index
    %3 = vector.load %arg4[%c0_3, %c0_4] : memref<1x128xf32, #tpu.memory_space<vmem>>, vector<1x128xf32>
    %4 = vector.broadcast %3 : vector<1x128xf32> to vector<32x128xf32>
    %5 = arith.addf %2, %4 : vector<32x128xf32>
    %6 = arith.truncf %5 : vector<32x128xf32> to vector<32x128xbf16>
    %c0_5 = arith.constant 0 : index
    %c0_6 = arith.constant 0 : index
    %7 = vector.load %arg5[%c0_5, %c0_6] : memref<32x128xbf16, #tpu.memory_space<vmem>>, vector<32x128xbf16>
    tpu.vector_store %arg5[%c0_5, %c0_6], %6 {strides = array<i32>} : memref<32x128xbf16, #tpu.memory_space<vmem>>, vector<32x128xbf16>,
    return
  }
  func.func @transform_0(%arg0: i32, %arg1: i32) -> (i32, i32) {
    %c0_i32 = arith.constant 0 : i32
    %c0_i32_0 = arith.constant 0 : i32
    return %arg0, %c0_i32 : i32, i32
  }
  func.func @transform_1(%arg0: i32, %arg1: i32) -> (i32, i32) {
    %c0_i32 = arith.constant 0 : i32
    %c0_i32_0 = arith.constant 0 : i32
    return %c0_i32, %arg1 : i32, i32
  }
  func.func @transform_2(%arg0: i32, %arg1: i32) -> (i32, i32) {
    %c0_i32 = arith.constant 0 : i32
    %c0_i32_0 = arith.constant 0 : i32
    return %c0_i32, %arg1 : i32, i32
  }
  func.func @transform_3(%arg0: i32, %arg1: i32) -> (i32, i32) {
    %c0_i32 = arith.constant 0 : i32
    return %arg0, %arg1 : i32, i32
  }
}

module attributes {stable_mosaic.version = 11 : i64} {
  func.func @_mm_kernel(%arg0: i32, %arg1: i32, %arg2: memref<8x128xbf16, #tpu.memory_space<vmem>>, %arg3: memref<128x128xbf16, #tpu.memory_space<vmem>>, %arg4: memref<1x128xf32, #tpu.memory_space<vmem>>, %arg5: memref<8x128xbf16, #tpu.memory_space<vmem>>) attributes {dimension_semantics = [#tpu.dimension_semantics<parallel>, #tpu.dimension_semantics<parallel>], iteration_bounds = array<i64: 1, 1>, scalar_prefetch = 0 : i64, scratch_operands = 0 : i64, tpu.core_type = #tpu.core_type<tc>, window_params = [{transform_indices = @transform_0, window_bounds = array<i64: 8, 128>}, {transform_indices = @transform_1, window_bounds = array<i64: 128, 128>}, {transform_indices = @transform_2, window_bounds = array<i64: 1, 128>}, {transform_indices = @transform_3, window_bounds = array<i64: 8, 128>}]} {
    %c0 = arith.constant 0 : index
    %c0_0 = arith.constant 0 : index
    %0 = vector.load %arg2[%c0, %c0_0] : memref<8x128xbf16, #tpu.memory_space<vmem>>, vector<8x128xbf16>
    %c0_1 = arith.constant 0 : index
    %c0_2 = arith.constant 0 : index
    %1 = vector.load %arg3[%c0_1, %c0_2] : memref<128x128xbf16, #tpu.memory_space<vmem>>, vector<128x128xbf16>
    %cst = arith.constant dense<0.000000e+00> : vector<8x128xf32>
    %2 = tpu.matmul %0, %1, %cst {dimension_numbers = #tpu.dot_dimension_numbers<[1], [0], [0], [1], [0, 0, 1, 1], [], []>} : vector<8x128xbf16>, vector<128x128xbf16>, vector<8x128xf32> -> vector<8x128xf32>
    %c0_3 = arith.constant 0 : index
    %c0_4 = arith.constant 0 : index
    %3 = vector.load %arg4[%c0_3, %c0_4] : memref<1x128xf32, #tpu.memory_space<vmem>>, vector<1x128xf32>
    %4 = vector.broadcast %3 : vector<1x128xf32> to vector<8x128xf32>
    %5 = arith.addf %2, %4 : vector<8x128xf32>
    %6 = arith.negf %5 : vector<8x128xf32>
    %7 = math.exp %6 : vector<8x128xf32>
    %cst_5 = arith.constant 1.000000e+00 : f32
    %8 = vector.broadcast %cst_5 : f32 to vector<8x128xf32>
    %9 = arith.addf %8, %7 : vector<8x128xf32>
    %10 = arith.divf %8, %9 : vector<8x128xf32>
    %11 = arith.mulf %5, %10 : vector<8x128xf32>
    %12 = arith.truncf %11 : vector<8x128xf32> to vector<8x128xbf16>
    %c0_6 = arith.constant 0 : index
    %c0_7 = arith.constant 0 : index
    %13 = vector.load %arg5[%c0_6, %c0_7] : memref<8x128xbf16, #tpu.memory_space<vmem>>, vector<8x128xbf16>
    tpu.vector_store %arg5[%c0_6, %c0_7], %12 {strides = array<i32>} : memref<8x128xbf16, #tpu.memory_space<vmem>>, vector<8x128xbf16>,
    return
  }
  func.func @transform_0(%arg0: i32, %arg1: i32) -> (i32, i32) {
    %c0_i32 = arith.constant 0 : i32
    %c0_i32_0 = arith.constant 0 : i32
    return %arg0, %c0_i32 : i32, i32
  }
  func.func @transform_1(%arg0: i32, %arg1: i32) -> (i32, i32) {
    %c0_i32 = arith.constant 0 : i32
    %c0_i32_0 = arith.constant 0 : i32
    return %c0_i32, %arg1 : i32, i32
  }
  func.func @transform_2(%arg0: i32, %arg1: i32) -> (i32, i32) {
    %c0_i32 = arith.constant 0 : i32
    %c0_i32_0 = arith.constant 0 : i32
    return %c0_i32, %arg1 : i32, i32
  }
  func.func @transform_3(%arg0: i32, %arg1: i32) -> (i32, i32) {
    %c0_i32 = arith.constant 0 : i32
    return %arg0, %arg1 : i32, i32
  }
}

module attributes {stable_mosaic.version = 11 : i64} {
  func.func @_se_proj_kernel(%arg0: i32, %arg1: memref<1x4x128xbf16, #tpu.memory_space<vmem>>, %arg2: memref<128x6xbf16, #tpu.memory_space<vmem>>, %arg3: memref<1x6xf32, #tpu.memory_space<vmem>>, %arg4: memref<6x128xbf16, #tpu.memory_space<vmem>>, %arg5: memref<1x128xf32, #tpu.memory_space<vmem>>, %arg6: memref<128x128xbf16, #tpu.memory_space<vmem>>, %arg7: memref<1x128xf32, #tpu.memory_space<vmem>>, %arg8: memref<1x4x128xbf16, #tpu.memory_space<vmem>>) attributes {dimension_semantics = [#tpu.dimension_semantics<parallel>], iteration_bounds = array<i64: 2>, scalar_prefetch = 0 : i64, scratch_operands = 0 : i64, tpu.core_type = #tpu.core_type<tc>, window_params = [{transform_indices = @transform_0, window_bounds = array<i64: 1, 4, 128>}, {pipeline_mode = #tpu.pipeline_mode<synchronous>, transform_indices = @transform_1, window_bounds = array<i64: 128, 6>}, {pipeline_mode = #tpu.pipeline_mode<synchronous>, transform_indices = @transform_2, window_bounds = array<i64: 1, 6>}, {pipeline_mode = #tpu.pipeline_mode<synchronous>, transform_indices = @transform_3, window_bounds = array<i64: 6, 128>}, {pipeline_mode = #tpu.pipeline_mode<synchronous>, transform_indices = @transform_4, window_bounds = array<i64: 1, 128>}, {pipeline_mode = #tpu.pipeline_mode<synchronous>, transform_indices = @transform_5, window_bounds = array<i64: 128, 128>}, {pipeline_mode = #tpu.pipeline_mode<synchronous>, transform_indices = @transform_6, window_bounds = array<i64: 1, 128>}, {transform_indices = @transform_7, window_bounds = array<i64: 1, 4, 128>}]} {
    %c0 = arith.constant 0 : index
    %c0_0 = arith.constant 0 : index
    %c0_1 = arith.constant 0 : index
    %0 = vector.load %arg1[%c0, %c0_0, %c0_1] : memref<1x4x128xbf16, #tpu.memory_space<vmem>>, vector<1x4x128xbf16>
    %1 = vector.shape_cast %0 : vector<1x4x128xbf16> to vector<4x128xbf16>
    %2 = arith.extf %1 : vector<4x128xbf16> to vector<4x128xf32>
    %cst = arith.constant dense<0.000000e+00> : vector<128xf32>
    %3 = vector.multi_reduction <add>, %2, %cst [0] : vector<4x128xf32> to vector<128xf32>
    %4 = vector.shape_cast %3 : vector<128xf32> to vector<1x128xf32>
    %cst_2 = arith.constant 4.000000e+00 : f32
    %5 = vector.broadcast %cst_2 : f32 to vector<1x128xf32>
    %6 = arith.divf %4, %5 : vector<1x128xf32>
    %7 = arith.truncf %6 : vector<1x128xf32> to vector<1x128xbf16>
    %c0_3 = arith.constant 0 : index
    %c0_4 = arith.constant 0 : index
    %8 = vector.load %arg2[%c0_3, %c0_4] : memref<128x6xbf16, #tpu.memory_space<vmem>>, vector<128x6xbf16>
    %cst_5 = arith.constant dense<0.000000e+00> : vector<1x6xf32>
    %9 = tpu.matmul %7, %8, %cst_5 {dimension_numbers = #tpu.dot_dimension_numbers<[1], [0], [0], [1], [0, 0, 1, 1], [], []>} : vector<1x128xbf16>, vector<128x6xbf16>, vector<1x6xf32> -> vector<1x6xf32>
    %c0_6 = arith.constant 0 : index
    %c0_7 = arith.constant 0 : index
    %10 = vector.load %arg3[%c0_6, %c0_7] : memref<1x6xf32, #tpu.memory_space<vmem>>, vector<1x6xf32>
    %11 = arith.addf %9, %10 : vector<1x6xf32>
    %12 = arith.negf %11 : vector<1x6xf32>
    %13 = math.exp %12 : vector<1x6xf32>
    %cst_8 = arith.constant 1.000000e+00 : f32
    %14 = vector.broadcast %cst_8 : f32 to vector<1x6xf32>
    %15 = arith.addf %14, %13 : vector<1x6xf32>
    %16 = arith.divf %14, %15 : vector<1x6xf32>
    %17 = arith.mulf %11, %16 : vector<1x6xf32>
    %18 = arith.truncf %17 : vector<1x6xf32> to vector<1x6xbf16>
    %c0_9 = arith.constant 0 : index
    %c0_10 = arith.constant 0 : index
    %19 = vector.load %arg4[%c0_9, %c0_10] : memref<6x128xbf16, #tpu.memory_space<vmem>>, vector<6x128xbf16>
    %cst_11 = arith.constant dense<0.000000e+00> : vector<1x128xf32>
    %20 = tpu.matmul %18, %19, %cst_11 {dimension_numbers = #tpu.dot_dimension_numbers<[1], [0], [0], [1], [0, 0, 1, 1], [], []>} : vector<1x6xbf16>, vector<6x128xbf16>, vector<1x128xf32> -> vector<1x128xf32>
    %c0_12 = arith.constant 0 : index
    %c0_13 = arith.constant 0 : index
    %21 = vector.load %arg5[%c0_12, %c0_13] : memref<1x128xf32, #tpu.memory_space<vmem>>, vector<1x128xf32>
    %22 = arith.addf %20, %21 : vector<1x128xf32>
    %23 = arith.negf %22 : vector<1x128xf32>
    %24 = math.exp %23 : vector<1x128xf32>
    %cst_14 = arith.constant 1.000000e+00 : f32
    %25 = vector.broadcast %cst_14 : f32 to vector<1x128xf32>
    %26 = arith.addf %25, %24 : vector<1x128xf32>
    %27 = arith.divf %25, %26 : vector<1x128xf32>
    %28 = arith.extf %1 : vector<4x128xbf16> to vector<4x128xf32>
    %29 = vector.broadcast %27 : vector<1x128xf32> to vector<4x128xf32>
    %30 = arith.mulf %28, %29 : vector<4x128xf32>
    %31 = arith.truncf %30 : vector<4x128xf32> to vector<4x128xbf16>
    %c0_15 = arith.constant 0 : index
    %c0_16 = arith.constant 0 : index
    %32 = vector.load %arg6[%c0_15, %c0_16] : memref<128x128xbf16, #tpu.memory_space<vmem>>, vector<128x128xbf16>
    %cst_17 = arith.constant dense<0.000000e+00> : vector<4x128xf32>
    %33 = tpu.matmul %31, %32, %cst_17 {dimension_numbers = #tpu.dot_dimension_numbers<[1], [0], [0], [1], [0, 0, 1, 1], [], []>} : vector<4x128xbf16>, vector<128x128xbf16>, vector<4x128xf32> -> vector<4x128xf32>
    %c0_18 = arith.constant 0 : index
    %c0_19 = arith.constant 0 : index
    %34 = vector.load %arg7[%c0_18, %c0_19] : memref<1x128xf32, #tpu.memory_space<vmem>>, vector<1x128xf32>
    %35 = vector.broadcast %34 : vector<1x128xf32> to vector<4x128xf32>
    %36 = arith.addf %33, %35 : vector<4x128xf32>
    %37 = arith.truncf %36 : vector<4x128xf32> to vector<4x128xbf16>
    %c0_20 = arith.constant 0 : index
    %c0_21 = arith.constant 0 : index
    %c0_22 = arith.constant 0 : index
    %38 = vector.load %arg8[%c0_20, %c0_21, %c0_22] : memref<1x4x128xbf16, #tpu.memory_space<vmem>>, vector<1x4x128xbf16>
    %39 = vector.shape_cast %38 : vector<1x4x128xbf16> to vector<4x128xbf16>
    %40 = vector.shape_cast %37 : vector<4x128xbf16> to vector<1x4x128xbf16>
    tpu.vector_store %arg8[%c0_20, %c0_21, %c0_22], %40 {strides = array<i32>} : memref<1x4x128xbf16, #tpu.memory_space<vmem>>, vector<1x4x128xbf16>,
    return
  }
  func.func @transform_0(%arg0: i32) -> (i32, i32, i32) {
    %c0_i32 = arith.constant 0 : i32
    %c0_i32_0 = arith.constant 0 : i32
    %c0_i32_1 = arith.constant 0 : i32
    return %arg0, %c0_i32, %c0_i32_0 : i32, i32, i32
  }
  func.func @transform_1(%arg0: i32) -> (i32, i32) {
    %c0_i32 = arith.constant 0 : i32
    %c0_i32_0 = arith.constant 0 : i32
    %c0_i32_1 = arith.constant 0 : i32
    return %c0_i32, %c0_i32_0 : i32, i32
  }
  func.func @transform_2(%arg0: i32) -> (i32, i32) {
    %c0_i32 = arith.constant 0 : i32
    %c0_i32_0 = arith.constant 0 : i32
    %c0_i32_1 = arith.constant 0 : i32
    return %c0_i32, %c0_i32_0 : i32, i32
  }
  func.func @transform_3(%arg0: i32) -> (i32, i32) {
    %c0_i32 = arith.constant 0 : i32
    %c0_i32_0 = arith.constant 0 : i32
    %c0_i32_1 = arith.constant 0 : i32
    return %c0_i32, %c0_i32_0 : i32, i32
  }
  func.func @transform_4(%arg0: i32) -> (i32, i32) {
    %c0_i32 = arith.constant 0 : i32
    %c0_i32_0 = arith.constant 0 : i32
    %c0_i32_1 = arith.constant 0 : i32
    return %c0_i32, %c0_i32_0 : i32, i32
  }
  func.func @transform_5(%arg0: i32) -> (i32, i32) {
    %c0_i32 = arith.constant 0 : i32
    %c0_i32_0 = arith.constant 0 : i32
    %c0_i32_1 = arith.constant 0 : i32
    return %c0_i32, %c0_i32_0 : i32, i32
  }
  func.func @transform_6(%arg0: i32) -> (i32, i32) {
    %c0_i32 = arith.constant 0 : i32
    %c0_i32_0 = arith.constant 0 : i32
    %c0_i32_1 = arith.constant 0 : i32
    return %c0_i32, %c0_i32_0 : i32, i32
  }
  func.func @transform_7(%arg0: i32) -> (i32, i32, i32) {
    %c0_i32 = arith.constant 0 : i32
    %c0_i32_0 = arith.constant 0 : i32
    %c0_i32_1 = arith.constant 0 : i32
    return %arg0, %c0_i32, %c0_i32_0 : i32, i32, i32
  }
}

module attributes {stable_mosaic.version = 11 : i64} {
  func.func @_dw_taps_kernel(%arg0: i32, %arg1: i32, %arg2: memref<9x8x128xbf16, #tpu.memory_space<vmem>>, %arg3: memref<9x1x128xf32, #tpu.memory_space<vmem>>, %arg4: memref<1x128xf32, #tpu.memory_space<vmem>>, %arg5: memref<8x128xbf16, #tpu.memory_space<vmem>>) attributes {dimension_semantics = [#tpu.dimension_semantics<parallel>, #tpu.dimension_semantics<parallel>], iteration_bounds = array<i64: 1, 1>, scalar_prefetch = 0 : i64, scratch_operands = 0 : i64, tpu.core_type = #tpu.core_type<tc>, window_params = [{transform_indices = @transform_0, window_bounds = array<i64: 9, 8, 128>}, {transform_indices = @transform_1, window_bounds = array<i64: 9, 1, 128>}, {transform_indices = @transform_2, window_bounds = array<i64: 1, 128>}, {transform_indices = @transform_3, window_bounds = array<i64: 8, 128>}]} {
    %c0 = arith.constant 0 : index
    %c0_0 = arith.constant 0 : index
    %c0_1 = arith.constant 0 : index
    %0 = vector.load %arg2[%c0, %c0_0, %c0_1] : memref<9x8x128xbf16, #tpu.memory_space<vmem>>, vector<1x8x128xbf16>
    %1 = vector.shape_cast %0 : vector<1x8x128xbf16> to vector<8x128xbf16>
    %2 = arith.extf %1 : vector<8x128xbf16> to vector<8x128xf32>
    %c0_2 = arith.constant 0 : index
    %c0_3 = arith.constant 0 : index
    %c0_4 = arith.constant 0 : index
    %3 = vector.load %arg3[%c0_2, %c0_3, %c0_4] : memref<9x1x128xf32, #tpu.memory_space<vmem>>, vector<1x1x128xf32>
    %4 = vector.shape_cast %3 : vector<1x1x128xf32> to vector<1x128xf32>
    %5 = vector.broadcast %4 : vector<1x128xf32> to vector<8x128xf32>
    %6 = arith.mulf %2, %5 : vector<8x128xf32>
    %c1 = arith.constant 1 : index
    %c0_5 = arith.constant 0 : index
    %c0_6 = arith.constant 0 : index
    %7 = vector.load %arg2[%c1, %c0_5, %c0_6] : memref<9x8x128xbf16, #tpu.memory_space<vmem>>, vector<1x8x128xbf16>
    %8 = vector.shape_cast %7 : vector<1x8x128xbf16> to vector<8x128xbf16>
    %9 = arith.extf %8 : vector<8x128xbf16> to vector<8x128xf32>
    %c1_7 = arith.constant 1 : index
    %c0_8 = arith.constant 0 : index
    %c0_9 = arith.constant 0 : index
    %10 = vector.load %arg3[%c1_7, %c0_8, %c0_9] : memref<9x1x128xf32, #tpu.memory_space<vmem>>, vector<1x1x128xf32>
    %11 = vector.shape_cast %10 : vector<1x1x128xf32> to vector<1x128xf32>
    %12 = vector.broadcast %11 : vector<1x128xf32> to vector<8x128xf32>
    %13 = arith.mulf %9, %12 : vector<8x128xf32>
    %14 = arith.addf %6, %13 : vector<8x128xf32>
    %c2 = arith.constant 2 : index
    %c0_10 = arith.constant 0 : index
    %c0_11 = arith.constant 0 : index
    %15 = vector.load %arg2[%c2, %c0_10, %c0_11] : memref<9x8x128xbf16, #tpu.memory_space<vmem>>, vector<1x8x128xbf16>
    %16 = vector.shape_cast %15 : vector<1x8x128xbf16> to vector<8x128xbf16>
    %17 = arith.extf %16 : vector<8x128xbf16> to vector<8x128xf32>
    %c2_12 = arith.constant 2 : index
    %c0_13 = arith.constant 0 : index
    %c0_14 = arith.constant 0 : index
    %18 = vector.load %arg3[%c2_12, %c0_13, %c0_14] : memref<9x1x128xf32, #tpu.memory_space<vmem>>, vector<1x1x128xf32>
    %19 = vector.shape_cast %18 : vector<1x1x128xf32> to vector<1x128xf32>
    %20 = vector.broadcast %19 : vector<1x128xf32> to vector<8x128xf32>
    %21 = arith.mulf %17, %20 : vector<8x128xf32>
    %22 = arith.addf %14, %21 : vector<8x128xf32>
    %c3 = arith.constant 3 : index
    %c0_15 = arith.constant 0 : index
    %c0_16 = arith.constant 0 : index
    %23 = vector.load %arg2[%c3, %c0_15, %c0_16] : memref<9x8x128xbf16, #tpu.memory_space<vmem>>, vector<1x8x128xbf16>
    %24 = vector.shape_cast %23 : vector<1x8x128xbf16> to vector<8x128xbf16>
    %25 = arith.extf %24 : vector<8x128xbf16> to vector<8x128xf32>
    %c3_17 = arith.constant 3 : index
    %c0_18 = arith.constant 0 : index
    %c0_19 = arith.constant 0 : index
    %26 = vector.load %arg3[%c3_17, %c0_18, %c0_19] : memref<9x1x128xf32, #tpu.memory_space<vmem>>, vector<1x1x128xf32>
    %27 = vector.shape_cast %26 : vector<1x1x128xf32> to vector<1x128xf32>
    %28 = vector.broadcast %27 : vector<1x128xf32> to vector<8x128xf32>
    %29 = arith.mulf %25, %28 : vector<8x128xf32>
    %30 = arith.addf %22, %29 : vector<8x128xf32>
    %c4 = arith.constant 4 : index
    %c0_20 = arith.constant 0 : index
    %c0_21 = arith.constant 0 : index
    %31 = vector.load %arg2[%c4, %c0_20, %c0_21] : memref<9x8x128xbf16, #tpu.memory_space<vmem>>, vector<1x8x128xbf16>
    %32 = vector.shape_cast %31 : vector<1x8x128xbf16> to vector<8x128xbf16>
    %33 = arith.extf %32 : vector<8x128xbf16> to vector<8x128xf32>
    %c4_22 = arith.constant 4 : index
    %c0_23 = arith.constant 0 : index
    %c0_24 = arith.constant 0 : index
    %34 = vector.load %arg3[%c4_22, %c0_23, %c0_24] : memref<9x1x128xf32, #tpu.memory_space<vmem>>, vector<1x1x128xf32>
    %35 = vector.shape_cast %34 : vector<1x1x128xf32> to vector<1x128xf32>
    %36 = vector.broadcast %35 : vector<1x128xf32> to vector<8x128xf32>
    %37 = arith.mulf %33, %36 : vector<8x128xf32>
    %38 = arith.addf %30, %37 : vector<8x128xf32>
    %c5 = arith.constant 5 : index
    %c0_25 = arith.constant 0 : index
    %c0_26 = arith.constant 0 : index
    %39 = vector.load %arg2[%c5, %c0_25, %c0_26] : memref<9x8x128xbf16, #tpu.memory_space<vmem>>, vector<1x8x128xbf16>
    %40 = vector.shape_cast %39 : vector<1x8x128xbf16> to vector<8x128xbf16>
    %41 = arith.extf %40 : vector<8x128xbf16> to vector<8x128xf32>
    %c5_27 = arith.constant 5 : index
    %c0_28 = arith.constant 0 : index
    %c0_29 = arith.constant 0 : index
    %42 = vector.load %arg3[%c5_27, %c0_28, %c0_29] : memref<9x1x128xf32, #tpu.memory_space<vmem>>, vector<1x1x128xf32>
    %43 = vector.shape_cast %42 : vector<1x1x128xf32> to vector<1x128xf32>
    %44 = vector.broadcast %43 : vector<1x128xf32> to vector<8x128xf32>
    %45 = arith.mulf %41, %44 : vector<8x128xf32>
    %46 = arith.addf %38, %45 : vector<8x128xf32>
    %c6 = arith.constant 6 : index
    %c0_30 = arith.constant 0 : index
    %c0_31 = arith.constant 0 : index
    %47 = vector.load %arg2[%c6, %c0_30, %c0_31] : memref<9x8x128xbf16, #tpu.memory_space<vmem>>, vector<1x8x128xbf16>
    %48 = vector.shape_cast %47 : vector<1x8x128xbf16> to vector<8x128xbf16>
    %49 = arith.extf %48 : vector<8x128xbf16> to vector<8x128xf32>
    %c6_32 = arith.constant 6 : index
    %c0_33 = arith.constant 0 : index
    %c0_34 = arith.constant 0 : index
    %50 = vector.load %arg3[%c6_32, %c0_33, %c0_34] : memref<9x1x128xf32, #tpu.memory_space<vmem>>, vector<1x1x128xf32>
    %51 = vector.shape_cast %50 : vector<1x1x128xf32> to vector<1x128xf32>
    %52 = vector.broadcast %51 : vector<1x128xf32> to vector<8x128xf32>
    %53 = arith.mulf %49, %52 : vector<8x128xf32>
    %54 = arith.addf %46, %53 : vector<8x128xf32>
    %c7 = arith.constant 7 : index
    %c0_35 = arith.constant 0 : index
    %c0_36 = arith.constant 0 : index
    %55 = vector.load %arg2[%c7, %c0_35, %c0_36] : memref<9x8x128xbf16, #tpu.memory_space<vmem>>, vector<1x8x128xbf16>
    %56 = vector.shape_cast %55 : vector<1x8x128xbf16> to vector<8x128xbf16>
    %57 = arith.extf %56 : vector<8x128xbf16> to vector<8x128xf32>
    %c7_37 = arith.constant 7 : index
    %c0_38 = arith.constant 0 : index
    %c0_39 = arith.constant 0 : index
    %58 = vector.load %arg3[%c7_37, %c0_38, %c0_39] : memref<9x1x128xf32, #tpu.memory_space<vmem>>, vector<1x1x128xf32>
    %59 = vector.shape_cast %58 : vector<1x1x128xf32> to vector<1x128xf32>
    %60 = vector.broadcast %59 : vector<1x128xf32> to vector<8x128xf32>
    %61 = arith.mulf %57, %60 : vector<8x128xf32>
    %62 = arith.addf %54, %61 : vector<8x128xf32>
    %c8 = arith.constant 8 : index
    %c0_40 = arith.constant 0 : index
    %c0_41 = arith.constant 0 : index
    %63 = vector.load %arg2[%c8, %c0_40, %c0_41] : memref<9x8x128xbf16, #tpu.memory_space<vmem>>, vector<1x8x128xbf16>
    %64 = vector.shape_cast %63 : vector<1x8x128xbf16> to vector<8x128xbf16>
    %65 = arith.extf %64 : vector<8x128xbf16> to vector<8x128xf32>
    %c8_42 = arith.constant 8 : index
    %c0_43 = arith.constant 0 : index
    %c0_44 = arith.constant 0 : index
    %66 = vector.load %arg3[%c8_42, %c0_43, %c0_44] : memref<9x1x128xf32, #tpu.memory_space<vmem>>, vector<1x1x128xf32>
    %67 = vector.shape_cast %66 : vector<1x1x128xf32> to vector<1x128xf32>
    %68 = vector.broadcast %67 : vector<1x128xf32> to vector<8x128xf32>
    %69 = arith.mulf %65, %68 : vector<8x128xf32>
    %70 = arith.addf %62, %69 : vector<8x128xf32>
    %c0_45 = arith.constant 0 : index
    %c0_46 = arith.constant 0 : index
    %71 = vector.load %arg4[%c0_45, %c0_46] : memref<1x128xf32, #tpu.memory_space<vmem>>, vector<1x128xf32>
    %72 = vector.broadcast %71 : vector<1x128xf32> to vector<8x128xf32>
    %73 = arith.addf %70, %72 : vector<8x128xf32>
    %74 = arith.negf %73 : vector<8x128xf32>
    %75 = math.exp %74 : vector<8x128xf32>
    %cst = arith.constant 1.000000e+00 : f32
    %76 = vector.broadcast %cst : f32 to vector<8x128xf32>
    %77 = arith.addf %76, %75 : vector<8x128xf32>
    %78 = arith.divf %76, %77 : vector<8x128xf32>
    %79 = arith.mulf %73, %78 : vector<8x128xf32>
    %80 = arith.truncf %79 : vector<8x128xf32> to vector<8x128xbf16>
    %c0_47 = arith.constant 0 : index
    %c0_48 = arith.constant 0 : index
    %81 = vector.load %arg5[%c0_47, %c0_48] : memref<8x128xbf16, #tpu.memory_space<vmem>>, vector<8x128xbf16>
    tpu.vector_store %arg5[%c0_47, %c0_48], %80 {strides = array<i32>} : memref<8x128xbf16, #tpu.memory_space<vmem>>, vector<8x128xbf16>,
    return
  }
  func.func @transform_0(%arg0: i32, %arg1: i32) -> (i32, i32, i32) {
    %c0_i32 = arith.constant 0 : i32
    %c0_i32_0 = arith.constant 0 : i32
    return %c0_i32, %arg0, %arg1 : i32, i32, i32
  }
  func.func @transform_1(%arg0: i32, %arg1: i32) -> (i32, i32, i32) {
    %c0_i32 = arith.constant 0 : i32
    %c0_i32_0 = arith.constant 0 : i32
    %c0_i32_1 = arith.constant 0 : i32
    return %c0_i32, %c0_i32_0, %arg1 : i32, i32, i32
  }
  func.func @transform_2(%arg0: i32, %arg1: i32) -> (i32, i32) {
    %c0_i32 = arith.constant 0 : i32
    %c0_i32_0 = arith.constant 0 : i32
    return %c0_i32, %arg1 : i32, i32
  }
  func.func @transform_3(%arg0: i32, %arg1: i32) -> (i32, i32) {
    %c0_i32 = arith.constant 0 : i32
    return %arg0, %arg1 : i32, i32
  }
}

module attributes {stable_mosaic.version = 11 : i64} {
  func.func @_se_proj_res_kernel(%arg0: i32, %arg1: memref<1x4x128xbf16, #tpu.memory_space<vmem>>, %arg2: memref<128x8xbf16, #tpu.memory_space<vmem>>, %arg3: memref<1x8xf32, #tpu.memory_space<vmem>>, %arg4: memref<8x128xbf16, #tpu.memory_space<vmem>>, %arg5: memref<1x128xf32, #tpu.memory_space<vmem>>, %arg6: memref<128x128xbf16, #tpu.memory_space<vmem>>, %arg7: memref<1x128xf32, #tpu.memory_space<vmem>>, %arg8: memref<1x4x128xbf16, #tpu.memory_space<vmem>>, %arg9: memref<1x4x128xbf16, #tpu.memory_space<vmem>>) attributes {dimension_semantics = [#tpu.dimension_semantics<parallel>], iteration_bounds = array<i64: 2>, scalar_prefetch = 0 : i64, scratch_operands = 0 : i64, tpu.core_type = #tpu.core_type<tc>, window_params = [{transform_indices = @transform_0, window_bounds = array<i64: 1, 4, 128>}, {pipeline_mode = #tpu.pipeline_mode<synchronous>, transform_indices = @transform_1, window_bounds = array<i64: 128, 8>}, {pipeline_mode = #tpu.pipeline_mode<synchronous>, transform_indices = @transform_2, window_bounds = array<i64: 1, 8>}, {pipeline_mode = #tpu.pipeline_mode<synchronous>, transform_indices = @transform_3, window_bounds = array<i64: 8, 128>}, {pipeline_mode = #tpu.pipeline_mode<synchronous>, transform_indices = @transform_4, window_bounds = array<i64: 1, 128>}, {pipeline_mode = #tpu.pipeline_mode<synchronous>, transform_indices = @transform_5, window_bounds = array<i64: 128, 128>}, {pipeline_mode = #tpu.pipeline_mode<synchronous>, transform_indices = @transform_6, window_bounds = array<i64: 1, 128>}, {transform_indices = @transform_7, window_bounds = array<i64: 1, 4, 128>}, {transform_indices = @transform_8, window_bounds = array<i64: 1, 4, 128>}]} {
    %c0 = arith.constant 0 : index
    %c0_0 = arith.constant 0 : index
    %c0_1 = arith.constant 0 : index
    %0 = vector.load %arg1[%c0, %c0_0, %c0_1] : memref<1x4x128xbf16, #tpu.memory_space<vmem>>, vector<1x4x128xbf16>
    %1 = vector.shape_cast %0 : vector<1x4x128xbf16> to vector<4x128xbf16>
    %2 = arith.extf %1 : vector<4x128xbf16> to vector<4x128xf32>
    %cst = arith.constant dense<0.000000e+00> : vector<128xf32>
    %3 = vector.multi_reduction <add>, %2, %cst [0] : vector<4x128xf32> to vector<128xf32>
    %4 = vector.shape_cast %3 : vector<128xf32> to vector<1x128xf32>
    %cst_2 = arith.constant 4.000000e+00 : f32
    %5 = vector.broadcast %cst_2 : f32 to vector<1x128xf32>
    %6 = arith.divf %4, %5 : vector<1x128xf32>
    %7 = arith.truncf %6 : vector<1x128xf32> to vector<1x128xbf16>
    %c0_3 = arith.constant 0 : index
    %c0_4 = arith.constant 0 : index
    %8 = vector.load %arg2[%c0_3, %c0_4] : memref<128x8xbf16, #tpu.memory_space<vmem>>, vector<128x8xbf16>
    %cst_5 = arith.constant dense<0.000000e+00> : vector<1x8xf32>
    %9 = tpu.matmul %7, %8, %cst_5 {dimension_numbers = #tpu.dot_dimension_numbers<[1], [0], [0], [1], [0, 0, 1, 1], [], []>} : vector<1x128xbf16>, vector<128x8xbf16>, vector<1x8xf32> -> vector<1x8xf32>
    %c0_6 = arith.constant 0 : index
    %c0_7 = arith.constant 0 : index
    %10 = vector.load %arg3[%c0_6, %c0_7] : memref<1x8xf32, #tpu.memory_space<vmem>>, vector<1x8xf32>
    %11 = arith.addf %9, %10 : vector<1x8xf32>
    %12 = arith.negf %11 : vector<1x8xf32>
    %13 = math.exp %12 : vector<1x8xf32>
    %cst_8 = arith.constant 1.000000e+00 : f32
    %14 = vector.broadcast %cst_8 : f32 to vector<1x8xf32>
    %15 = arith.addf %14, %13 : vector<1x8xf32>
    %16 = arith.divf %14, %15 : vector<1x8xf32>
    %17 = arith.mulf %11, %16 : vector<1x8xf32>
    %18 = arith.truncf %17 : vector<1x8xf32> to vector<1x8xbf16>
    %c0_9 = arith.constant 0 : index
    %c0_10 = arith.constant 0 : index
    %19 = vector.load %arg4[%c0_9, %c0_10] : memref<8x128xbf16, #tpu.memory_space<vmem>>, vector<8x128xbf16>
    %cst_11 = arith.constant dense<0.000000e+00> : vector<1x128xf32>
    %20 = tpu.matmul %18, %19, %cst_11 {dimension_numbers = #tpu.dot_dimension_numbers<[1], [0], [0], [1], [0, 0, 1, 1], [], []>} : vector<1x8xbf16>, vector<8x128xbf16>, vector<1x128xf32> -> vector<1x128xf32>
    %c0_12 = arith.constant 0 : index
    %c0_13 = arith.constant 0 : index
    %21 = vector.load %arg5[%c0_12, %c0_13] : memref<1x128xf32, #tpu.memory_space<vmem>>, vector<1x128xf32>
    %22 = arith.addf %20, %21 : vector<1x128xf32>
    %23 = arith.negf %22 : vector<1x128xf32>
    %24 = math.exp %23 : vector<1x128xf32>
    %cst_14 = arith.constant 1.000000e+00 : f32
    %25 = vector.broadcast %cst_14 : f32 to vector<1x128xf32>
    %26 = arith.addf %25, %24 : vector<1x128xf32>
    %27 = arith.divf %25, %26 : vector<1x128xf32>
    %28 = arith.extf %1 : vector<4x128xbf16> to vector<4x128xf32>
    %29 = vector.broadcast %27 : vector<1x128xf32> to vector<4x128xf32>
    %30 = arith.mulf %28, %29 : vector<4x128xf32>
    %31 = arith.truncf %30 : vector<4x128xf32> to vector<4x128xbf16>
    %c0_15 = arith.constant 0 : index
    %c0_16 = arith.constant 0 : index
    %32 = vector.load %arg6[%c0_15, %c0_16] : memref<128x128xbf16, #tpu.memory_space<vmem>>, vector<128x128xbf16>
    %cst_17 = arith.constant dense<0.000000e+00> : vector<4x128xf32>
    %33 = tpu.matmul %31, %32, %cst_17 {dimension_numbers = #tpu.dot_dimension_numbers<[1], [0], [0], [1], [0, 0, 1, 1], [], []>} : vector<4x128xbf16>, vector<128x128xbf16>, vector<4x128xf32> -> vector<4x128xf32>
    %c0_18 = arith.constant 0 : index
    %c0_19 = arith.constant 0 : index
    %34 = vector.load %arg7[%c0_18, %c0_19] : memref<1x128xf32, #tpu.memory_space<vmem>>, vector<1x128xf32>
    %35 = vector.broadcast %34 : vector<1x128xf32> to vector<4x128xf32>
    %36 = arith.addf %33, %35 : vector<4x128xf32>
    %c0_20 = arith.constant 0 : index
    %c0_21 = arith.constant 0 : index
    %c0_22 = arith.constant 0 : index
    %37 = vector.load %arg8[%c0_20, %c0_21, %c0_22] : memref<1x4x128xbf16, #tpu.memory_space<vmem>>, vector<1x4x128xbf16>
    %38 = vector.shape_cast %37 : vector<1x4x128xbf16> to vector<4x128xbf16>
    %39 = arith.extf %38 : vector<4x128xbf16> to vector<4x128xf32>
    %40 = arith.addf %36, %39 : vector<4x128xf32>
    %41 = arith.truncf %40 : vector<4x128xf32> to vector<4x128xbf16>
    %c0_23 = arith.constant 0 : index
    %c0_24 = arith.constant 0 : index
    %c0_25 = arith.constant 0 : index
    %42 = vector.load %arg9[%c0_23, %c0_24, %c0_25] : memref<1x4x128xbf16, #tpu.memory_space<vmem>>, vector<1x4x128xbf16>
    %43 = vector.shape_cast %42 : vector<1x4x128xbf16> to vector<4x128xbf16>
    %44 = vector.shape_cast %41 : vector<4x128xbf16> to vector<1x4x128xbf16>
    tpu.vector_store %arg9[%c0_23, %c0_24, %c0_25], %44 {strides = array<i32>} : memref<1x4x128xbf16, #tpu.memory_space<vmem>>, vector<1x4x128xbf16>,
    return
  }
  func.func @transform_0(%arg0: i32) -> (i32, i32, i32) {
    %c0_i32 = arith.constant 0 : i32
    %c0_i32_0 = arith.constant 0 : i32
    %c0_i32_1 = arith.constant 0 : i32
    return %arg0, %c0_i32, %c0_i32_0 : i32, i32, i32
  }
  func.func @transform_1(%arg0: i32) -> (i32, i32) {
    %c0_i32 = arith.constant 0 : i32
    %c0_i32_0 = arith.constant 0 : i32
    %c0_i32_1 = arith.constant 0 : i32
    return %c0_i32, %c0_i32_0 : i32, i32
  }
  func.func @transform_2(%arg0: i32) -> (i32, i32) {
    %c0_i32 = arith.constant 0 : i32
    %c0_i32_0 = arith.constant 0 : i32
    %c0_i32_1 = arith.constant 0 : i32
    return %c0_i32, %c0_i32_0 : i32, i32
  }
  func.func @transform_3(%arg0: i32) -> (i32, i32) {
    %c0_i32 = arith.constant 0 : i32
    %c0_i32_0 = arith.constant 0 : i32
    %c0_i32_1 = arith.constant 0 : i32
    return %c0_i32, %c0_i32_0 : i32, i32
  }
  func.func @transform_4(%arg0: i32) -> (i32, i32) {
    %c0_i32 = arith.constant 0 : i32
    %c0_i32_0 = arith.constant 0 : i32
    %c0_i32_1 = arith.constant 0 : i32
    return %c0_i32, %c0_i32_0 : i32, i32
  }
  func.func @transform_5(%arg0: i32) -> (i32, i32) {
    %c0_i32 = arith.constant 0 : i32
    %c0_i32_0 = arith.constant 0 : i32
    %c0_i32_1 = arith.constant 0 : i32
    return %c0_i32, %c0_i32_0 : i32, i32
  }
  func.func @transform_6(%arg0: i32) -> (i32, i32) {
    %c0_i32 = arith.constant 0 : i32
    %c0_i32_0 = arith.constant 0 : i32
    %c0_i32_1 = arith.constant 0 : i32
    return %c0_i32, %c0_i32_0 : i32, i32
  }
  func.func @transform_7(%arg0: i32) -> (i32, i32, i32) {
    %c0_i32 = arith.constant 0 : i32
    %c0_i32_0 = arith.constant 0 : i32
    %c0_i32_1 = arith.constant 0 : i32
    return %arg0, %c0_i32, %c0_i32_0 : i32, i32, i32
  }
  func.func @transform_8(%arg0: i32) -> (i32, i32, i32) {
    %c0_i32 = arith.constant 0 : i32
    %c0_i32_0 = arith.constant 0 : i32
    %c0_i32_1 = arith.constant 0 : i32
    return %arg0, %c0_i32, %c0_i32_0 : i32, i32, i32
  }
}

module attributes {stable_mosaic.version = 11 : i64} {
  func.func @_dw_s1_kernel(%arg0: i32, %arg1: i32, %arg2: memref<1x4x4x128xbf16, #tpu.memory_space<vmem>>, %arg3: memref<9x1x128xf32, #tpu.memory_space<vmem>>, %arg4: memref<1x128xf32, #tpu.memory_space<vmem>>, %arg5: memref<1x2x2x128xbf16, #tpu.memory_space<vmem>>) attributes {dimension_semantics = [#tpu.dimension_semantics<parallel>, #tpu.dimension_semantics<parallel>], iteration_bounds = array<i64: 2, 1>, scalar_prefetch = 0 : i64, scratch_operands = 0 : i64, tpu.core_type = #tpu.core_type<tc>, window_params = [{transform_indices = @transform_0, window_bounds = array<i64: 1, 4, 4, 128>}, {transform_indices = @transform_1, window_bounds = array<i64: 9, 1, 128>}, {transform_indices = @transform_2, window_bounds = array<i64: 1, 128>}, {transform_indices = @transform_3, window_bounds = array<i64: 1, 2, 2, 128>}]} {
    %c0 = arith.constant 0 : index
    %c0_0 = arith.constant 0 : index
    %c0_1 = arith.constant 0 : index
    %c0_2 = arith.constant 0 : index
    %0 = vector.load %arg2[%c0, %c0_0, %c0_1, %c0_2] : memref<1x4x4x128xbf16, #tpu.memory_space<vmem>>, vector<1x2x2x128xbf16>
    %1 = vector.shape_cast %0 : vector<1x2x2x128xbf16> to vector<2x2x128xbf16>
    %2 = arith.extf %1 : vector<2x2x128xbf16> to vector<2x2x128xf32>
    %c0_3 = arith.constant 0 : index
    %c0_4 = arith.constant 0 : index
    %c0_5 = arith.constant 0 : index
    %3 = vector.load %arg3[%c0_3, %c0_4, %c0_5] : memref<9x1x128xf32, #tpu.memory_space<vmem>>, vector<1x1x128xf32>
    %4 = vector.shape_cast %3 : vector<1x1x128xf32> to vector<1x128xf32>
    %5 = vector.shape_cast %4 : vector<1x128xf32> to vector<1x1x128xf32>
    %6 = vector.broadcast %5 : vector<1x1x128xf32> to vector<2x2x128xf32>
    %7 = arith.mulf %2, %6 : vector<2x2x128xf32>
    %c0_6 = arith.constant 0 : index
    %c0_7 = arith.constant 0 : index
    %c1 = arith.constant 1 : index
    %c0_8 = arith.constant 0 : index
    %8 = vector.load %arg2[%c0_6, %c0_7, %c1, %c0_8] : memref<1x4x4x128xbf16, #tpu.memory_space<vmem>>, vector<1x2x2x128xbf16>
    %9 = vector.shape_cast %8 : vector<1x2x2x128xbf16> to vector<2x2x128xbf16>
    %10 = arith.extf %9 : vector<2x2x128xbf16> to vector<2x2x128xf32>
    %c1_9 = arith.constant 1 : index
    %c0_10 = arith.constant 0 : index
    %c0_11 = arith.constant 0 : index
    %11 = vector.load %arg3[%c1_9, %c0_10, %c0_11] : memref<9x1x128xf32, #tpu.memory_space<vmem>>, vector<1x1x128xf32>
    %12 = vector.shape_cast %11 : vector<1x1x128xf32> to vector<1x128xf32>
    %13 = vector.shape_cast %12 : vector<1x128xf32> to vector<1x1x128xf32>
    %14 = vector.broadcast %13 : vector<1x1x128xf32> to vector<2x2x128xf32>
    %15 = arith.mulf %10, %14 : vector<2x2x128xf32>
    %16 = arith.addf %7, %15 : vector<2x2x128xf32>
    %c0_12 = arith.constant 0 : index
    %c0_13 = arith.constant 0 : index
    %c2 = arith.constant 2 : index
    %c0_14 = arith.constant 0 : index
    %17 = vector.load %arg2[%c0_12, %c0_13, %c2, %c0_14] : memref<1x4x4x128xbf16, #tpu.memory_space<vmem>>, vector<1x2x2x128xbf16>
    %18 = vector.shape_cast %17 : vector<1x2x2x128xbf16> to vector<2x2x128xbf16>
    %19 = arith.extf %18 : vector<2x2x128xbf16> to vector<2x2x128xf32>
    %c2_15 = arith.constant 2 : index
    %c0_16 = arith.constant 0 : index
    %c0_17 = arith.constant 0 : index
    %20 = vector.load %arg3[%c2_15, %c0_16, %c0_17] : memref<9x1x128xf32, #tpu.memory_space<vmem>>, vector<1x1x128xf32>
    %21 = vector.shape_cast %20 : vector<1x1x128xf32> to vector<1x128xf32>
    %22 = vector.shape_cast %21 : vector<1x128xf32> to vector<1x1x128xf32>
    %23 = vector.broadcast %22 : vector<1x1x128xf32> to vector<2x2x128xf32>
    %24 = arith.mulf %19, %23 : vector<2x2x128xf32>
    %25 = arith.addf %16, %24 : vector<2x2x128xf32>
    %c0_18 = arith.constant 0 : index
    %c1_19 = arith.constant 1 : index
    %c0_20 = arith.constant 0 : index
    %c0_21 = arith.constant 0 : index
    %26 = vector.load %arg2[%c0_18, %c1_19, %c0_20, %c0_21] : memref<1x4x4x128xbf16, #tpu.memory_space<vmem>>, vector<1x2x2x128xbf16>
    %27 = vector.shape_cast %26 : vector<1x2x2x128xbf16> to vector<2x2x128xbf16>
    %28 = arith.extf %27 : vector<2x2x128xbf16> to vector<2x2x128xf32>
    %c3 = arith.constant 3 : index
    %c0_22 = arith.constant 0 : index
    %c0_23 = arith.constant 0 : index
    %29 = vector.load %arg3[%c3, %c0_22, %c0_23] : memref<9x1x128xf32, #tpu.memory_space<vmem>>, vector<1x1x128xf32>
    %30 = vector.shape_cast %29 : vector<1x1x128xf32> to vector<1x128xf32>
    %31 = vector.shape_cast %30 : vector<1x128xf32> to vector<1x1x128xf32>
    %32 = vector.broadcast %31 : vector<1x1x128xf32> to vector<2x2x128xf32>
    %33 = arith.mulf %28, %32 : vector<2x2x128xf32>
    %34 = arith.addf %25, %33 : vector<2x2x128xf32>
    %c0_24 = arith.constant 0 : index
    %c1_25 = arith.constant 1 : index
    %c1_26 = arith.constant 1 : index
    %c0_27 = arith.constant 0 : index
    %35 = vector.load %arg2[%c0_24, %c1_25, %c1_26, %c0_27] : memref<1x4x4x128xbf16, #tpu.memory_space<vmem>>, vector<1x2x2x128xbf16>
    %36 = vector.shape_cast %35 : vector<1x2x2x128xbf16> to vector<2x2x128xbf16>
    %37 = arith.extf %36 : vector<2x2x128xbf16> to vector<2x2x128xf32>
    %c4 = arith.constant 4 : index
    %c0_28 = arith.constant 0 : index
    %c0_29 = arith.constant 0 : index
    %38 = vector.load %arg3[%c4, %c0_28, %c0_29] : memref<9x1x128xf32, #tpu.memory_space<vmem>>, vector<1x1x128xf32>
    %39 = vector.shape_cast %38 : vector<1x1x128xf32> to vector<1x128xf32>
    %40 = vector.shape_cast %39 : vector<1x128xf32> to vector<1x1x128xf32>
    %41 = vector.broadcast %40 : vector<1x1x128xf32> to vector<2x2x128xf32>
    %42 = arith.mulf %37, %41 : vector<2x2x128xf32>
    %43 = arith.addf %34, %42 : vector<2x2x128xf32>
    %c0_30 = arith.constant 0 : index
    %c1_31 = arith.constant 1 : index
    %c2_32 = arith.constant 2 : index
    %c0_33 = arith.constant 0 : index
    %44 = vector.load %arg2[%c0_30, %c1_31, %c2_32, %c0_33] : memref<1x4x4x128xbf16, #tpu.memory_space<vmem>>, vector<1x2x2x128xbf16>
    %45 = vector.shape_cast %44 : vector<1x2x2x128xbf16> to vector<2x2x128xbf16>
    %46 = arith.extf %45 : vector<2x2x128xbf16> to vector<2x2x128xf32>
    %c5 = arith.constant 5 : index
    %c0_34 = arith.constant 0 : index
    %c0_35 = arith.constant 0 : index
    %47 = vector.load %arg3[%c5, %c0_34, %c0_35] : memref<9x1x128xf32, #tpu.memory_space<vmem>>, vector<1x1x128xf32>
    %48 = vector.shape_cast %47 : vector<1x1x128xf32> to vector<1x128xf32>
    %49 = vector.shape_cast %48 : vector<1x128xf32> to vector<1x1x128xf32>
    %50 = vector.broadcast %49 : vector<1x1x128xf32> to vector<2x2x128xf32>
    %51 = arith.mulf %46, %50 : vector<2x2x128xf32>
    %52 = arith.addf %43, %51 : vector<2x2x128xf32>
    %c0_36 = arith.constant 0 : index
    %c2_37 = arith.constant 2 : index
    %c0_38 = arith.constant 0 : index
    %c0_39 = arith.constant 0 : index
    %53 = vector.load %arg2[%c0_36, %c2_37, %c0_38, %c0_39] : memref<1x4x4x128xbf16, #tpu.memory_space<vmem>>, vector<1x2x2x128xbf16>
    %54 = vector.shape_cast %53 : vector<1x2x2x128xbf16> to vector<2x2x128xbf16>
    %55 = arith.extf %54 : vector<2x2x128xbf16> to vector<2x2x128xf32>
    %c6 = arith.constant 6 : index
    %c0_40 = arith.constant 0 : index
    %c0_41 = arith.constant 0 : index
    %56 = vector.load %arg3[%c6, %c0_40, %c0_41] : memref<9x1x128xf32, #tpu.memory_space<vmem>>, vector<1x1x128xf32>
    %57 = vector.shape_cast %56 : vector<1x1x128xf32> to vector<1x128xf32>
    %58 = vector.shape_cast %57 : vector<1x128xf32> to vector<1x1x128xf32>
    %59 = vector.broadcast %58 : vector<1x1x128xf32> to vector<2x2x128xf32>
    %60 = arith.mulf %55, %59 : vector<2x2x128xf32>
    %61 = arith.addf %52, %60 : vector<2x2x128xf32>
    %c0_42 = arith.constant 0 : index
    %c2_43 = arith.constant 2 : index
    %c1_44 = arith.constant 1 : index
    %c0_45 = arith.constant 0 : index
    %62 = vector.load %arg2[%c0_42, %c2_43, %c1_44, %c0_45] : memref<1x4x4x128xbf16, #tpu.memory_space<vmem>>, vector<1x2x2x128xbf16>
    %63 = vector.shape_cast %62 : vector<1x2x2x128xbf16> to vector<2x2x128xbf16>
    %64 = arith.extf %63 : vector<2x2x128xbf16> to vector<2x2x128xf32>
    %c7 = arith.constant 7 : index
    %c0_46 = arith.constant 0 : index
    %c0_47 = arith.constant 0 : index
    %65 = vector.load %arg3[%c7, %c0_46, %c0_47] : memref<9x1x128xf32, #tpu.memory_space<vmem>>, vector<1x1x128xf32>
    %66 = vector.shape_cast %65 : vector<1x1x128xf32> to vector<1x128xf32>
    %67 = vector.shape_cast %66 : vector<1x128xf32> to vector<1x1x128xf32>
    %68 = vector.broadcast %67 : vector<1x1x128xf32> to vector<2x2x128xf32>
    %69 = arith.mulf %64, %68 : vector<2x2x128xf32>
    %70 = arith.addf %61, %69 : vector<2x2x128xf32>
    %c0_48 = arith.constant 0 : index
    %c2_49 = arith.constant 2 : index
    %c2_50 = arith.constant 2 : index
    %c0_51 = arith.constant 0 : index
    %71 = vector.load %arg2[%c0_48, %c2_49, %c2_50, %c0_51] : memref<1x4x4x128xbf16, #tpu.memory_space<vmem>>, vector<1x2x2x128xbf16>
    %72 = vector.shape_cast %71 : vector<1x2x2x128xbf16> to vector<2x2x128xbf16>
    %73 = arith.extf %72 : vector<2x2x128xbf16> to vector<2x2x128xf32>
    %c8 = arith.constant 8 : index
    %c0_52 = arith.constant 0 : index
    %c0_53 = arith.constant 0 : index
    %74 = vector.load %arg3[%c8, %c0_52, %c0_53] : memref<9x1x128xf32, #tpu.memory_space<vmem>>, vector<1x1x128xf32>
    %75 = vector.shape_cast %74 : vector<1x1x128xf32> to vector<1x128xf32>
    %76 = vector.shape_cast %75 : vector<1x128xf32> to vector<1x1x128xf32>
    %77 = vector.broadcast %76 : vector<1x1x128xf32> to vector<2x2x128xf32>
    %78 = arith.mulf %73, %77 : vector<2x2x128xf32>
    %79 = arith.addf %70, %78 : vector<2x2x128xf32>
    %c0_54 = arith.constant 0 : index
    %c0_55 = arith.constant 0 : index
    %80 = vector.load %arg4[%c0_54, %c0_55] : memref<1x128xf32, #tpu.memory_space<vmem>>, vector<1x128xf32>
    %81 = vector.shape_cast %80 : vector<1x128xf32> to vector<1x1x128xf32>
    %82 = vector.broadcast %81 : vector<1x1x128xf32> to vector<2x2x128xf32>
    %83 = arith.addf %79, %82 : vector<2x2x128xf32>
    %84 = arith.negf %83 : vector<2x2x128xf32>
    %85 = math.exp %84 : vector<2x2x128xf32>
    %cst = arith.constant 1.000000e+00 : f32
    %86 = vector.broadcast %cst : f32 to vector<2x2x128xf32>
    %87 = arith.addf %86, %85 : vector<2x2x128xf32>
    %88 = arith.divf %86, %87 : vector<2x2x128xf32>
    %89 = arith.mulf %83, %88 : vector<2x2x128xf32>
    %90 = arith.truncf %89 : vector<2x2x128xf32> to vector<2x2x128xbf16>
    %c0_56 = arith.constant 0 : index
    %c0_57 = arith.constant 0 : index
    %c0_58 = arith.constant 0 : index
    %c0_59 = arith.constant 0 : index
    %91 = vector.load %arg5[%c0_56, %c0_57, %c0_58, %c0_59] : memref<1x2x2x128xbf16, #tpu.memory_space<vmem>>, vector<1x2x2x128xbf16>
    %92 = vector.shape_cast %91 : vector<1x2x2x128xbf16> to vector<2x2x128xbf16>
    %93 = vector.shape_cast %90 : vector<2x2x128xbf16> to vector<1x2x2x128xbf16>
    tpu.vector_store %arg5[%c0_56, %c0_57, %c0_58, %c0_59], %93 {strides = array<i32>} : memref<1x2x2x128xbf16, #tpu.memory_space<vmem>>, vector<1x2x2x128xbf16>,
    return
  }
  func.func @transform_0(%arg0: i32, %arg1: i32) -> (i32, i32, i32, i32) {
    %c0_i32 = arith.constant 0 : i32
    %c0_i32_0 = arith.constant 0 : i32
    %c0_i32_1 = arith.constant 0 : i32
    return %arg0, %c0_i32, %c0_i32_0, %arg1 : i32, i32, i32, i32
  }
  func.func @transform_1(%arg0: i32, %arg1: i32) -> (i32, i32, i32) {
    %c0_i32 = arith.constant 0 : i32
    %c0_i32_0 = arith.constant 0 : i32
    %c0_i32_1 = arith.constant 0 : i32
    return %c0_i32, %c0_i32_0, %arg1 : i32, i32, i32
  }
  func.func @transform_2(%arg0: i32, %arg1: i32) -> (i32, i32) {
    %c0_i32 = arith.constant 0 : i32
    %c0_i32_0 = arith.constant 0 : i32
    return %c0_i32, %arg1 : i32, i32
  }
  func.func @transform_3(%arg0: i32, %arg1: i32) -> (i32, i32, i32, i32) {
    %c0_i32 = arith.constant 0 : i32
    %c0_i32_0 = arith.constant 0 : i32
    %c0_i32_1 = arith.constant 0 : i32
    return %arg0, %c0_i32, %c0_i32_0, %arg1 : i32, i32, i32, i32
  }
}

module attributes {stable_mosaic.version = 11 : i64} {
  func.func @_pool_fc_kernel(%arg0: memref<2x4x128xbf16, #tpu.memory_space<vmem>>, %arg1: memref<128x128xf32, #tpu.memory_space<vmem>>, %arg2: memref<1x128xf32, #tpu.memory_space<vmem>>, %arg3: memref<2x128xf32, #tpu.memory_space<vmem>>) attributes {dimension_semantics = [], scalar_prefetch = 0 : i64, scratch_operands = 0 : i64, tpu.core_type = #tpu.core_type<tc>} {
    %c0 = arith.constant 0 : index
    %c0_0 = arith.constant 0 : index
    %c0_1 = arith.constant 0 : index
    %0 = vector.load %arg0[%c0, %c0_0, %c0_1] : memref<2x4x128xbf16, #tpu.memory_space<vmem>>, vector<2x4x128xbf16>
    %1 = arith.extf %0 : vector<2x4x128xbf16> to vector<2x4x128xf32>
    %cst = arith.constant dense<0.000000e+00> : vector<2x128xf32>
    %2 = vector.multi_reduction <add>, %1, %cst [1] : vector<2x4x128xf32> to vector<2x128xf32>
    %cst_2 = arith.constant 4.000000e+00 : f32
    %3 = vector.broadcast %cst_2 : f32 to vector<2x128xf32>
    %4 = arith.divf %2, %3 : vector<2x128xf32>
    %c0_3 = arith.constant 0 : index
    %c0_4 = arith.constant 0 : index
    %5 = vector.load %arg1[%c0_3, %c0_4] : memref<128x128xf32, #tpu.memory_space<vmem>>, vector<128x128xf32>
    %cst_5 = arith.constant dense<0.000000e+00> : vector<2x128xf32>
    %6 = tpu.matmul %4, %5, %cst_5 {dimension_numbers = #tpu.dot_dimension_numbers<[1], [0], [0], [1], [0, 0, 1, 1], [], []>} : vector<2x128xf32>, vector<128x128xf32>, vector<2x128xf32> -> vector<2x128xf32>
    %c0_6 = arith.constant 0 : index
    %c0_7 = arith.constant 0 : index
    %7 = vector.load %arg2[%c0_6, %c0_7] : memref<1x128xf32, #tpu.memory_space<vmem>>, vector<1x128xf32>
    %8 = vector.broadcast %7 : vector<1x128xf32> to vector<2x128xf32>
    %9 = arith.addf %6, %8 : vector<2x128xf32>
    %c0_8 = arith.constant 0 : index
    %c0_9 = arith.constant 0 : index
    %10 = vector.load %arg3[%c0_8, %c0_9] : memref<2x128xf32, #tpu.memory_space<vmem>>, vector<2x128xf32>
    tpu.vector_store %arg3[%c0_8, %c0_9], %9 {strides = array<i32>} : memref<2x128xf32, #tpu.memory_space<vmem>>, vector<2x128xf32>,
    return
  }
}

</mosaic_0001>

<bundles_post_ra>
// kernel: _lambda_.12
= control target key start
LH: loop header
LB: loop body
LE: loop exit
PB: predicated region body
PF: predicated region fallthrough
CT: control target
= control target key end

     0   :  { %vm118_vm0 = vcmask 1044480   ;;  %vm119_vm1 = vcmask 1045504   ;;  %vm93_vm2 = vcmask 220160   ;;  %v641_v1 = vmov 65535   ;;  %s809_s1 = inlined_call_operand.vmem [shape: bf16[27,128], index: 1, kind: input, shape index: {}]   ;;  %s810_s0 = inlined_call_operand.vmem [shape: bf16[128,27], index: 0, kind: input, shape index: {}]   ;;  %s811_s2 = inlined_call_operand.vmem [shape: f32[1,128], index: 2, kind: input, shape index: {}]   ;;  %s812_s3 = inlined_call_operand.vmem [shape: bf16[128,128], index: 3, kind: output, shape index: {}]  }
   0x1   :  { %v567_v0 = vld [vmem:[%s809_s1] sm:$0xff]   ;;  %v120_v2 = vsel %vm118_vm0, 4294967295, %v641_v1  ;;  %v568_v3 = vld [vmem:[%s809_s1 + $0x8] sm:$0x3f]   ;;  %v573_v10 = vld [vmem:[%s810_s0 + $0x10] sm:$0xff]  }
   0x2   :  { %542 = vmatprep.subr.bf16.mxu0 %v567_v0  ;;  %562 = vmatprep.subr.bf16.mxu1 %v567_v0  ;;  %v121_v4 = vsel %vm119_vm1, %v120_v2, 0  ;;  %v569_v5 = vld [vmem:[%s810_s0] sm:$0xff]   ;;  %v571_v8 = vld [vmem:[%s810_s0 + $0x8] sm:$0xff]   ;;  %v574_v11 = vld [vmem:[%s810_s0 + $0x30] sm:$0xff]  }
   0x3   :  { %543 = vmatpush3.bf16.msra.mxu0 %v567_v0  ;;  %564 = vmatpush3.bf16.msra.mxu1 %v567_v0  ;;  %v123_v6 = vand.u32 %v568_v3, %v121_v4  ;;  %v570_v7 = vld [vmem:[%s810_s0 + $0x20] sm:$0xff]   ;;  %v572_v9 = vld [vmem:[%s810_s0 + $0x28] sm:$0xff]   ;;  %v575_v12 = vld [vmem:[%s810_s0 + $0x18] sm:$0xff]  }
   0x4   :  { %546 = vmatprep.mubr.msk.bf16.mxu0 %vm93_vm2, %v569_v5  ;;  %554 = vmatprep.mubr.msk.bf16.mxu1 %vm93_vm2, %v570_v7  ;;  %v576_v13 = vld [vmem:[%s810_s0 + $0x38] sm:$0xff]   ;;  %v703_v14 = vld [vmem:[%s811_s2] ss:$0 sm:$0xff] }
   0x5   :  { %544 = vmatprep.subr.bf16.mxu0 %v123_v6  ;;  %563 = vmatprep.subr.bf16.mxu1 %v123_v6 }
   0x7   :  { %545 = vmatpush3.bf16.msra.mxu0 %v123_v6  ;;  %565 = vmatpush3.bf16.msra.mxu1 %v123_v6 }
   0xa   :  { %547 = vmatmul.mubr.msk.bf16.vlgmr.msra.gmra.mrb[0].mxu0 %vm93_vm2, %v571_v8  ;;  %555 = vmatmul.mubr.msk.bf16.vlgmr.msra.gmra.mrb[0].mxu1 %vm93_vm2, %v572_v9 }
   0xb   :  { %550 = vmatprep.mubr.msk.bf16.mxu0 %vm93_vm2, %v573_v10  ;;  %558 = vmatprep.mubr.msk.bf16.mxu1 %vm93_vm2, %v574_v11 }
  0x12   :  { %551 = vmatmul.mubr.msk.bf16.gmra.mrb[4].mxu0 %vm93_vm2, %v575_v12  ;;  %559 = vmatmul.mubr.msk.bf16.gmra.mrb[4].mxu1 %vm93_vm2, %v576_v13 }
  0xdd   :  { %v548_v15 = vpop.f32.mrb[0].mxu0  ;;  %v556_v16 = vpop.f32.mrb[0].mxu1 }
  0xde   :  { %v706_v17 = vadd.f32 %v548_v15, %v703_v14  ;;  %v709_v18 = vadd.f32 %v556_v16, %v703_v14  ;;  %v159_v19 = vpop.f32.mrb[1].mxu0  ;;  %v191_v20 = vpop.f32.mrb[1].mxu1 }
  0xdf   :  { %v712_v21 = vadd.f32 %v703_v14, %v159_v19  ;;  %v715_v22 = vadd.f32 %v703_v14, %v191_v20  ;;  %v549_v23 = vpop.f32.mrb[2].mxu0  ;;  %v557_v24 = vpop.f32.mrb[2].mxu1 }
  0xe0   :  { %v439_v25 = vmul.f32 -1.442695, %v706_v17  ;;  %v447_v26 = vmul.f32 -1.442695, %v709_v18  ;;  %v720_v27 = vadd.f32 %v549_v23, %v703_v14  ;;  %v723_v28 = vadd.f32 %v557_v24, %v703_v14  ;;  %v162_v29 = vpop.f32.mrb[3].mxu0  ;;  %v194_v30 = vpop.f32.mrb[3].mxu1 }
  0xe1   :  { %v437_v31 = vmul.f32 -1.442695, %v712_v21  ;;  %v445_v32 = vmul.f32 -1.442695, %v715_v22  ;;  %v728_v33 = vadd.f32 %v703_v14, %v162_v29  ;;  %v731_v34 = vadd.f32 %v703_v14, %v194_v30 }
  0xe2   :  { %577 = vpow2.f32 %v439_v25  ;;  %v440_v35 = vmul.f32 -1.442695, %v720_v27  ;;  %v448_v36 = vmul.f32 -1.442695, %v723_v28 }
  0xe3   :  { %579 = vpow2.f32 %v447_v26  ;;  %v438_v37 = vmul.f32 -1.442695, %v728_v33  ;;  %v446_v38 = vmul.f32 -1.442695, %v731_v34 }
  0xe4   :  { %581 = vpow2.f32 %v437_v31 }
  0xe5   :  { %583 = vpow2.f32 %v445_v32  ;;  %v552_v39 = vpop.f32.mrb[4].mxu0  ;;  %v560_v40 = vpop.f32.mrb[4].mxu1 }
  0xe6   :  { %585 = vpow2.f32 %v440_v35  ;;  %v738_v41 = vadd.f32 %v552_v39, %v703_v14  ;;  %v741_v42 = vadd.f32 %v560_v40, %v703_v14  ;;  %v175_v43 = vpop.f32.mrb[5].mxu0  ;;  %v207_v44 = vpop.f32.mrb[5].mxu1 }
  0xe7   :  { %587 = vpow2.f32 %v448_v36  ;;  %v744_v45 = vadd.f32 %v703_v14, %v175_v43  ;;  %v553_v46 = vpop.f32.mrb[6].mxu0  ;;  %v561_v47 = vpop.f32.mrb[6].mxu1  ;;  %v754_v62 = vadd.f32 %v703_v14, %v207_v44 }
  0xe8   :  { %589 = vpow2.f32 %v438_v37  ;;  %v443_v48 = vmul.f32 -1.442695, %v738_v41  ;;  %v451_v49 = vmul.f32 -1.442695, %v741_v42  ;;  %v749_v50 = vadd.f32 %v553_v46, %v703_v14  ;;  %v178_v51 = vpop.f32.mrb[7].mxu0  ;;  %v210_v52 = vpop.f32.mrb[7].mxu1 }
  0xe9   :  { %591 = vpow2.f32 %v446_v38  ;;  %v441_v53 = vmul.f32 -1.442695, %v744_v45  ;;  %v449_v7 = vmul.f32 -1.442695, %v754_v62  ;;  %v758_v10 = vadd.f32 %v561_v47, %v703_v14 }
  0xea   :  { %593 = vpow2.f32 %v443_v48  ;;  %v444_v54 = vmul.f32 -1.442695, %v749_v50  ;;  %v761_v12 = vadd.f32 %v703_v14, %v178_v51  ;;  %v764_v15 = vadd.f32 %v703_v14, %v210_v52 }
  0xeb   :  { %595 = vpow2.f32 %v451_v49  ;;  %v452_v20 = vmul.f32 -1.442695, %v758_v10 }
  0xec   :  { %v578_v55 = vpop.eup %577  ;;  %597 = vpow2.f32 %v441_v53  ;;  %v442_v25 = vmul.f32 -1.442695, %v761_v12  ;;  %v450_v29 = vmul.f32 -1.442695, %v764_v15 }
  0xed   :  { %v580_v56 = vpop.eup %579  ;;  %v272_v57 = vadd.f32 1.0, %v578_v55  ;;  %599 = vpow2.f32 %v444_v54 }
  0xee   :  { %v582_v58 = vpop.eup %581  ;;  %v280_v59 = vadd.f32 1.0, %v580_v56 }
  0xef   :  { %v584_v60 = vpop.eup %583  ;;  %601 = vrcp.f32 %v272_v57  ;;  %v270_v61 = vadd.f32 1.0, %v582_v58 }
  0xf0   :  { %v586_v63 = vpop.eup %585  ;;  %603 = vrcp.f32 %v280_v59  ;;  %v278_v0 = vadd.f32 1.0, %v584_v60 }
  0xf1   :  { %v588_v1 = vpop.eup %587  ;;  %605 = vrcp.f32 %v270_v61  ;;  %v273_v2 = vadd.f32 1.0, %v586_v63 }
  0xf2   :  { %v590_v3 = vpop.eup %589  ;;  %607 = vrcp.f32 %v278_v0  ;;  %v281_v4 = vadd.f32 1.0, %v588_v1 }
  0xf3   :  { %v592_v5 = vpop.eup %591  ;;  %609 = vrcp.f32 %v273_v2  ;;  %v271_v6 = vadd.f32 1.0, %v590_v3 }
  0xf4   :  { %v594_v8 = vpop.eup %593  ;;  %611 = vrcp.f32 %v281_v4  ;;  %v279_v9 = vadd.f32 1.0, %v592_v5 }
  0xf5   :  { %613 = vrcp.f32 %v271_v6  ;;  %v276_v11 = vadd.f32 1.0, %v594_v8  ;;  %v596_v13 = vpop.eup %595 }
  0xf6   :  { %615 = vrcp.f32 %v279_v9  ;;  %v598_v16 = vpop.eup %597 }
  0xf7   :  { %617 = vpow2.f32 %v449_v7  ;;  %v600_v19 = vpop.eup %599 }
  0xf8   :  { %619 = vrcp.f32 %v276_v11  ;;  %v277_v24 = vadd.f32 1.0, %v600_v19 }
  0xf9   :  { %v602_v23 = vpop.eup %601 }
  0xfa   :  { %v604_v26 = vpop.eup %603  ;;  %621 = vrcp.f32 %v277_v24  ;;  %v320_v35 = vmul.f32 %v602_v23, %v706_v17 }
  0xfb   :  { %v606_v30 = vpop.eup %605  ;;  %623 = vpow2.f32 %v452_v20  ;;  %v328_v38 = vmul.f32 %v604_v26, %v709_v18  ;;  %v284_v18 = vadd.f32 1.0, %v596_v13 }
  0xfc   :  { %v608_v31 = vpop.eup %607  ;;  %625 = vpow2.f32 %v442_v25  ;;  %v318_v43 = vmul.f32 %v606_v30, %v712_v21 }
  0xfd   :  { %v610_v32 = vpop.eup %609  ;;  %627 = vpow2.f32 %v450_v29  ;;  %v326_v48 = vmul.f32 %v608_v31, %v715_v22 }
  0xfe   :  { %v612_v14 = vpop.eup %611  ;;  %v321_v36 = vmul.f32 %v610_v32, %v720_v27  ;;  %629 = vrcp.f32 %v284_v18 }
  0xff   :  { %v614_v37 = vpop.eup %613  ;;  %v329_v39 = vmul.f32 %v612_v14, %v723_v28  ;;  %v274_v28 = vadd.f32 1.0, %v598_v16 }
 0x100   :  { %v616_v40 = vpop.eup %615  ;;  %v493_v44 = vpack.c.bf16 %v321_v36, %v320_v35  ;;  %v319_v46 = vmul.f32 %v614_v37, %v728_v33 }
 0x101   :  { %v618_v47 = vpop.eup %617  ;;  %v513_v49 = vpack.c.bf16 %v329_v39, %v328_v38  ;;  %v327_v17 = vmul.f32 %v616_v40, %v731_v34  ;;  %631 = vrcp.f32 %v274_v28 }
 0x102   :  { %525 = vst [vmem:[%s812_s3 + $0x8] sm:$0xff] %v493_v44   ;;  %v488_v27 = vpack.c.bf16 %v319_v46, %v318_v43  ;;  %v620_v51 = vpop.eup %619  ;;  %v282_v22 = vadd.f32 1.0, %v618_v47 }
 0x103   :  { %529 = vst [vmem:[%s812_s3 + $0x28] sm:$0xff] %v513_v49   ;;  %v508_v21 = vpack.c.bf16 %v327_v17, %v326_v48  ;;  %v324_v52 = vmul.f32 %v620_v51, %v738_v41 }
 0x104   :  { %489 = vst [vmem:[%s812_s3] sm:$0xff] %v488_v27   ;;  %v622_v33 = vpop.eup %621  ;;  %633 = vrcp.f32 %v282_v22 }
 0x105   :  { %528 = vst [vmem:[%s812_s3 + $0x20] sm:$0xff] %v508_v21   ;;  %v624_v34 = vpop.eup %623  ;;  %v325_v53 = vmul.f32 %v622_v33, %v749_v50 }
 0x106   :  { %v626_v54 = vpop.eup %625  ;;  %v285_v55 = vadd.f32 1.0, %v624_v34 }
 0x107   :  { %v628_v56 = vpop.eup %627  ;;  %v503_v57 = vpack.c.bf16 %v325_v53, %v324_v52  ;;  %v275_v58 = vadd.f32 1.0, %v626_v54 }
 0x108   :  { %635 = vrcp.f32 %v285_v55  ;;  %v283_v59 = vadd.f32 1.0, %v628_v56  ;;  %v630_v60 = vpop.eup %629 }
 0x109   :  { %527 = vst [vmem:[%s812_s3 + $0x18] sm:$0xff] %v503_v57   ;;  %637 = vrcp.f32 %v275_v58  ;;  %v332_v0 = vmul.f32 %v630_v60, %v741_v42 }
 0x10a   :  { %639 = vrcp.f32 %v283_v59 }
 0x10b   :  { %v632_v41 = vpop.eup %631 }
 0x10c   :  { %v322_v3 = vmul.f32 %v632_v41, %v744_v45 }
 0x10e   :  { %v634_v61 = vpop.eup %633 }
 0x10f   :  { %v330_v5 = vmul.f32 %v634_v61, %v754_v62 }
 0x112   :  { %v636_v63 = vpop.eup %635 }
 0x113   :  { %v638_v50 = vpop.eup %637  ;;  %v333_v1 = vmul.f32 %v636_v63, %v758_v10 }
 0x114   :  { %v640_v2 = vpop.eup %639  ;;  %v323_v4 = vmul.f32 %v638_v50, %v761_v12 }
 0x115   :  { %v523_v6 = vpack.c.bf16 %v333_v1, %v332_v0  ;;  %v331_v7 = vmul.f32 %v640_v2, %v764_v15 }
 0x116   :  { %v498_v8 = vpack.c.bf16 %v323_v4, %v322_v3 }
 0x117   :  { %531 = vst [vmem:[%s812_s3 + $0x38] sm:$0xff] %v523_v6   ;;  %v518_v9 = vpack.c.bf16 %v331_v7, %v330_v5 }
 0x118   :  { %526 = vst [vmem:[%s812_s3 + $0x10] sm:$0xff] %v498_v8  }
 0x119   :  { %530 = vst [vmem:[%s812_s3 + $0x30] sm:$0xff] %v518_v9  }

// kernel: _lambda_.13
= control target key start
LH: loop header
LB: loop body
LE: loop exit
PB: predicated region body
PF: predicated region fallthrough
CT: control target
= control target key end

     0   :  { %s3373_s15 = smov 0   ;;  %s3375_s16 = smov 0   ;;  %s4000_s0 = inlined_call_operand.vmem [shape: bf16[2,10,10,128], index: 0, kind: input, shape index: {}]   ;;  %s4001_s1 = inlined_call_operand.vmem [shape: bf16[1152,128], index: 1, kind: input, shape index: {}]   ;;  %s4002_s2 = inlined_call_operand.vmem [shape: f32[1,128], index: 2, kind: input, shape index: {}]   ;;  %s4003_s3 = inlined_call_operand.vmem [shape: bf16[2,64,128], index: 3, kind: input, shape index: {}]   ;;  %s4004_s4 = inlined_call_operand.vmem [shape: bf16[2,64,128], index: 4, kind: output, shape index: {}]  }
   0x1   :  { %s3377_s17 = smov 0  }
   0x2 LB: > { %s26_s18 = sadd.s32 1, %s3342_s16  ;;  %p2506_p0 = scmp.ge.s32.totalorder %s3346_s17, 1  ;;  %s3346_s17 = sphi %s3377_s17, %s14_s17   ;;  %s3342_s16 = sphi %s3375_s16, %s4010_s16   ;;  %s3338_s15 = sphi %s3373_s15, %s4009_s15  }
   0x3   : > { %p28_p1 = scmp.ge.s32.totalorder %s26_s18, 2  ;;  %p208_p2 = scmp.lt.s32.totalorder %s3346_s17, 3 }
   0x5   : > { %s4012_s18 = smov (%p28_p1, %s26_s18), 0  ;;  %p209_p3 = pnand %p2506_p0, %p208_p2 }
   0x6   : > { %v3208_v0 = vld [vmem:[%s4001_s1 + $0x40] sm:$0xff] (!%p209_p3)   ;;  %p252_p4 = scmp.lt.s32.totalorder (!%p209_p3), %s3338_s15, 1  ;;  %v3210_v2 = vld [vmem:[%s4001_s1 + $0x48] sm:$0xff] (!%p209_p3)   ;;  %v3212_v4 = vld [vmem:[%s4001_s1 + $0x50] sm:$0xff] (!%p209_p3)   ;;  %vm313_vm0 = vsmask.f32 (!%p209_p3), 3328 }
   0x7   : > { %212 = sbr.rel (%p209_p3) target bundleno = 426 (0x1aa), region = 36  ;;  %v3209_v1 = vld [vmem:[%s4001_s1 + $0x100] sm:$0xff] (!%p209_p3)   ;;  %2887 = vmatprep.subr.bf16.mxu1 (!%p209_p3), %v3208_v0  ;;  %v3211_v3 = vld [vmem:[%s4001_s1 + $0x108] sm:$0xff] (!%p209_p3)   ;;  %v3213_v5 = vld [vmem:[%s4001_s1 + $0x110] sm:$0xff] (!%p209_p3)   ;;  %vm314_vm1 = vsmask.f32 (!%p209_p3), 7440 }
   0x8   : > { %2983 = vmatprep.subr.bf16.mxu0 (!%p209_p3), %v3209_v1  ;;  %2888 = vmatpush3.bf16.msra.mxu1 (!%p209_p3), %v3208_v0  ;;  %v3214_v6 = vld [vmem:[%s4001_s1 + $0x58] sm:$0xff] (!%p209_p3)   ;;  %v3216_v8 = vld [vmem:[%s4001_s1 + $0x60] sm:$0xff] (!%p209_p3)   ;;  %v3218_v10 = vld [vmem:[%s4001_s1 + $0x68] sm:$0xff] (!%p209_p3)   ;;  %vm734_vm3 = vcmask (!%p209_p3), 1042432   ;;  %vm735_vm4 = vcmask (!%p209_p3), 1046532  }
   0x9   : > { %2984 = vmatpush3.bf16.msra.mxu0 (!%p209_p3), %v3209_v1  ;;  %2889 = vmatprep.subr.bf16.mxu1 (!%p209_p3), %v3210_v2  ;;  %v3215_v7 = vld [vmem:[%s4001_s1 + $0x118] sm:$0xff] (!%p209_p3)   ;;  %v3217_v9 = vld [vmem:[%s4001_s1 + $0x120] sm:$0xff] (!%p209_p3)   ;;  %v3219_v14 = vld [vmem:[%s4001_s1 + $0x128] sm:$0xff] (!%p209_p3)  }
   0xa   : > { %2985 = vmatprep.subr.bf16.mxu0 (!%p209_p3), %v3211_v3  ;;  %v3220_v22 = vld [vmem:[%s4001_s1 + $0x70] sm:$0xff] (!%p209_p3)   ;;  %v3222_v37 = vld [vmem:[%s4001_s1 + $0x78] sm:$0xff] (!%p209_p3)   ;;  %vm3472_vm2 = vmor (!%p209_p3), %vm313_vm0, %vm314_vm1 }
   0xb   : > { %v3221_v23 = vld [vmem:[%s4001_s1 + $0x130] sm:$0xff] (!%p209_p3)   ;;  %v3223_v47 = vld [vmem:[%s4001_s1 + $0x138] sm:$0xff] (!%p209_p3)   ;;  %v3224_v63 = vld [vmem:[%s4001_s1] sm:$0xff] (!%p209_p3)  }
   0xc   : > { %2890 = vmatpush3.bf16.msra.mxu1 (!%p209_p3), %v3210_v2  ;;  %v3504_v1 = vld [vmem:[%s4001_s1 + $0x140] sm:$0xff] (!%p209_p3)   ;;  %vm3646_vm5 = vmor (!%p209_p3), %vm734_vm3, %vm735_vm4 }
   0xd   : > { %2986 = vmatpush3.bf16.msra.mxu0 (!%p209_p3), %v3211_v3  ;;  %2891 = vmatprep.subr.bf16.mxu1 (!%p209_p3), %v3212_v4  ;;  %v3288_v38 = vld [vmem:[%s4001_s1 + $0x220] sm:$0xff] (!%p209_p3)  }
   0xe   : > { %s4014_s15 = smov (!%p252_p4, %s3338_s15), 1  ;;  %2987 = vmatprep.subr.bf16.mxu0 %v3213_v5 }
   0xf   : > { %s3183_s9 = smul.u32 80, %s4014_s15  ;;  %s2727_s19 = sshll.u32 %s4014_s15, 5 }
  0x10   : > { %2892 = vmatpush3.bf16.msra.mxu1 %v3212_v4  ;;  %s271_s23 = scalar_lea.vmem %s4003_s3, %s2727_s19  ;;  %s279_s26 = scalar_lea.vmem %s4004_s4, %s2727_s19 }
  0x11   : > { %2988 = vmatpush3.bf16.msra.mxu0 %v3213_v5  ;;  %2893 = vmatprep.subr.bf16.mxu1 %v3214_v6  ;;  %s3427_s20 = scalar_lea.vmem %s4000_s0, %s3183_s9 }
  0x12   : > { %2989 = vmatprep.subr.bf16.mxu0 %v3215_v7  ;;  %v3433_v11 = vld [vmem:[%s3427_s20] sm:$0xf]  ;;  %v3436_v12 = vld [vmem:[%s3427_s20 + $0x8] sm:$0xf]  ;;  %v3439_v13 = vld [vmem:[%s3427_s20 + $0x4] sm:$0x1] }
  0x13   : > { %v3445_v15 = vld [vmem:[%s3427_s20 + $0xc] sm:$0x1]  ;;  %v317_v16 = vshrl.u32 %v3433_v11, 16  ;;  %v320_v17 = vshll.u32 %v3433_v11, 16  ;;  %v326_v18 = vshll.u32 %v3439_v13, 16  ;;  %v331_v19 = vshrl.u32 %v3436_v12, 16 }
  0x14   : > { %2894 = vmatpush3.bf16.msra.mxu1 %v3214_v6  ;;  %v334_v20 = vshll.u32 %v3436_v12, 16  ;;  %v340_v21 = vshll.u32 %v3445_v15, 16  ;;  %v2576_v30 = vld [vmem:[%s3427_s20 + $0x8] sm:$0xf]  ;;  %v3461_v31 = vld [vmem:[%s3427_s20 + $0xc] sm:$0x1] }
  0x15   : > { %2990 = vmatpush3.bf16.msra.mxu0 %v3215_v7  ;;  %2895 = vmatprep.subr.bf16.mxu1 %v3216_v8  ;;  %v319_v24 = vrot.slane %v317_v16, 4  ;;  %v322_v25 = vrot.slane %v320_v17, 5  ;;  %v328_v26 = vrot.slane %v326_v18, 5  ;;  %v333_v27 = vrot.slane %v331_v19, 4  ;;  %v2578_v33 = vld [vmem:[%s3427_s20 + $0x10] sm:$0xf] }
  0x16   : > { %2991 = vmatprep.subr.bf16.mxu0 %v3217_v9  ;;  %v336_v28 = vrot.slane %v334_v20, 5  ;;  %v342_v29 = vrot.slane %v340_v21, 5  ;;  %v3465_v34 = vld [vmem:[%s3427_s20 + $0x14] sm:$0x1]  ;;  %v1109_v35 = vshrl.u32 %v2576_v30, 16  ;;  %v1112_v36 = vshll.u32 %v2576_v30, 16 }
  0x17   : > { %v323_v32 = vor.u32 %v322_v25, %v319_v24  ;;  %v1118_v40 = vshll.u32 %v3461_v31, 16  ;;  %v1123_v41 = vshrl.u32 %v2578_v33, 16  ;;  %v1126_v42 = vshll.u32 %v2578_v33, 16  ;;  %v3482_v51 = vld [vmem:[%s3427_s20 + $0x10] sm:$0xf] }
  0x18   : > { %2896 = vmatpush3.bf16.msra.mxu1 %v3216_v8  ;;  %v337_v39 = vor.u32 %v336_v28, %v333_v27  ;;  %v1111_v44 = vrot.slane %v1109_v35, 4  ;;  %v1114_v45 = vrot.slane %v1112_v36, 5  ;;  %v1132_v46 = vshll.u32 %v3465_v34, 16  ;;  %v3487_v55 = vld [vmem:[%s3427_s20 + $0x18] sm:$0xf] }
  0x19   : > { %2992 = vmatpush3.bf16.msra.mxu0 %v3217_v9  ;;  %2897 = vmatprep.subr.bf16.mxu1 %v3218_v10  ;;  %v324_v43 = vrot.slane %v323_v32, 4  ;;  %v1125_v49 = vrot.slane %v1123_v41, 4  ;;  %v1128_v50 = vrot.slane %v1126_v42, 5  ;;  %v1120_v54 = vrot.slane %v1118_v40, 5  ;;  %v3490_v56 = vld [vmem:[%s3427_s20 + $0x14] sm:$0x1] }
  0x1a   : > { %2993 = vmatprep.subr.bf16.mxu0 %v3219_v14  ;;  %v338_v48 = vrot.slane %v337_v39, 4  ;;  %v1115_v53 = vor.u32 %v1114_v45, %v1111_v44  ;;  %v1134_v59 = vrot.slane %v1132_v46, 5  ;;  %v3495_v60 = vld [vmem:[%s3427_s20 + $0x1c] sm:$0x1]  ;;  %v345_v61 = vshrl.u32 %v3482_v51, 16 }
  0x1b   : > { %v329_v52 = vsel %vm3472_vm2, %v324_v43, %v328_v26  ;;  %v1129_v58 = vor.u32 %v1128_v50, %v1125_v49  ;;  %v348_v2 = vshll.u32 %v3482_v51, 16  ;;  %v354_v3 = vshll.u32 %v3490_v56, 16  ;;  %v2580_v8 = vld [vmem:[%s3427_s20 + $0x18] sm:$0xf]  ;;  %v3515_v16 = vld [vmem:[%s3427_s20 + $0x1c] sm:$0x1] }
  0x1c   : > { %2898 = vmatpush3.bf16.msra.mxu1 %v3218_v10  ;;  %v343_v57 = vsel %vm3472_vm2, %v338_v48, %v342_v29  ;;  %v1116_v0 = vrot.slane %v1115_v53, 4  ;;  %v347_v5 = vrot.slane %v345_v61, 4  ;;  %v359_v6 = vshrl.u32 %v3487_v55, 16  ;;  %v2582_v17 = vld [vmem:[%s3427_s20 + $0x20] sm:$0xf]  ;;  %v3226_v43 = vld [vmem:[%s4001_s1 + $0x8] sm:$0xff]  }
  0x1d   : > { %2994 = vmatpush3.bf16.msra.mxu0 %v3219_v14  ;;  %2899 = vmatprep.subr.bf16.mxu1 %v3220_v22  ;;  %v2512_v62 = vcombine.low %v329_v52, %v343_v57  ;;  %v1130_v4 = vrot.slane %v1129_v58, 4  ;;  %v362_v7 = vshll.u32 %v3487_v55, 16  ;;  %v350_v10 = vrot.slane %v348_v2, 5  ;;  %v3521_v21 = vld [vmem:[%s3427_s20 + $0x24] sm:$0x1] }
  0x1e   : > { %2995 = vmatprep.subr.bf16.mxu0 %v3221_v23  ;;  %v1121_v9 = vsel %vm3472_vm2, %v1116_v0, %v1120_v54  ;;  %v368_v14 = vshll.u32 %v3495_v60, 16  ;;  %v361_v19 = vrot.slane %v359_v6, 4  ;;  %v356_v24 = vrot.slane %v354_v3, 5  ;;  %v3227_v54 = vld [vmem:[%s4001_s1 + $0x148] sm:$0xff]   ;;  %v3551_v0 = vld [vmem:[%s3427_s20 + $0x24] sm:$0x1] }
  0x1f   : > { %2903 = vmatprep.mubr.bf16.mxu1 %v2512_v62  ;;  %v1135_v18 = vsel %vm3472_vm2, %v1130_v4, %v1134_v59  ;;  %v364_v20 = vrot.slane %v362_v7, 5  ;;  %v1137_v27 = vshrl.u32 %v2580_v8, 16  ;;  %v1140_v28 = vshll.u32 %v2580_v8, 16  ;;  %v3228_v59 = vld [vmem:[%s4001_s1 + $0x10] sm:$0xff]   ;;  %v3545_v62 = vld [vmem:[%s3427_s20 + $0x20] sm:$0xf] }
  0x20   : > { %2900 = vmatpush3.bf16.msra.mxu1 %v3220_v22  ;;  %v2592_v22 = vcombine.low %v1121_v9, %v1135_v18  ;;  %v370_v25 = vrot.slane %v368_v14, 5  ;;  %v1146_v29 = vshll.u32 %v3515_v16, 16  ;;  %v1151_v32 = vshrl.u32 %v2582_v17, 16  ;;  %v3554_v2 = vld [vmem:[%s3427_s20 + $0x2c] sm:$0x1]  ;;  %v3229_v9 = vld [vmem:[%s4001_s1 + $0x150] sm:$0xff]  }
  0x21   : > { %2996 = vmatpush3.bf16.msra.mxu0 %v3221_v23  ;;  %2901 = vmatprep.subr.bf16.mxu1 %v3222_v37  ;;  %v351_v23 = vor.u32 %v350_v10, %v347_v5  ;;  %v365_v26 = vor.u32 %v364_v20, %v361_v19  ;;  %v1154_v33 = vshll.u32 %v2582_v17, 16  ;;  %v1160_v35 = vshll.u32 %v3521_v21, 16  ;;  %v3230_v10 = vld [vmem:[%s4001_s1 + $0x18] sm:$0xff]  }
  0x22   : > { %2997 = vmatprep.subr.bf16.mxu0 %v3223_v47  ;;  %2999 = vmatprep.mubr.bf16.mxu0 %v2592_v22  ;;  %v1142_v39 = vrot.slane %v1140_v28, 5  ;;  %v1153_v41 = vrot.slane %v1151_v32, 4  ;;  %v1148_v46 = vrot.slane %v1146_v29, 5  ;;  %v1399_v57 = vrot.slane %v3461_v31, 5  ;;  %v3231_v29 = vld [vmem:[%s4001_s1 + $0x158] sm:$0xff]  }
  0x23   : > { %v352_v30 = vrot.slane %v351_v23, 4  ;;  %v366_v36 = vrot.slane %v365_v26, 4  ;;  %v1156_v42 = vrot.slane %v1154_v33, 5  ;;  %v373_v3 = vshrl.u32 %v3545_v62, 16  ;;  %v2584_v23 = vld [vmem:[%s3427_s20 + $0x28] sm:$0xf] }
  0x24   : > { %2902 = vmatpush3.bf16.msra.mxu1 %v3222_v37  ;;  %v1139_v37 = vrot.slane %v1137_v27, 4  ;;  %v376_v4 = vshll.u32 %v3545_v62, 16  ;;  %v382_v5 = vshll.u32 %v3551_v0, 16  ;;  %v396_v8 = vshll.u32 %v3554_v2, 16  ;;  %v3575_v26 = vld [vmem:[%s3427_s20 + $0x34] sm:$0x1] }
  0x25   : > { %2998 = vmatpush3.bf16.msra.mxu0 %v3223_v47  ;;  %2911 = vmatprep.subr.bf16.mxu1 %v3224_v63  ;;  %v357_v40 = vsel %vm3472_vm2, %v352_v30, %v356_v24  ;;  %v371_v44 = vsel %vm3472_vm2, %v366_v36, %v370_v25  ;;  %v1162_v47 = vrot.slane %v1160_v35, 5  ;;  %v1157_v49 = vor.u32 %v1156_v42, %v1153_v41  ;;  %v3571_v24 = vld [vmem:[%s3427_s20 + $0x2c] sm:$0x1]  ;;  %v2586_v25 = vld [vmem:[%s3427_s20 + $0x30] sm:$0xf]  ;;  %v3232_v30 = vld [vmem:[%s4001_s1 + $0x20] sm:$0xff]  }
  0x26   : > { %3007 = vmatprep.subr.bf16.mxu0 %v3504_v1  ;;  %v1143_v45 = vor.u32 %v1142_v39, %v1139_v37  ;;  %v2513_v48 = vcombine.low %v357_v40, %v371_v44  ;;  %v375_v14 = vrot.slane %v373_v3, 4  ;;  %v378_v17 = vrot.slane %v376_v4, 5 }
  0x27   : > { %v1158_v52 = vrot.slane %v1157_v49, 4  ;;  %v384_v18 = vrot.slane %v382_v5, 5  ;;  %v398_v22 = vrot.slane %v396_v8, 5  ;;  %v1165_v27 = vshrl.u32 %v2584_v23, 16  ;;  %v2588_v5 = vld [vmem:[%s3427_s20 + $0x38] sm:$0xf] }
  0x28   : > { %v1144_v50 = vrot.slane %v1143_v45, 4  ;;  %2904 = vmatmul.mubr.bf16.vlgmr.msra.gmra.mrb[0].mxu1 %v2513_v48  ;;  %v1168_v28 = vshll.u32 %v2584_v23, 16  ;;  %v1174_v33 = vshll.u32 %v3571_v24, 16  ;;  %v1179_v35 = vshrl.u32 %v2586_v25, 16 }
  0x29   : > { %2912 = vmatpush3.bf16.msra.mxu1 %v3224_v63  ;;  %v1163_v58 = vsel %vm3472_vm2, %v1158_v52, %v1162_v47  ;;  %v3548_v63 = vld [vmem:[%s3427_s20 + $0x28] sm:$0xf]  ;;  %v1182_v36 = vshll.u32 %v2586_v25, 16  ;;  %v1167_v39 = vrot.slane %v1165_v27, 4  ;;  %v1188_v41 = vshll.u32 %v3575_v26, 16 }
  0x2a   : > { %v1149_v53 = vsel %vm3472_vm2, %v1144_v50, %v1148_v46  ;;  %2913 = vmatprep.subr.bf16.mxu1 %v3226_v43  ;;  %v387_v6 = vshrl.u32 %v3548_v63, 16  ;;  %v390_v7 = vshll.u32 %v3548_v63, 16  ;;  %v1170_v40 = vrot.slane %v1168_v28, 5  ;;  %v3586_v46 = vld [vmem:[%s3427_s20 + $0x30] sm:$0xf] }
  0x2b   : > { %v2593_v61 = vcombine.low %v1149_v53, %v1163_v58  ;;  %v1181_v44 = vrot.slane %v1179_v35, 4  ;;  %v1184_v45 = vrot.slane %v1182_v36, 5  ;;  %v1190_v49 = vrot.slane %v1188_v41, 5  ;;  %v3591_v50 = vld [vmem:[%s3427_s20 + $0x38] sm:$0xf] }
  0x2c   : > { %v389_v19 = vrot.slane %v387_v6, 4  ;;  %v392_v20 = vrot.slane %v390_v7, 5  ;;  %v1171_v48 = vor.u32 %v1170_v40, %v1167_v39  ;;  %v3594_v52 = vld [vmem:[%s3427_s20 + $0x34] sm:$0x1]  ;;  %v401_v53 = vshrl.u32 %v3586_v46, 16  ;;  %v3234_v6 = vld [vmem:[%s4001_s1 + $0x28] sm:$0xff]  }
  0x2d   : > { %3000 = vmatmul.mubr.bf16.vlgmr.msra.gmra.mrb[0].mxu0 %v2593_v61  ;;  %2914 = vmatpush3.bf16.msra.mxu1 %v3226_v43  ;;  %v1176_v43 = vrot.slane %v1174_v33, 5  ;;  %v3603_v61 = vld [vmem:[%s3427_s20 + $0x3c] sm:$0x1]  ;;  %v404_v3 = vshll.u32 %v3586_v46, 16  ;;  %v410_v4 = vshll.u32 %v3594_v52, 16  ;;  %v1193_v28 = vshrl.u32 %v2588_v5, 16 }
  0x2e   : > { %3008 = vmatpush3.bf16.msra.mxu0 %v3504_v1  ;;  %2915 = vmatprep.subr.bf16.mxu1 %v3228_v59  ;;  %v379_v1 = vor.u32 %v378_v17, %v375_v14  ;;  %v393_v32 = vor.u32 %v392_v20, %v389_v19  ;;  %v1172_v8 = vrot.slane %v1171_v48, 4  ;;  %v415_v14 = vshrl.u32 %v3591_v50, 16  ;;  %v3613_v17 = vld [vmem:[%s3427_s20 + $0x3c] sm:$0x1]  ;;  %v3621_v27 = vld [vmem:[%s3427_s20 + $0x44] sm:$0x1] }
  0x2f   : > { %3009 = vmatprep.subr.bf16.mxu0 %v3227_v54  ;;  %v406_v19 = vrot.slane %v404_v3, 5  ;;  %v412_v20 = vrot.slane %v410_v4, 5  ;;  %v424_v25 = vshll.u32 %v3603_v61, 16  ;;  %v1196_v36 = vshll.u32 %v2588_v5, 16 }
  0x30   : > { %v380_v37 = vrot.slane %v379_v1, 4  ;;  %v394_v42 = vrot.slane %v393_v32, 4  ;;  %v1177_v23 = vsel %vm3472_vm2, %v1172_v8, %v1176_v43  ;;  %v417_v1 = vrot.slane %v415_v14, 4 }
  0x31   : > { %2916 = vmatpush3.bf16.msra.mxu1 %v3228_v59  ;;  %v1185_v59 = vor.u32 %v1184_v45, %v1181_v44  ;;  %v426_v40 = vrot.slane %v424_v25, 5  ;;  %v1195_v41 = vrot.slane %v1193_v28, 4  ;;  %v1198_v45 = vrot.slane %v1196_v36, 5  ;;  %v2606_v25 = vld [vmem:[%s3427_s20 + $0x18] sm:$0xe] }
  0x32   : > { %3010 = vmatpush3.bf16.msra.mxu0 %v3227_v54  ;;  %2917 = vmatprep.subr.bf16.mxu1 %v3230_v10  ;;  %v385_v47 = vsel %vm3472_vm2, %v380_v37, %v384_v18  ;;  %v3233_v54 = vld [vmem:[%s4001_s1 + $0x160] sm:$0xff]   ;;  %v399_v58 = vsel %vm3472_vm2, %v394_v42, %v398_v22  ;;  %v418_v22 = vshll.u32 %v3591_v50, 16  ;;  %v3236_v37 = vld [vmem:[%s4001_s1 + $0x30] sm:$0xff]   ;;  %v1202_v42 = vshll.u32 %v3613_v17, 16  ;;  %v3239_v28 = vld [vmem:[%s4001_s1 + $0x178] sm:$0xff]  }
  0x33   : > { %3011 = vmatprep.subr.bf16.mxu0 %v3229_v9  ;;  %v2514_v7 = vcombine.low %v385_v47, %v399_v58  ;;  %v1186_v18 = vrot.slane %v1185_v59, 4  ;;  %v1403_v47 = vrot.slane %v3465_v34, 5  ;;  %v1407_v48 = vrot.slane %v3515_v16, 5  ;;  %v3237_v58 = vld [vmem:[%s4001_s1 + $0x170] sm:$0xff]  }
  0x34   : > { %v420_v35 = vrot.slane %v418_v22, 5  ;;  %v1199_v4 = vor.u32 %v1198_v45, %v1195_v41  ;;  %v1204_v34 = vrot.slane %v1202_v42, 5  ;;  %v1411_v22 = vrot.slane %v3521_v21, 5  ;;  %v3242_v41 = vld [vmem:[%s4001_s1 + $0x180] sm:$0xff]  }
  0x35   : > { %2918 = vmatpush3.bf16.msra.mxu1 %v3230_v10  ;;  %v403_v10 = vrot.slane %v401_v53, 4  ;;  %2907 = vmatprep.mubr.bf16.mxu1 %v2514_v7  ;;  %v1191_v32 = vsel %vm3472_vm2, %v1186_v18, %v1190_v49  ;;  %v1216_v53 = vshll.u32 %v3621_v27, 16  ;;  %v2604_v7 = vld [vmem:[%s3427_s20 + $0x8] sm:$0xe]  ;;  %v2614_v36 = vrot.slane %v2606_v25, 9 }
  0x36   : > { %3012 = vmatpush3.bf16.msra.mxu0 %v3229_v9  ;;  %2919 = vmatprep.subr.bf16.mxu1 %v3232_v30  ;;  %v2590_v9 = vld [vmem:[%s3427_s20 + $0x40] sm:$0xf]  ;;  %v2594_v39 = vcombine.low %v1177_v23, %v1191_v32  ;;  %v421_v44 = vor.u32 %v420_v35, %v417_v1  ;;  %v2612_v14 = vrot.slane %v2604_v7, 9  ;;  %v1200_v18 = vrot.slane %v1199_v4, 4 }
  0x37   : > { %3013 = vmatprep.subr.bf16.mxu0 %v3231_v29  ;;  %v407_v33 = vor.u32 %v406_v19, %v403_v10  ;;  %v1210_v49 = vshll.u32 %v2590_v9, 16  ;;  %v2605_v10 = vld [vmem:[%s3427_s20 + $0x10] sm:$0xe]  ;;  %v2524_v19 = vcombine.low %v3433_v11, %v3436_v12  ;;  %v1218_v1 = vrot.slane %v1216_v53, 5  ;;  %v2607_v12 = vld [vmem:[%s3427_s20 + $0x20] sm:$0xe] }
  0x38   : > { %3003 = vmatprep.mubr.bf16.mxu0 %v2594_v39  ;;  %v422_v3 = vrot.slane %v421_v44, 4  ;;  %v1400_v32 = vsel %vm3646_vm5, %v2612_v14, %v1399_v57  ;;  %v1205_v21 = vsel %vm3472_vm2, %v1200_v18, %v1204_v34  ;;  %v3241_v35 = vld [vmem:[%s4001_s1 + $0x80] sm:$0xff]   ;;  %v1408_v42 = vsel %vm3646_vm5, %v2614_v36, %v1407_v48  ;;  %v3246_v44 = vld [vmem:[%s4001_s1 + $0x90] sm:$0xff]  }
  0x39   : > { %2920 = vmatpush3.bf16.msra.mxu1 %v3232_v30  ;;  %v3235_v30 = vld [vmem:[%s4001_s1 + $0x168] sm:$0xff]   ;;  %v408_v43 = vrot.slane %v407_v33, 4  ;;  %v1212_v16 = vrot.slane %v1210_v49, 5  ;;  %v1415_v45 = vrot.slane %v3571_v24, 5  ;;  %v1423_v53 = vrot.slane %v3613_v17, 5  ;;  %v3250_v18 = vld [vmem:[%s4001_s1 + $0xa0] sm:$0xff]  }
  0x3a   : > { %3014 = vmatpush3.bf16.msra.mxu0 %v3231_v29  ;;  %2921 = vmatprep.subr.bf16.mxu1 %v3234_v6  ;;  %v1207_v29 = vshrl.u32 %v2590_v9, 16  ;;  %v1427_v24 = vrot.slane %v3621_v27, 5  ;;  %v743_v34 = vrot.slane %v3445_v15, 5  ;;  %v747_v17 = vrot.slane %v3490_v56, 5  ;;  %v711_v15 = vld [vmem:[%s3427_s20 + $0x8] sm:$0xe] }
  0x3b   : > { %3015 = vmatprep.subr.bf16.mxu0 %v3233_v54  ;;  %v413_v59 = vsel %vm3472_vm2, %v408_v43, %v412_v20  ;;  %v2613_v20 = vrot.slane %v2605_v10, 9  ;;  %v3244_v43 = vld [vmem:[%s4001_s1 + $0x88] sm:$0xff]   ;;  %v3247_v10 = vld [vmem:[%s4001_s1 + $0x190] sm:$0xff]   ;;  %v2537_v14 = vrot.slane %v711_v15, 9  ;;  %v755_v36 = vrot.slane %v3551_v0, 5  ;;  %v3260_v0 = vld [vmem:[%s4001_s1 + $0xc0] sm:$0xff]  }
  0x3c   : > { %v1209_v5 = vrot.slane %v1207_v29, 4  ;;  %v1419_v29 = vrot.slane %v3575_v26, 5  ;;  %v2527_v26 = vcombine.low %v3586_v46, %v3591_v50  ;;  %v3248_v46 = vld [vmem:[%s4001_s1 + $0x98] sm:$0xff]   ;;  %v3265_v15 = vld [vmem:[%s4001_s1 + $0x1c8] sm:$0xff]  }
  0x3d   : > { %2922 = vmatpush3.bf16.msra.mxu1 %v3234_v6  ;;  %v3238_v6 = vld [vmem:[%s4001_s1 + $0x38] sm:$0xff]   ;;  %v1404_v11 = vsel %vm3646_vm5, %v2613_v20, %v1403_v47 }
  0x3e   : > { %3016 = vmatpush3.bf16.msra.mxu0 %v3233_v54  ;;  %2923 = vmatprep.subr.bf16.mxu1 %v3236_v37  ;;  %v427_v54 = vsel %vm3472_vm2, %v422_v3, %v426_v40  ;;  %v1213_v23 = vor.u32 %v1212_v16, %v1209_v5  ;;  %v2620_v57 = vcombine.low %v1400_v32, %v1404_v11  ;;  %v710_v16 = vld [vmem:[%s3427_s20] sm:$0xe]  ;;  %v3249_v20 = vld [vmem:[%s4001_s1 + $0x198] sm:$0xff]  }
  0x3f   : > { %3017 = vmatprep.subr.bf16.mxu0 %v3235_v30  ;;  %v2515_v9 = vcombine.low %v413_v59, %v427_v54  ;;  %v2525_v40 = vcombine.low %v3482_v51, %v3487_v55  ;;  %v2526_v51 = vcombine.low %v3545_v62, %v3548_v63  ;;  %v739_v55 = vrot.slane %v3439_v13, 5  ;;  %v3245_v62 = vld [vmem:[%s4001_s1 + $0x188] sm:$0xff]   ;;  %v2609_v63 = vld [vmem:[%s3427_s20 + $0x30] sm:$0xe]  ;;  %v2611_v59 = vld [vmem:[%s3427_s20 + $0x40] sm:$0xe] }
  0x40   : > { %v1214_v33 = vrot.slane %v1213_v23, 4  ;;  %v2608_v13 = vld [vmem:[%s3427_s20 + $0x28] sm:$0xe]  ;;  %v2617_v49 = vrot.slane %v2609_v63, 9  ;;  %v2619_v7 = vrot.slane %v2611_v59, 9  ;;  %v2536_v56 = vrot.slane %v710_v16, 9 }
  0x41   : > { %2924 = vmatpush3.bf16.msra.mxu1 %v3236_v37  ;;  %v2615_v37 = vrot.slane %v2607_v12, 9  ;;  %v2616_v48 = vrot.slane %v2608_v13, 9  ;;  %v751_v54 = vrot.slane %v3495_v60, 5  ;;  %v712_v23 = vld [vmem:[%s3427_s20 + $0x10] sm:$0xe] }
  0x42   : > { %3018 = vmatpush3.bf16.msra.mxu0 %v3235_v30  ;;  %2908 = vmatmul.mubr.bf16.gmra.mrb[4].mxu1 %v2515_v9  ;;  %v1219_v31 = vsel %vm3472_vm2, %v1214_v33, %v1218_v1  ;;  %v1420_v4 = vsel %vm3646_vm5, %v2617_v49, %v1419_v29  ;;  %v744_v9 = vsel %vm3646_vm5, %v2537_v14, %v743_v34  ;;  %v713_v60 = vld [vmem:[%s3427_s20 + $0x18] sm:$0xe]  ;;  %v2538_v25 = vrot.slane %v712_v23, 9  ;;  %v3252_v33 = vld [vmem:[%s4001_s1 + $0xa8] sm:$0xff]  }
  0x43   : > { %3019 = vmatprep.subr.bf16.mxu0 %v3237_v58  ;;  %2925 = vmatprep.subr.bf16.mxu1 %v3238_v6  ;;  %v2595_v39 = vcombine.low %v1205_v21, %v1219_v31  ;;  %v1412_v30 = vsel %vm3646_vm5, %v2615_v37, %v1411_v22  ;;  %v1416_v3 = vsel %vm3646_vm5, %v2616_v48, %v1415_v45  ;;  %v3261_v32 = vld [vmem:[%s3427_s20 + $0x10] ss:$8 sps:$4 sm:$0xff]   ;;  %v763_v29 = vrot.slane %v3594_v52, 5  ;;  %v3264_v49 = vld [vmem:[%s4001_s1 + $0xc8] sm:$0xff]  }
  0x44   : > { %2927 = vmatprep.mubr.bf16.mxu1 %v2524_v19  ;;  %v2621_v47 = vcombine.low %v1408_v42, %v1412_v30  ;;  %v2622_v27 = vcombine.low %v1416_v3, %v1420_v4  ;;  %v740_v19 = vsel %vm3646_vm5, %v2536_v56, %v739_v55  ;;  %v748_v11 = vsel %vm3646_vm5, %v2538_v25, %v747_v17  ;;  %v3255_v31 = vld [vmem:[%s4001_s1 + $0xb0] sm:$0xff]   ;;  %v3258_v37 = vld [vmem:[%s4001_s1 + $0xb8] sm:$0xff]   ;;  %v2658_v25 = vld [vmem:[%s3427_s20 + $0x28] sm:$0xf] }
  0x45   : > { %2926 = vmatpush3.bf16.msra.mxu1 %v3238_v6  ;;  %3004 = vmatmul.mubr.bf16.gmra.mrb[4].mxu0 %v2595_v39  ;;  %v1428_v6 = vsel %vm3646_vm5, %v2619_v7, %v1427_v24  ;;  %v2544_v1 = vcombine.low %v740_v19, %v744_v9  ;;  %v714_v39 = vld [vmem:[%s3427_s20 + $0x20] sm:$0xe]  ;;  %v3259_v45 = vld [vmem:[%s4001_s1 + $0x1b8] sm:$0xff]   ;;  %v3785_v24 = vld [vmem:[%s3427_s20 + $0x14] sm:$0x1] }
  0x46   : > { %3020 = vmatpush3.bf16.msra.mxu0 %v3237_v58  ;;  %2935 = vmatprep.subr.bf16.mxu1 %v3241_v35  ;;  %v2610_v58 = vld [vmem:[%s3427_s20 + $0x38] sm:$0xe]  ;;  %v2540_v42 = vrot.slane %v714_v39, 9  ;;  %v1778_v59 = vshll.u32 %v3785_v24, 16  ;;  %v3263_v7 = vld [vmem:[%s3427_s20 + $0x20] ss:$8 sps:$4 sm:$0xff]  }
  0x47   : > { %3021 = vmatprep.subr.bf16.mxu0 %v3239_v28  ;;  %3023 = vmatprep.mubr.bf16.mxu0 %v2620_v57  ;;  %v2618_v5 = vrot.slane %v2610_v58, 9  ;;  %v3253_v57 = vld [vmem:[%s4001_s1 + $0x1a8] sm:$0xff]   ;;  %v2654_v52 = vld [vmem:[%s3427_s20 + $0x18] sm:$0xf]  ;;  %v3267_v9 = vld [vmem:[%s4001_s1 + $0x1d0] sm:$0xff]  }
  0x48   : > { %v1783_v3 = vshrl.u32 %v2654_v52, 16  ;;  %v1786_v4 = vshll.u32 %v2654_v52, 16  ;;  %v3274_v56 = vld [vmem:[%s3427_s20 + $0x30] ss:$8 sps:$4 sm:$0xff]   ;;  %v3273_v52 = vld [vmem:[%s4001_s1 + $0x1e8] sm:$0xff]  }
  0x49   : > { %v1424_v50 = vsel %vm3646_vm5, %v2618_v5, %v1423_v53  ;;  %v2652_v53 = vld [vmem:[%s3427_s20 + $0x10] sm:$0xf]  ;;  %v3268_v23 = vld [vmem:[%s4001_s1 + $0xd8] sm:$0xff]  }
  0x4a   : > { %3022 = vmatpush3.bf16.msra.mxu0 %v3239_v28  ;;  %2928 = vmatmul.mubr.bf16.vlgmr.msra.gmra.mrb[0].mxu1 %v2525_v40  ;;  %v2623_v22 = vcombine.low %v1424_v50, %v1428_v6  ;;  %v2539_v28 = vrot.slane %v713_v60, 9  ;;  %v715_v40 = vld [vmem:[%s3427_s20 + $0x28] sm:$0xe]  ;;  %v1772_v58 = vshll.u32 %v2652_v53, 16  ;;  %v1785_v50 = vrot.slane %v1783_v3, 4 }
  0x4b   : > { %3031 = vmatprep.subr.bf16.mxu0 %v3242_v41  ;;  %2936 = vmatpush3.bf16.msra.mxu1 %v3241_v35  ;;  %v3251_v35 = vld [vmem:[%s4001_s1 + $0x1a0] sm:$0xff]   ;;  %v2541_v30 = vrot.slane %v715_v40, 9  ;;  %v1788_v6 = vrot.slane %v1786_v4, 5 }
  0x4c   : > { %2937 = vmatprep.subr.bf16.mxu1 %v3244_v43  ;;  %2931 = vmatprep.mubr.bf16.mxu1 %v2526_v51  ;;  %v752_v12 = vsel %vm3646_vm5, %v2539_v28, %v751_v54  ;;  %v716_v51 = vld [vmem:[%s3427_s20 + $0x30] sm:$0xe]  ;;  %v1774_v16 = vrot.slane %v1772_v58, 5  ;;  %v1780_v54 = vrot.slane %v1778_v59, 5 }
  0x4d   : > { %3024 = vmatmul.mubr.bf16.vlgmr.msra.gmra.mrb[0].mxu0 %v2621_v47  ;;  %v2545_v21 = vcombine.low %v748_v11, %v752_v12  ;;  %v767_v47 = vrot.slane %v3603_v61, 5  ;;  %v2542_v63 = vrot.slane %v716_v51, 9  ;;  %v3789_v61 = vld [vmem:[%s3427_s20 + $0x1c] sm:$0x1]  ;;  %v3276_v11 = vld [vmem:[%s3427_s20 + $0x40] ss:$8 sps:$4 sm:$0xff]  }
  0x4e   : > { %3032 = vmatpush3.bf16.msra.mxu0 %v3242_v41  ;;  %3027 = vmatprep.mubr.bf16.mxu0 %v2622_v27  ;;  %v759_v41 = vrot.slane %v3554_v2, 5  ;;  %v756_v2 = vsel %vm3646_vm5, %v2540_v42, %v755_v36  ;;  %v1792_v5 = vshll.u32 %v3789_v61, 16  ;;  %v2660_v12 = vld [vmem:[%s3427_s20 + $0x30] sm:$0xf]  ;;  %v1814_v36 = vshll.u32 %v2658_v25, 16 }
  0x4f   : > { %2938 = vmatpush3.bf16.msra.mxu1 %v3244_v43  ;;  %3033 = vmatprep.subr.bf16.mxu0 %v3245_v62  ;;  %v3256_v43 = vld [vmem:[%s4001_s1 + $0x1b0] sm:$0xff]   ;;  %v764_v34 = vsel %vm3646_vm5, %v2542_v63, %v763_v29  ;;  %v1825_v40 = vshrl.u32 %v2660_v12, 16  ;;  %v3834_v51 = vld [vmem:[%s3427_s20 + $0x24] sm:$0x1] }
  0x50   : > { %2939 = vmatprep.subr.bf16.mxu1 %v3246_v44  ;;  %v760_v55 = vsel %vm3646_vm5, %v2541_v30, %v759_v41  ;;  %v1794_v19 = vrot.slane %v1792_v5, 5  ;;  %v1828_v41 = vshll.u32 %v2660_v12, 16  ;;  %v1816_v29 = vrot.slane %v1814_v36, 5  ;;  %v2666_v5 = vld [vmem:[%s3427_s20 + $0x48] sm:$0xf]  ;;  %v3279_v12 = vld [vmem:[%s4001_s1 + $0x1f8] sm:$0xff]  }
  0x51   : > { %v2546_v13 = vcombine.low %v756_v2, %v760_v55  ;;  %v3837_v2 = vld [vmem:[%s3427_s20 + $0x2c] sm:$0x1]  ;;  %v1806_v58 = vshll.u32 %v3834_v51, 16 }
  0x52   : > { %2932 = vmatmul.mubr.bf16.gmra.mrb[4].mxu1 %v2527_v26  ;;  %3034 = vmatpush3.bf16.msra.mxu0 %v3245_v62  ;;  %v3262_v62 = vld [vmem:[%s4001_s1 + $0x1c0] sm:$0xff]   ;;  %v1769_v26 = vshrl.u32 %v2652_v53, 16  ;;  %v1830_v63 = vrot.slane %v1828_v41, 5  ;;  %v1820_v59 = vshll.u32 %v3837_v2, 16 }
  0x53   : > { %2940 = vmatpush3.bf16.msra.mxu1 %v3246_v44  ;;  %3035 = vmatprep.subr.bf16.mxu0 %v3247_v10  ;;  %v717_v44 = vld [vmem:[%s3427_s20 + $0x38] sm:$0xe]  ;;  %v2664_v53 = vld [vmem:[%s3427_s20 + $0x40] sm:$0xf] }
  0x54   : > { %2941 = vmatprep.subr.bf16.mxu1 %v3248_v46  ;;  %2951 = vmatprep.mubr.bf16.mxu1 %v2544_v1  ;;  %v2543_v48 = vrot.slane %v717_v44, 9  ;;  %v1771_v27 = vrot.slane %v1769_v26, 4  ;;  %v2656_v1 = vld [vmem:[%s3427_s20 + $0x20] sm:$0xf]  ;;  %v3275_v26 = vld [vmem:[%s4001_s1 + $0xf0] sm:$0xff]  }
  0x55   : > { %3028 = vmatmul.mubr.bf16.gmra.mrb[4].mxu0 %v2623_v22 }
  0x56   : > { %3036 = vmatpush3.bf16.msra.mxu0 %v3247_v10  ;;  %3047 = vmatprep.mubr.bf16.mxu0 %v3261_v32  ;;  %v768_v17 = vsel %vm3646_vm5, %v2543_v48, %v767_v47  ;;  %v1775_v10 = vor.u32 %v1774_v16, %v1771_v27  ;;  %v3840_v47 = vld [vmem:[%s3427_s20 + $0x34] sm:$0x1]  ;;  %v1856_v27 = vshll.u32 %v2664_v53, 16 }
  0x57   : > { %2942 = vmatpush3.bf16.msra.mxu1 %v3248_v46  ;;  %3037 = vmatprep.subr.bf16.mxu0 %v3249_v20  ;;  %v3266_v46 = vld [vmem:[%s4001_s1 + $0xd0] sm:$0xff]   ;;  %v2547_v14 = vcombine.low %v764_v34, %v768_v17  ;;  %v1834_v3 = vshll.u32 %v3840_v47, 16  ;;  %v1853_v17 = vshrl.u32 %v2664_v53, 16  ;;  %v2681_v53 = vld [vmem:[%s3427_s20 + $0x18] sm:$0xe] }
  0x58   : > { %2943 = vmatprep.subr.bf16.mxu1 %v3250_v18  ;;  %v1776_v22 = vrot.slane %v1775_v10, 4 }
  0x5a   : > { %3038 = vmatpush3.bf16.msra.mxu0 %v3249_v20  ;;  %v3280_v20 = vld [vmem:[%s3427_s20 + $0x8] ss:$8 sps:$4 sm:$0xff]   ;;  %v1781_v28 = vsel %vm3472_vm2, %v1776_v22, %v1780_v54 }
  0x5b   : > { %2944 = vmatpush3.bf16.msra.mxu1 %v3250_v18  ;;  %3039 = vmatprep.subr.bf16.mxu0 %v3251_v35  ;;  %v1789_v18 = vor.u32 %v1788_v6, %v1785_v50  ;;  %v1867_v50 = vshrl.u32 %v2666_v5, 16  ;;  %v1870_v6 = vshll.u32 %v2666_v5, 16  ;;  %v2689_v5 = vrot.slane %v2681_v53, 9 }
  0x5c   : > { %2945 = vmatprep.subr.bf16.mxu1 %v3252_v33 }
  0x5d   : > { %v1790_v60 = vrot.slane %v1789_v18, 4  ;;  %v1822_v18 = vrot.slane %v1820_v59, 5  ;;  %v3285_v59 = vld [vmem:[%s3427_s20 + $0x38] ss:$8 sps:$4 sm:$0xff]  }
  0x5e   : > { %3040 = vmatpush3.bf16.msra.mxu0 %v3251_v35  ;;  %v1797_v35 = vshrl.u32 %v2656_v1, 16 }
  0x5f   : > { %2946 = vmatpush3.bf16.msra.mxu1 %v3252_v33  ;;  %3041 = vmatprep.subr.bf16.mxu0 %v3253_v57  ;;  %v1795_v32 = vsel %vm3472_vm2, %v1790_v60, %v1794_v19  ;;  %v3270_v33 = vld [vmem:[%s4001_s1 + $0xe0] sm:$0xff]   ;;  %v3867_v60 = vld [vmem:[%s3427_s20 + $0x4c] sm:$0x1] }
  0x60   : > { %2947 = vmatprep.subr.bf16.mxu1 %v3255_v31  ;;  %v2668_v39 = vcombine.low %v1781_v28, %v1795_v32  ;;  %v1799_v55 = vrot.slane %v1797_v35, 4  ;;  %v1869_v28 = vrot.slane %v1867_v50, 4  ;;  %v1872_v32 = vrot.slane %v1870_v6, 5  ;;  %v3281_v35 = vld [vmem:[%s3427_s20 + $0x18] ss:$8 sps:$4 sm:$0xff]   ;;  %v3289_v6 = vld [vmem:[%s4001_s1 + $0x228] sm:$0xff]  }
  0x62   : > { %3042 = vmatpush3.bf16.msra.mxu0 %v3253_v57  ;;  %v1811_v57 = vshrl.u32 %v2658_v25, 16  ;;  %v1858_v25 = vrot.slane %v1856_v27, 5 }
  0x63   : > { %2948 = vmatpush3.bf16.msra.mxu1 %v3255_v31  ;;  %3043 = vmatprep.subr.bf16.mxu0 %v3256_v43  ;;  %v1800_v31 = vshll.u32 %v2656_v1, 16  ;;  %v1855_v1 = vrot.slane %v1853_v17, 4 }
  0x64   : > { %2949 = vmatprep.subr.bf16.mxu1 %v3258_v37 }
  0x65   : > { %v1802_v44 = vrot.slane %v1800_v31, 5 }
  0x66   : > { %3044 = vmatpush3.bf16.msra.mxu0 %v3256_v43  ;;  %v3271_v43 = vld [vmem:[%s4001_s1 + $0x1e0] sm:$0xff]  }
  0x67   : > { %2950 = vmatpush3.bf16.msra.mxu1 %v3258_v37  ;;  %3045 = vmatprep.subr.bf16.mxu0 %v3259_v45  ;;  %v3269_v37 = vld [vmem:[%s4001_s1 + $0x1d8] sm:$0xff]  }
  0x68   : > { %2959 = vmatprep.subr.bf16.mxu1 %v3260_v0 }
  0x6a   : > { %2952 = vmatmul.mubr.bf16.vlgmr.msra.gmra.mrb[0].mxu1 %v2545_v21  ;;  %3046 = vmatpush3.bf16.msra.mxu0 %v3259_v45  ;;  %v2662_v21 = vld [vmem:[%s3427_s20 + $0x38] sm:$0xf]  ;;  %v1813_v45 = vrot.slane %v1811_v57, 4 }
  0x6b   : > { %2960 = vmatpush3.bf16.msra.mxu1 %v3260_v0  ;;  %2955 = vmatprep.mubr.bf16.mxu1 %v2546_v13  ;;  %v1839_v42 = vshrl.u32 %v2662_v21, 16  ;;  %v1842_v30 = vshll.u32 %v2662_v21, 16  ;;  %v3272_v0 = vld [vmem:[%s4001_s1 + $0xe8] sm:$0xff]   ;;  %v1827_v13 = vrot.slane %v1825_v40, 4  ;;  %v2684_v21 = vld [vmem:[%s3427_s20 + $0x30] sm:$0xe] }
  0x6c   : > { %2961 = vmatprep.subr.bf16.mxu1 %v3264_v49  ;;  %3055 = vmatprep.subr.bf16.mxu0 %v3262_v62  ;;  %v1817_v34 = vor.u32 %v1816_v29, %v1813_v45 }
  0x6d   : > { %3048 = vmatmul.mubr.bf16.vlgmr.msra.gmra.mrb[0].mxu0 %v3263_v7  ;;  %v1841_v48 = vrot.slane %v1839_v42, 4  ;;  %v1803_v7 = vor.u32 %v1802_v44, %v1799_v55  ;;  %v1831_v16 = vor.u32 %v1830_v63, %v1827_v13  ;;  %v1859_v42 = vor.u32 %v1858_v25, %v1855_v1 }
  0x6e   : > { %3056 = vmatpush3.bf16.msra.mxu0 %v3262_v62  ;;  %3051 = vmatprep.mubr.bf16.mxu0 %v3274_v56  ;;  %v3843_v62 = vld [vmem:[%s3427_s20 + $0x3c] sm:$0x1]  ;;  %v3277_v56 = vld [vmem:[%s4001_s1 + $0x1f0] sm:$0xff]   ;;  %v1818_v54 = vrot.slane %v1817_v34, 4  ;;  %v2075_v55 = vrot.slane %v3840_v47, 5  ;;  %v2067_v25 = vrot.slane %v3834_v51, 5 }
  0x6f   : > { %2962 = vmatpush3.bf16.msra.mxu1 %v3264_v49  ;;  %3057 = vmatprep.subr.bf16.mxu0 %v3265_v15  ;;  %v1844_v49 = vrot.slane %v1842_v30, 5  ;;  %v1848_v4 = vshll.u32 %v3843_v62, 16  ;;  %v1804_v10 = vrot.slane %v1803_v7, 4  ;;  %v1832_v19 = vrot.slane %v1831_v16, 4  ;;  %v3287_v16 = vld [vmem:[%s4001_s1 + $0x218] sm:$0xff]  }
  0x70   : > { %2963 = vmatprep.subr.bf16.mxu1 %v3266_v46  ;;  %v1823_v57 = vsel %vm3472_vm2, %v1818_v54, %v1822_v18  ;;  %v1873_v30 = vor.u32 %v1872_v32, %v1869_v28  ;;  %v2079_v45 = vrot.slane %v3843_v62, 5  ;;  %v2063_v7 = vrot.slane %v3789_v61, 5 }
  0x71   : > { %v2087_v54 = vrot.slane %v3867_v60, 5  ;;  %v2071_v32 = vrot.slane %v3837_v2, 5 }
  0x72   : > { %2956 = vmatmul.mubr.bf16.gmra.mrb[4].mxu1 %v2547_v14  ;;  %3058 = vmatpush3.bf16.msra.mxu0 %v3265_v15  ;;  %v3278_v15 = vld [vmem:[%s4001_s1 + $0xf8] sm:$0xff]   ;;  %v1808_v14 = vrot.slane %v1806_v58, 5  ;;  %v3286_v58 = vld [vmem:[%s4001_s1 + $0x210] sm:$0xff]   ;;  %v2064_v61 = vsel %vm3646_vm5, %v2689_v5, %v2063_v7 }
  0x73   : > { %2964 = vmatpush3.bf16.msra.mxu1 %v3266_v46  ;;  %2975 = vmatprep.mubr.bf16.mxu1 %v3280_v20  ;;  %v1845_v46 = vor.u32 %v1844_v49, %v1841_v48  ;;  %v1836_v20 = vrot.slane %v1834_v3, 5  ;;  %v2680_v49 = vld [vmem:[%s3427_s20 + $0x10] sm:$0xe] }
  0x74   : > { %2965 = vmatprep.subr.bf16.mxu1 %v3268_v23  ;;  %3059 = vmatprep.subr.bf16.mxu0 %v3267_v9  ;;  %v1809_v31 = vsel %vm3472_vm2, %v1804_v10, %v1808_v14  ;;  %v2688_v3 = vrot.slane %v2680_v49, 9  ;;  %v2687_v10 = vld [vmem:[%s3427_s20 + $0x48] sm:$0xe] }
  0x75   : > { %3052 = vmatmul.mubr.bf16.gmra.mrb[4].mxu0 %v3276_v11  ;;  %v1846_v22 = vrot.slane %v1845_v46, 4  ;;  %v3282_v11 = vld [vmem:[%s4001_s1 + $0x200] sm:$0xff]   ;;  %v1837_v40 = vsel %vm3472_vm2, %v1832_v19, %v1836_v20  ;;  %v2669_v29 = vcombine.low %v1809_v31, %v1823_v57  ;;  %v2695_v19 = vrot.slane %v2687_v10, 9  ;;  %v3291_v20 = vld [vmem:[%s4001_s1 + $0x238] sm:$0xff]  }
  0x76   : > { %3060 = vmatpush3.bf16.msra.mxu0 %v3267_v9  ;;  %3071 = vmatprep.mubr.bf16.mxu0 %v2668_v39  ;;  %v1850_v9 = vrot.slane %v1848_v4, 5  ;;  %v3284_v39 = vld [vmem:[%s3427_s20 + $0x28] ss:$8 sps:$4 sm:$0xff]   ;;  %v2059_v4 = vrot.slane %v3785_v24, 5 }
  0x77   : > { %2966 = vmatpush3.bf16.msra.mxu1 %v3268_v23  ;;  %3061 = vmatprep.subr.bf16.mxu0 %v3269_v37  ;;  %v3864_v23 = vld [vmem:[%s3427_s20 + $0x44] sm:$0x1] }
  0x78   : > { %2967 = vmatprep.subr.bf16.mxu1 %v3270_v33  ;;  %v1862_v36 = vshll.u32 %v3864_v23, 16  ;;  %v1851_v41 = vsel %vm3472_vm2, %v1846_v22, %v1850_v9  ;;  %v2060_v24 = vsel %vm3646_vm5, %v2688_v3, %v2059_v4  ;;  %v2083_v14 = vrot.slane %v3864_v23, 5  ;;  %v2682_v22 = vld [vmem:[%s3427_s20 + $0x20] sm:$0xe]  ;;  %v2683_v9 = vld [vmem:[%s3427_s20 + $0x28] sm:$0xe] }
  0x79   : > { %v2670_v13 = vcombine.low %v1837_v40, %v1851_v41  ;;  %v2696_v50 = vcombine.low %v2060_v24, %v2064_v61  ;;  %v2088_v23 = vsel %vm3646_vm5, %v2695_v19, %v2087_v54  ;;  %v2691_v28 = vrot.slane %v2683_v9, 9 }
  0x7a   : > { %3062 = vmatpush3.bf16.msra.mxu0 %v3269_v37  ;;  %v1876_v37 = vshll.u32 %v3867_v60, 16  ;;  %v1864_v63 = vrot.slane %v1862_v36, 5  ;;  %v2690_v60 = vrot.slane %v2682_v22, 9 }
  0x7b   : > { %2968 = vmatpush3.bf16.msra.mxu1 %v3270_v33  ;;  %3063 = vmatprep.subr.bf16.mxu0 %v3271_v43  ;;  %v2685_v33 = vld [vmem:[%s3427_s20 + $0x38] sm:$0xe] }
  0x7c   : > { %2969 = vmatprep.subr.bf16.mxu1 %v3272_v0  ;;  %v2693_v44 = vrot.slane %v2685_v33, 9  ;;  %v1878_v48 = vrot.slane %v1876_v37, 5 }
  0x7e   : > { %3064 = vmatpush3.bf16.msra.mxu0 %v3271_v43  ;;  %v3283_v43 = vld [vmem:[%s4001_s1 + $0x208] sm:$0xff]   ;;  %v2080_v62 = vsel %vm3646_vm5, %v2693_v44, %v2079_v45  ;;  %v2708_v44 = vld [vmem:[%s4002_s2] ss:$0 sm:$0xff] }
  0x7f   : > { %2970 = vmatpush3.bf16.msra.mxu1 %v3272_v0  ;;  %3065 = vmatprep.subr.bf16.mxu0 %v3273_v52  ;;  %v2692_v0 = vrot.slane %v2684_v21, 9  ;;  %v2072_v21 = vsel %vm3646_vm5, %v2691_v28, %v2071_v32 }
  0x80   : > { %2971 = vmatprep.subr.bf16.mxu1 %v3275_v26 }
  0x81   : > { %v2076_v47 = vsel %vm3646_vm5, %v2692_v0, %v2075_v55 }
  0x82   : > { %3066 = vmatpush3.bf16.msra.mxu0 %v3273_v52  ;;  %v1860_v52 = vrot.slane %v1859_v42, 4  ;;  %v2698_v34 = vcombine.low %v2076_v47, %v2080_v62 }
  0x83   : > { %2972 = vmatpush3.bf16.msra.mxu1 %v3275_v26  ;;  %3067 = vmatprep.subr.bf16.mxu0 %v3277_v56  ;;  %v1874_v26 = vrot.slane %v1873_v30, 4 }
  0x84   : > { %2973 = vmatprep.subr.bf16.mxu1 %v3278_v15  ;;  %v1865_v17 = vsel %vm3472_vm2, %v1860_v52, %v1864_v63 }
  0x85   : > { %v1879_v27 = vsel %vm3472_vm2, %v1874_v26, %v1878_v48 }
  0x86   : > { %3068 = vmatpush3.bf16.msra.mxu0 %v3277_v56  ;;  %v2671_v46 = vcombine.low %v1865_v17, %v1879_v27  ;;  %v2686_v56 = vld [vmem:[%s3427_s20 + $0x40] sm:$0xe] }
  0x87   : > { %2974 = vmatpush3.bf16.msra.mxu1 %v3278_v15  ;;  %3069 = vmatprep.subr.bf16.mxu0 %v3279_v12  ;;  %v3290_v15 = vld [vmem:[%s4001_s1 + $0x230] sm:$0xff]   ;;  %v2694_v18 = vrot.slane %v2686_v56, 9 }
  0x88   : > { %3103 = vmatprep.subr.bf16.mxu1 %v3282_v11 }
  0x89   : > { %v2084_v1 = vsel %vm3646_vm5, %v2694_v18, %v2083_v14 }
  0x8a   : > { %2976 = vmatmul.mubr.bf16.vlgmr.msra.gmra.mrb[0].mxu1 %v3281_v35  ;;  %3070 = vmatpush3.bf16.msra.mxu0 %v3279_v12  ;;  %v2068_v12 = vsel %vm3646_vm5, %v2690_v60, %v2067_v25 }
  0x8b   : > { %3111 = vmatpush3.bf16.msra.mxu1 %v3282_v11  ;;  %2979 = vmatprep.mubr.bf16.mxu1 %v3284_v39  ;;  %v2697_v33 = vcombine.low %v2068_v12, %v2072_v21 }
  0x8c   : > { %3104 = vmatprep.subr.bf16.mxu1 %v3283_v43  ;;  %3079 = vmatprep.subr.bf16.mxu0 %v3282_v11 }
  0x8d   : > { %3072 = vmatmul.mubr.bf16.vlgmr.msra.gmra.mrb[0].mxu0 %v2669_v29 }
  0x8e   : > { %3080 = vmatpush3.bf16.msra.mxu0 %v3282_v11  ;;  %3075 = vmatprep.mubr.bf16.mxu0 %v2670_v13  ;;  %v2699_v11 = vcombine.low %v2084_v1, %v2088_v23 }
  0x8f   : > { %3112 = vmatpush3.bf16.msra.mxu1 %v3283_v43  ;;  %3081 = vmatprep.subr.bf16.mxu0 %v3283_v43 }
  0x90   : > { %3105 = vmatprep.subr.bf16.mxu1 %v3286_v58 }
  0x92   : > { %2980 = vmatmul.mubr.bf16.gmra.mrb[4].mxu1 %v3285_v59  ;;  %3082 = vmatpush3.bf16.msra.mxu0 %v3283_v43 }
  0x93   : > { %3113 = vmatpush3.bf16.msra.mxu1 %v3286_v58  ;;  %3099 = vmatprep.mubr.bf16.mxu1 %v2698_v34 }
  0x94   : > { %3106 = vmatprep.subr.bf16.mxu1 %v3287_v16  ;;  %3083 = vmatprep.subr.bf16.mxu0 %v3286_v58 }
  0x95   : > { %3076 = vmatmul.mubr.bf16.gmra.mrb[4].mxu0 %v2671_v46 }
  0x96   : > { %3084 = vmatpush3.bf16.msra.mxu0 %v3286_v58  ;;  %3095 = vmatprep.mubr.bf16.mxu0 %v2696_v50 }
  0x97   : > { %3114 = vmatpush3.bf16.msra.mxu1 %v3287_v16  ;;  %3085 = vmatprep.subr.bf16.mxu0 %v3287_v16 }
  0x98   : > { %3107 = vmatprep.subr.bf16.mxu1 %v3288_v38 }
  0x9a   : > { %3086 = vmatpush3.bf16.msra.mxu0 %v3287_v16 }
  0x9b   : > { %3115 = vmatpush3.bf16.msra.mxu1 %v3288_v38  ;;  %3087 = vmatprep.subr.bf16.mxu0 %v3288_v38 }
  0x9c   : > { %3108 = vmatprep.subr.bf16.mxu1 %v3289_v6 }
  0x9e   : > { %3088 = vmatpush3.bf16.msra.mxu0 %v3288_v38 }
  0x9f   : > { %3116 = vmatpush3.bf16.msra.mxu1 %v3289_v6  ;;  %3089 = vmatprep.subr.bf16.mxu0 %v3289_v6 }
  0xa0   : > { %3109 = vmatprep.subr.bf16.mxu1 %v3290_v15 }
  0xa2   : > { %3090 = vmatpush3.bf16.msra.mxu0 %v3289_v6 }
  0xa3   : > { %3117 = vmatpush3.bf16.msra.mxu1 %v3290_v15  ;;  %3091 = vmatprep.subr.bf16.mxu0 %v3290_v15 }
  0xa4   : > { %3110 = vmatprep.subr.bf16.mxu1 %v3291_v20 }
  0xa6   : > { %3092 = vmatpush3.bf16.msra.mxu0 %v3290_v15 }
  0xa7   : > { %3118 = vmatpush3.bf16.msra.mxu1 %v3291_v20  ;;  %3093 = vmatprep.subr.bf16.mxu0 %v3291_v20 }
  0xaa   : > { %3100 = vmatmul.mubr.bf16.vlgmr.msra.gmra.mrb[8].mxu1 %v2699_v11  ;;  %3094 = vmatpush3.bf16.msra.mxu0 %v3291_v20 }
  0xad   : > { %3096 = vmatmul.mubr.bf16.vlgmr.msra.gmra.mrb[0].mxu0 %v2697_v33 }
 0x15d   : > { %v2977_v35 = vpop.f32.mrb[0].mxu1 }
 0x15e   : > { %v1053_v51 = vpop.f32.mrb[1].mxu1 }
 0x15f   : > { %v2978_v31 = vpop.f32.mrb[2].mxu1 }
 0x160   : > { %v1056_v57 = vpop.f32.mrb[3].mxu1 }
 0x165   : > { %v2981_v2 = vpop.f32.mrb[4].mxu1 }
 0x166   : > { %v1069_v36 = vpop.f32.mrb[5].mxu1 }
 0x167   : > { %v2982_v37 = vpop.f32.mrb[6].mxu1 }
 0x168   : > { %v1072_v39 = vpop.f32.mrb[7].mxu1  ;;  %v3077_v40 = vpop.f32.mrb[4].mxu0 }
 0x169   : > { %v3123_v41 = vadd.f32 %v3077_v40, %v2981_v2  ;;  %v2010_v42 = vpop.f32.mrb[5].mxu0 }
 0x16a   : > { %v3125_v30 = vadd.f32 %v2010_v42, %v1069_v36  ;;  %v3078_v43 = vpop.f32.mrb[6].mxu0 }
 0x16b   : > { %v3127_v8 = vadd.f32 %v3078_v43, %v2982_v37  ;;  %v2013_v0 = vpop.f32.mrb[7].mxu0 }
 0x16c   : > { %v3129_v55 = vadd.f32 %v2013_v0, %v1072_v39 }
 0x17d   : > { %v3101_v45 = vpop.f32.mrb[8].mxu1 }
 0x17e   : > { %v3124_v29 = vadd.f32 %v3123_v41, %v3101_v45  ;;  %v2219_v13 = vpop.f32.mrb[9].mxu1  ;;  %v2773_v41 = vld [vmem:[%s271_s23 + $0x8] sm:$0xff]  }
 0x17f   : > { %v3126_v63 = vadd.f32 %v3125_v30, %v2219_v13  ;;  %v3102_v48 = vpop.f32.mrb[10].mxu1 }
 0x180   : > { %v3948_v49 = vadd.f32 %v3124_v29, %v2708_v44  ;;  %v3128_v53 = vadd.f32 %v3127_v8, %v3102_v48  ;;  %v2222_v52 = vpop.f32.mrb[11].mxu1  ;;  %v3097_v62 = vpop.f32.mrb[0].mxu0  ;;  %v2743_v29 = vunpack.c.l.bf16 %v2773_v41 }
 0x181   : > { %v3950_v26 = vadd.f32 %v3126_v63, %v2708_v44  ;;  %v3130_v47 = vadd.f32 %v3129_v55, %v2222_v52  ;;  %v3119_v3 = vadd.f32 %v3097_v62, %v2977_v35  ;;  %v2203_v4 = vpop.f32.mrb[1].mxu0  ;;  %v2738_v55 = vld [vmem:[%s271_s23] sm:$0xff]   ;;  %v2744_v52 = vunpack.c.h.bf16 %v2773_v41 }
 0x182   : > { %v2715_v58 = vmul.f32 -1.442695, %v3948_v49  ;;  %v3953_v59 = vadd.f32 %v3128_v53, %v2708_v44  ;;  %v3120_v34 = vadd.f32 %v2203_v4, %v1053_v51  ;;  %v3098_v17 = vpop.f32.mrb[2].mxu0  ;;  %v2775_v51 = vld [vmem:[%s271_s23 + $0x18] sm:$0xff]  }
 0x183   : > { %v2713_v5 = vmul.f32 -1.442695, %v3950_v26  ;;  %v3956_v7 = vadd.f32 %v3130_v47, %v2708_v44  ;;  %v3959_v16 = vadd.f32 %v3119_v3, %v2708_v44  ;;  %v3121_v24 = vadd.f32 %v3098_v17, %v2978_v31  ;;  %v2206_v61 = vpop.f32.mrb[3].mxu0  ;;  %v2774_v31 = vld [vmem:[%s271_s23 + $0x10] sm:$0xff]  }
 0x184   : > { %3292 = vpow2.f32 %v2715_v58  ;;  %v2716_v27 = vmul.f32 -1.442695, %v3953_v59  ;;  %v3962_v38 = vadd.f32 %v3120_v34, %v2708_v44  ;;  %v3122_v50 = vadd.f32 %v2206_v61, %v1056_v57 }
 0x185   : > { %3294 = vpow2.f32 %v2713_v5  ;;  %v2714_v46 = vmul.f32 -1.442695, %v3956_v7  ;;  %v2711_v6 = vmul.f32 -1.442695, %v3959_v16  ;;  %v3965_v15 = vadd.f32 %v3121_v24, %v2708_v44 }
 0x186   : > { %3296 = vpow2.f32 %v2716_v27  ;;  %v2709_v56 = vmul.f32 -1.442695, %v3962_v38  ;;  %v3968_v10 = vadd.f32 %v3122_v50, %v2708_v44  ;;  %v2751_v37 = vunpack.c.l.bf16 %v2775_v51 }
 0x187   : > { %3298 = vpow2.f32 %v2714_v46  ;;  %v2712_v14 = vmul.f32 -1.442695, %v3965_v15  ;;  %v2752_v39 = vunpack.c.h.bf16 %v2775_v51  ;;  %v2747_v30 = vunpack.c.l.bf16 %v2774_v31 }
 0x188   : > { %3300 = vpow2.f32 %v2711_v6  ;;  %v2710_v54 = vmul.f32 -1.442695, %v3968_v10  ;;  %v2748_v43 = vunpack.c.h.bf16 %v2774_v31  ;;  %v2739_v58 = vunpack.c.l.bf16 %v2738_v55 }
 0x189   : > { %3302 = vpow2.f32 %v2709_v56  ;;  %v2740_v3 = vunpack.c.h.bf16 %v2738_v55 }
 0x18a   : > { %3304 = vpow2.f32 %v2712_v14 }
 0x18b   : > { %3306 = vpow2.f32 %v2710_v54 }
 0x18e   : > { %v3293_v18 = vpop.eup %3292 }
 0x18f   : > { %v3295_v19 = vpop.eup %3294  ;;  %v2287_v20 = vadd.f32 1.0, %v3293_v18 }
 0x190   : > { %v3297_v22 = vpop.eup %3296  ;;  %v2285_v9 = vadd.f32 1.0, %v3295_v19 }
 0x191   : > { %v3299_v1 = vpop.eup %3298  ;;  %3308 = vrcp.f32 %v2287_v20  ;;  %v2288_v23 = vadd.f32 1.0, %v3297_v22 }
 0x192   : > { %3310 = vrcp.f32 %v2285_v9  ;;  %v2286_v60 = vadd.f32 1.0, %v3299_v1  ;;  %v3301_v25 = vpop.eup %3300 }
 0x193   : > { %3312 = vrcp.f32 %v2288_v23  ;;  %v3303_v28 = vpop.eup %3302  ;;  %v2283_v32 = vadd.f32 1.0, %v3301_v25 }
 0x194   : > { %3314 = vrcp.f32 %v2286_v60  ;;  %v3305_v11 = vpop.eup %3304  ;;  %v2281_v12 = vadd.f32 1.0, %v3303_v28 }
 0x195   : > { %v3307_v21 = vpop.eup %3306  ;;  %3316 = vrcp.f32 %v2283_v32  ;;  %v2284_v33 = vadd.f32 1.0, %v3305_v11 }
 0x196   : > { %3318 = vrcp.f32 %v2281_v12  ;;  %v2282_v35 = vadd.f32 1.0, %v3307_v21 }
 0x197   : > { %3320 = vrcp.f32 %v2284_v33 }
 0x198   : > { %3322 = vrcp.f32 %v2282_v35 }
 0x19b   : > { %v3309_v57 = vpop.eup %3308 }
 0x19c   : > { %v3311_v2 = vpop.eup %3310  ;;  %v2311_v36 = vmul.f32 %v3309_v57, %v3948_v49 }
 0x19d   : > { %v3313_v40 = vpop.eup %3312  ;;  %v2309_v42 = vmul.f32 %v3311_v2, %v3950_v26 }
 0x19e   : > { %v3315_v8 = vpop.eup %3314  ;;  %v2312_v0 = vmul.f32 %v3313_v40, %v3953_v59  ;;  %v2335_v13 = vadd.f32 %v2751_v37, %v2311_v36 }
 0x19f   : > { %v2310_v44 = vmul.f32 %v3315_v8, %v3956_v7  ;;  %v3317_v45 = vpop.eup %3316  ;;  %v2333_v53 = vadd.f32 %v2747_v30, %v2309_v42 }
 0x1a0   : > { %v2336_v63 = vadd.f32 %v2752_v39, %v2312_v0  ;;  %v3319_v48 = vpop.eup %3318  ;;  %v2307_v49 = vmul.f32 %v3317_v45, %v3959_v16 }
 0x1a1   : > { %v2334_v26 = vadd.f32 %v2748_v43, %v2310_v44  ;;  %v3321_v47 = vpop.eup %3320  ;;  %v2305_v62 = vmul.f32 %v3319_v48, %v3962_v38 }
 0x1a2   : > { %v2771_v59 = vpack.c.bf16 %v2336_v63, %v2335_v13  ;;  %v3323_v4 = vpop.eup %3322  ;;  %v2308_v5 = vmul.f32 %v3321_v47, %v3965_v15  ;;  %v2331_v17 = vadd.f32 %v2743_v29, %v2307_v49 }
 0x1a3   : > { %v2766_v7 = vpack.c.bf16 %v2334_v26, %v2333_v53  ;;  %v2306_v34 = vmul.f32 %v3323_v4, %v3968_v10  ;;  %v2329_v16 = vadd.f32 %v2739_v58, %v2305_v62 }
 0x1a4   : > { %2778 = vst [vmem:[%s279_s26 + $0x18] sm:$0xff] %v2771_v59   ;;  %v2332_v27 = vadd.f32 %v2744_v52, %v2308_v5 }
 0x1a5   : > { %2777 = vst [vmem:[%s279_s26 + $0x10] sm:$0xff] %v2766_v7   ;;  %v2330_v24 = vadd.f32 %v2740_v3, %v2306_v34 }
 0x1a6   : > { %v2761_v61 = vpack.c.bf16 %v2332_v27, %v2331_v17 }
 0x1a7   : > { %v2756_v46 = vpack.c.bf16 %v2330_v24, %v2329_v16 }
 0x1a8   : > { %2776 = vst [vmem:[%s279_s26 + $0x8] sm:$0xff] %v2761_v61  }
 0x1a9   : > { %2757 = vst [vmem:[%s279_s26] sm:$0xff] %v2756_v46  }
 0x1aa PF: > { %s14_s17 = sadd.s32 1, %s3346_s17   ;;  %s4009_s15 = smov %s3342_s16 }
 0x1ab   : > { %p11_p5 = scmp.ge.s32.totalorder %s14_s17, 4   ;;  %s4010_s16 = smov %s4012_s18 }
 0x1ad   :  { %13 = sbr.rel (!%p11_p5) target bundleno = 2 (0x2), region = 77 }

// kernel: _lambda_.16
= control target key start
LH: loop header
LB: loop body
LE: loop exit
PB: predicated region body
PF: predicated region fallthrough
CT: control target
= control target key end

     0   :  { %s352_s1 = inlined_call_operand.vmem [shape: bf16[128,128], index: 1, kind: input, shape index: {}]   ;;  %s353_s0 = inlined_call_operand.vmem [shape: bf16[32,128], index: 0, kind: input, shape index: {}]   ;;  %s354_s2 = inlined_call_operand.vmem [shape: f32[1,128], index: 2, kind: input, shape index: {}]   ;;  %s355_s3 = inlined_call_operand.vmem [shape: bf16[32,128], index: 3, kind: output, shape index: {}]  }
   0x1   :  { %v267_v0 = vld [vmem:[%s352_s1] sm:$0xff]   ;;  %v268_v1 = vld [vmem:[%s352_s1 + $0x8] sm:$0xff]   ;;  %v269_v2 = vld [vmem:[%s352_s1 + $0x10] sm:$0xff]  }
   0x2   :  { %247 = vmatprep.subr.bf16.mxu0 %v267_v0  ;;  %v270_v3 = vld [vmem:[%s352_s1 + $0x18] sm:$0xff]   ;;  %v275_v4 = vld [vmem:[%s353_s0] sm:$0xff]   ;;  %v272_v6 = vld [vmem:[%s352_s1 + $0x28] sm:$0xff]  }
   0x3   :  { %248 = vmatpush3.bf16.msra.mxu0 %v267_v0  ;;  %263 = vmatprep.mubr.bf16.mxu0 %v275_v4  ;;  %v271_v5 = vld [vmem:[%s352_s1 + $0x20] sm:$0xff]   ;;  %v273_v7 = vld [vmem:[%s352_s1 + $0x30] sm:$0xff]   ;;  %v274_v8 = vld [vmem:[%s352_s1 + $0x38] sm:$0xff]  }
   0x4   :  { %249 = vmatprep.subr.bf16.mxu0 %v268_v1  ;;  %v276_v9 = vld [vmem:[%s353_s0 + $0x8] sm:$0xff]   ;;  %v203_v10 = vld [vmem:[%s354_s2] ss:$0 sm:$0xff] }
   0x7   :  { %250 = vmatpush3.bf16.msra.mxu0 %v268_v1 }
   0x8   :  { %251 = vmatprep.subr.bf16.mxu0 %v269_v2 }
   0xb   :  { %252 = vmatpush3.bf16.msra.mxu0 %v269_v2 }
   0xc   :  { %253 = vmatprep.subr.bf16.mxu0 %v270_v3 }
   0xf   :  { %254 = vmatpush3.bf16.msra.mxu0 %v270_v3 }
  0x10   :  { %255 = vmatprep.subr.bf16.mxu0 %v271_v5 }
  0x13   :  { %256 = vmatpush3.bf16.msra.mxu0 %v271_v5 }
  0x14   :  { %257 = vmatprep.subr.bf16.mxu0 %v272_v6 }
  0x17   :  { %258 = vmatpush3.bf16.msra.mxu0 %v272_v6 }
  0x18   :  { %259 = vmatprep.subr.bf16.mxu0 %v273_v7 }
  0x1b   :  { %260 = vmatpush3.bf16.msra.mxu0 %v273_v7 }
  0x1c   :  { %261 = vmatprep.subr.bf16.mxu0 %v274_v8 }
  0x1f   :  { %262 = vmatpush3.bf16.msra.mxu0 %v274_v8 }
  0x22   :  { %264 = vmatmul.mubr.bf16.vlgmr.msra.gmra.mrb[0].mxu0 %v276_v9 }
  0xf5   :  { %v265_v11 = vpop.f32.mrb[0].mxu0 }
  0xf6   :  { %v145_v12 = vadd.f32 %v265_v11, %v203_v10  ;;  %v136_v13 = vpop.f32.mrb[1].mxu0 }
  0xf7   :  { %v137_v14 = vadd.f32 %v203_v10, %v136_v13  ;;  %v266_v15 = vpop.f32.mrb[2].mxu0 }
  0xf8   :  { %v216_v16 = vmul.f32 -1.442695, %v145_v12  ;;  %v148_v17 = vadd.f32 %v266_v15, %v203_v10  ;;  %v139_v18 = vpop.f32.mrb[3].mxu0 }
  0xf9   :  { %v214_v19 = vmul.f32 -1.442695, %v137_v14  ;;  %v140_v20 = vadd.f32 %v203_v10, %v139_v18 }
  0xfa   :  { %277 = vpow2.f32 %v216_v16  ;;  %v217_v21 = vmul.f32 -1.442695, %v148_v17 }
  0xfb   :  { %279 = vpow2.f32 %v214_v19  ;;  %v215_v22 = vmul.f32 -1.442695, %v140_v20 }
  0xfc   :  { %281 = vpow2.f32 %v217_v21 }
  0xfd   :  { %283 = vpow2.f32 %v215_v22 }
 0x104   :  { %v278_v23 = vpop.eup %277 }
 0x105   :  { %v280_v24 = vpop.eup %279  ;;  %v165_v25 = vadd.f32 1.0, %v278_v23 }
 0x106   :  { %v282_v26 = vpop.eup %281  ;;  %v163_v27 = vadd.f32 1.0, %v280_v24 }
 0x107   :  { %v284_v28 = vpop.eup %283  ;;  %285 = vrcp.f32 %v165_v25  ;;  %v166_v29 = vadd.f32 1.0, %v282_v26 }
 0x108   :  { %287 = vrcp.f32 %v163_v27  ;;  %v164_v30 = vadd.f32 1.0, %v284_v28 }
 0x109   :  { %289 = vrcp.f32 %v166_v29 }
 0x10a   :  { %291 = vrcp.f32 %v164_v30 }
 0x111   :  { %v286_v31 = vpop.eup %285 }
 0x112   :  { %v288_v32 = vpop.eup %287  ;;  %v177_v35 = vmul.f32 %v286_v31, %v145_v12 }
 0x113   :  { %v290_v33 = vpop.eup %289  ;;  %v175_v37 = vmul.f32 %v288_v32, %v137_v14 }
 0x114   :  { %v292_v34 = vpop.eup %291  ;;  %v178_v36 = vmul.f32 %v290_v33, %v148_v17 }
 0x115   :  { %v176_v38 = vmul.f32 %v292_v34, %v140_v20 }
 0x116   :  { %v234_v39 = vpack.c.bf16 %v178_v36, %v177_v35 }
 0x117   :  { %v229_v40 = vpack.c.bf16 %v176_v38, %v175_v37 }
 0x118   :  { %236 = vst [vmem:[%s355_s3 + $0x8] sm:$0xff] %v234_v39  }
 0x119   :  { %230 = vst [vmem:[%s355_s3] sm:$0xff] %v229_v40  }

// kernel: _lambda_.15
= control target key start
LH: loop header
LB: loop body
LE: loop exit
PB: predicated region body
PF: predicated region fallthrough
CT: control target
= control target key end

     0   :  { %s304_s1 = inlined_call_operand.vmem [shape: bf16[128,128], index: 1, kind: input, shape index: {}]   ;;  %s305_s0 = inlined_call_operand.vmem [shape: bf16[32,128], index: 0, kind: input, shape index: {}]   ;;  %s306_s2 = inlined_call_operand.vmem [shape: f32[1,128], index: 2, kind: input, shape index: {}]   ;;  %s307_s3 = inlined_call_operand.vmem [shape: bf16[32,128], index: 3, kind: output, shape index: {}]  }
   0x1   :  { %v235_v0 = vld [vmem:[%s304_s1] sm:$0xff]   ;;  %v236_v1 = vld [vmem:[%s304_s1 + $0x8] sm:$0xff]   ;;  %v237_v2 = vld [vmem:[%s304_s1 + $0x10] sm:$0xff]  }
   0x2   :  { %215 = vmatprep.subr.bf16.mxu0 %v235_v0  ;;  %v238_v3 = vld [vmem:[%s304_s1 + $0x18] sm:$0xff]   ;;  %v243_v4 = vld [vmem:[%s305_s0] sm:$0xff]   ;;  %v240_v6 = vld [vmem:[%s304_s1 + $0x28] sm:$0xff]  }
   0x3   :  { %216 = vmatpush3.bf16.msra.mxu0 %v235_v0  ;;  %231 = vmatprep.mubr.bf16.mxu0 %v243_v4  ;;  %v239_v5 = vld [vmem:[%s304_s1 + $0x20] sm:$0xff]   ;;  %v241_v7 = vld [vmem:[%s304_s1 + $0x30] sm:$0xff]   ;;  %v242_v8 = vld [vmem:[%s304_s1 + $0x38] sm:$0xff]  }
   0x4   :  { %217 = vmatprep.subr.bf16.mxu0 %v236_v1  ;;  %v244_v9 = vld [vmem:[%s305_s0 + $0x8] sm:$0xff]   ;;  %v175_v11 = vld [vmem:[%s306_s2] ss:$0 sm:$0xff] }
   0x7   :  { %218 = vmatpush3.bf16.msra.mxu0 %v236_v1 }
   0x8   :  { %219 = vmatprep.subr.bf16.mxu0 %v237_v2 }
   0xb   :  { %220 = vmatpush3.bf16.msra.mxu0 %v237_v2 }
   0xc   :  { %221 = vmatprep.subr.bf16.mxu0 %v238_v3 }
   0xf   :  { %222 = vmatpush3.bf16.msra.mxu0 %v238_v3 }
  0x10   :  { %223 = vmatprep.subr.bf16.mxu0 %v239_v5 }
  0x13   :  { %224 = vmatpush3.bf16.msra.mxu0 %v239_v5 }
  0x14   :  { %225 = vmatprep.subr.bf16.mxu0 %v240_v6 }
  0x17   :  { %226 = vmatpush3.bf16.msra.mxu0 %v240_v6 }
  0x18   :  { %227 = vmatprep.subr.bf16.mxu0 %v241_v7 }
  0x1b   :  { %228 = vmatpush3.bf16.msra.mxu0 %v241_v7 }
  0x1c   :  { %229 = vmatprep.subr.bf16.mxu0 %v242_v8 }
  0x1f   :  { %230 = vmatpush3.bf16.msra.mxu0 %v242_v8 }
  0x22   :  { %232 = vmatmul.mubr.bf16.vlgmr.msra.gmra.mrb[0].mxu0 %v244_v9 }
  0xf5   :  { %v233_v10 = vpop.f32.mrb[0].mxu0 }
  0xf6   :  { %v136_v12 = vpop.f32.mrb[1].mxu0  ;;  %v145_v14 = vadd.f32 %v233_v10, %v175_v11 }
  0xf7   :  { %v234_v13 = vpop.f32.mrb[2].mxu0  ;;  %v137_v17 = vadd.f32 %v175_v11, %v136_v12 }
  0xf8   :  { %v148_v15 = vadd.f32 %v234_v13, %v175_v11  ;;  %v139_v16 = vpop.f32.mrb[3].mxu0 }
  0xf9   :  { %v140_v18 = vadd.f32 %v175_v11, %v139_v16 }
  0xfa   :  { %v202_v19 = vpack.c.bf16 %v148_v15, %v145_v14 }
  0xfb   :  { %v197_v20 = vpack.c.bf16 %v140_v18, %v137_v17 }
  0xfc   :  { %204 = vst [vmem:[%s307_s3 + $0x8] sm:$0xff] %v202_v19  }
  0xfd   :  { %198 = vst [vmem:[%s307_s3] sm:$0xff] %v197_v20  }

// kernel: _lambda_.14
= control target key start
LH: loop header
LB: loop body
LE: loop exit
PB: predicated region body
PF: predicated region fallthrough
CT: control target
= control target key end

     0   :  { %s1676_s1 = inlined_call_operand.vmem [shape: bf16[1152,128], index: 1, kind: input, shape index: {}]   ;;  %s1677_s0 = inlined_call_operand.vmem [shape: bf16[32,1152], index: 0, kind: input, shape index: {}]   ;;  %s1678_s2 = inlined_call_operand.vmem [shape: f32[1,128], index: 2, kind: input, shape index: {}]   ;;  %s1679_s3 = inlined_call_operand.vmem [shape: bf16[32,128], index: 3, kind: output, shape index: {}]  }
   0x1   :  { %v1263_v0 = vld [vmem:[%s1676_s1 + $0x40] sm:$0xff]   ;;  %v1267_v4 = vld [vmem:[%s1676_s1 + $0x48] sm:$0xff]   ;;  %v1271_v8 = vld [vmem:[%s1676_s1 + $0x50] sm:$0xff]  }
   0x2   :  { %v1264_v1 = vld [vmem:[%s1676_s1] sm:$0xff]   ;;  %1121 = vmatprep.subr.bf16.mxu0 %v1263_v0  ;;  %v1268_v5 = vld [vmem:[%s1676_s1 + $0x8] sm:$0xff]   ;;  %v1272_v9 = vld [vmem:[%s1676_s1 + $0x10] sm:$0xff]  }
   0x3   :  { %v1265_v2 = vld [vmem:[%s1676_s1 + $0xc0] sm:$0xff]   ;;  %1122 = vmatpush3.bf16.msra.mxu0 %v1264_v1  ;;  %v1269_v6 = vld [vmem:[%s1676_s1 + $0xc8] sm:$0xff]   ;;  %v1273_v10 = vld [vmem:[%s1676_s1 + $0xd0] sm:$0xff]  }
   0x4   :  { %v1266_v3 = vld [vmem:[%s1676_s1 + $0x80] sm:$0xff]   ;;  %1149 = vmatprep.subr.bf16.mxu1 %v1265_v2  ;;  %1123 = vmatprep.subr.bf16.mxu0 %v1267_v4  ;;  %v1270_v7 = vld [vmem:[%s1676_s1 + $0x88] sm:$0xff]   ;;  %v1274_v11 = vld [vmem:[%s1676_s1 + $0x90] sm:$0xff]  }
   0x5   :  { %1150 = vmatpush3.bf16.msra.mxu1 %v1266_v3  ;;  %v1275_v12 = vld [vmem:[%s1676_s1 + $0x58] sm:$0xff]   ;;  %v1279_v16 = vld [vmem:[%s1676_s1 + $0x60] sm:$0xff]   ;;  %v1283_v20 = vld [vmem:[%s1676_s1 + $0x68] sm:$0xff]  }
   0x6   :  { %1151 = vmatprep.subr.bf16.mxu1 %v1269_v6  ;;  %v1276_v13 = vld [vmem:[%s1676_s1 + $0x18] sm:$0xff]   ;;  %v1280_v17 = vld [vmem:[%s1676_s1 + $0x20] sm:$0xff]   ;;  %v1284_v21 = vld [vmem:[%s1676_s1 + $0x28] sm:$0xff]  }
   0x7   :  { %1124 = vmatpush3.bf16.msra.mxu0 %v1268_v5  ;;  %v1277_v14 = vld [vmem:[%s1676_s1 + $0xd8] sm:$0xff]   ;;  %v1281_v18 = vld [vmem:[%s1676_s1 + $0xe0] sm:$0xff]   ;;  %v1285_v22 = vld [vmem:[%s1676_s1 + $0xe8] sm:$0xff]  }
   0x8   :  { %1125 = vmatprep.subr.bf16.mxu0 %v1271_v8  ;;  %v1278_v15 = vld [vmem:[%s1676_s1 + $0x98] sm:$0xff]   ;;  %v1282_v19 = vld [vmem:[%s1676_s1 + $0xa0] sm:$0xff]   ;;  %v1286_v23 = vld [vmem:[%s1676_s1 + $0xa8] sm:$0xff]  }
   0x9   :  { %1152 = vmatpush3.bf16.msra.mxu1 %v1270_v7  ;;  %v1287_v24 = vld [vmem:[%s1676_s1 + $0x70] sm:$0xff]   ;;  %v1291_v28 = vld [vmem:[%s1676_s1 + $0x78] sm:$0xff]   ;;  %v1294_v31 = vld [vmem:[%s1677_s0] ss:$36 sps:$4 sm:$0xff]  }
   0xa   :  { %1153 = vmatprep.subr.bf16.mxu1 %v1273_v10  ;;  %v1288_v25 = vld [vmem:[%s1676_s1 + $0x30] sm:$0xff]   ;;  %v1292_v29 = vld [vmem:[%s1676_s1 + $0x38] sm:$0xff]   ;;  %v1296_v32 = vld [vmem:[%s1677_s0 + $0x4] ss:$36 sps:$4 sm:$0xff]  }
   0xb   :  { %1126 = vmatpush3.bf16.msra.mxu0 %v1272_v9  ;;  %v1289_v26 = vld [vmem:[%s1676_s1 + $0xf0] sm:$0xff]   ;;  %v1293_v30 = vld [vmem:[%s1676_s1 + $0xf8] sm:$0xff]   ;;  %742 = vmatprep.mubr.bf16.mxu0 %v1296_v32  ;;  %v1298_v34 = vld [vmem:[%s1676_s1 + $0x140] sm:$0xff]  }
   0xc   :  { %1127 = vmatprep.subr.bf16.mxu0 %v1275_v12  ;;  %v1290_v27 = vld [vmem:[%s1676_s1 + $0xb0] sm:$0xff]   ;;  %v1297_v33 = vld [vmem:[%s1676_s1 + $0xb8] sm:$0xff]   ;;  %v1299_v35 = vld [vmem:[%s1677_s0 + $0x8] ss:$36 sps:$4 sm:$0xff]  }
   0xd   :  { %1154 = vmatpush3.bf16.msra.mxu1 %v1274_v11  ;;  %v1301_v36 = vld [vmem:[%s1677_s0 + $0xc] ss:$36 sps:$4 sm:$0xff]   ;;  %v1302_v37 = vld [vmem:[%s1676_s1 + $0x100] sm:$0xff]   ;;  %v1313_v48 = vld [vmem:[%s1676_s1 + $0x158] sm:$0xff]  }
   0xe   :  { %1155 = vmatprep.subr.bf16.mxu1 %v1277_v14  ;;  %791 = vmatprep.mubr.bf16.mxu1 %v1301_v36  ;;  %v1303_v38 = vld [vmem:[%s1676_s1 + $0x1c0] sm:$0xff]   ;;  %v1305_v40 = vld [vmem:[%s1676_s1 + $0x148] sm:$0xff]   ;;  %v1309_v44 = vld [vmem:[%s1676_s1 + $0x150] sm:$0xff]  }
   0xf   :  { %1128 = vmatpush3.bf16.msra.mxu0 %v1276_v13  ;;  %v1304_v39 = vld [vmem:[%s1676_s1 + $0x180] sm:$0xff]   ;;  %v1306_v41 = vld [vmem:[%s1676_s1 + $0x108] sm:$0xff]   ;;  %v1310_v45 = vld [vmem:[%s1676_s1 + $0x110] sm:$0xff]  }
  0x10   :  { %1129 = vmatprep.subr.bf16.mxu0 %v1279_v16  ;;  %v1307_v42 = vld [vmem:[%s1676_s1 + $0x1c8] sm:$0xff]   ;;  %v1311_v46 = vld [vmem:[%s1676_s1 + $0x1d0] sm:$0xff]   ;;  %v1314_v49 = vld [vmem:[%s1676_s1 + $0x118] sm:$0xff]  }
  0x11   :  { %1156 = vmatpush3.bf16.msra.mxu1 %v1278_v15  ;;  %v1308_v43 = vld [vmem:[%s1676_s1 + $0x188] sm:$0xff]   ;;  %v1312_v47 = vld [vmem:[%s1676_s1 + $0x190] sm:$0xff]   ;;  %v1315_v50 = vld [vmem:[%s1676_s1 + $0x1d8] sm:$0xff]  }
  0x12   :  { %1157 = vmatprep.subr.bf16.mxu1 %v1281_v18  ;;  %v1316_v51 = vld [vmem:[%s1676_s1 + $0x198] sm:$0xff]   ;;  %v1317_v52 = vld [vmem:[%s1676_s1 + $0x160] sm:$0xff]   ;;  %v1321_v56 = vld [vmem:[%s1676_s1 + $0x168] sm:$0xff]  }
  0x13   :  { %1130 = vmatpush3.bf16.msra.mxu0 %v1280_v17  ;;  %v1318_v53 = vld [vmem:[%s1676_s1 + $0x120] sm:$0xff]   ;;  %v1322_v57 = vld [vmem:[%s1677_s0 + $0x4c] ss:$36 sps:$4 sm:$0xff]   ;;  %v1327_v61 = vld [vmem:[%s1677_s0 + $0x54] ss:$36 sps:$4 sm:$0xff]  }
  0x14   :  { %1131 = vmatprep.subr.bf16.mxu0 %v1283_v20  ;;  %v1319_v54 = vld [vmem:[%s1676_s1 + $0x1e0] sm:$0xff]   ;;  %v1324_v58 = vld [vmem:[%s1676_s1 + $0x128] sm:$0xff]   ;;  %v1330_v63 = vld [vmem:[%s1677_s0 + $0x50] ss:$36 sps:$4 sm:$0xff]  }
  0x15   :  { %1158 = vmatpush3.bf16.msra.mxu1 %v1282_v19  ;;  %v1320_v55 = vld [vmem:[%s1676_s1 + $0x1a0] sm:$0xff]   ;;  %v1325_v59 = vld [vmem:[%s1677_s0 + $0x48] ss:$36 sps:$4 sm:$0xff]   ;;  %v1331_v0 = vld [vmem:[%s1676_s1 + $0x170] sm:$0xff]  }
  0x16   :  { %1159 = vmatprep.subr.bf16.mxu1 %v1285_v22  ;;  %v1326_v60 = vld [vmem:[%s1676_s1 + $0x1e8] sm:$0xff]   ;;  %v1332_v1 = vld [vmem:[%s1676_s1 + $0x130] sm:$0xff]   ;;  %v1335_v4 = vld [vmem:[%s1676_s1 + $0x178] sm:$0xff]  }
  0x17   :  { %1132 = vmatpush3.bf16.msra.mxu0 %v1284_v21  ;;  %v1329_v62 = vld [vmem:[%s1676_s1 + $0x1a8] sm:$0xff]   ;;  %v1333_v2 = vld [vmem:[%s1676_s1 + $0x1f0] sm:$0xff]   ;;  %v1336_v5 = vld [vmem:[%s1676_s1 + $0x138] sm:$0xff]  }
  0x18   :  { %1133 = vmatprep.subr.bf16.mxu0 %v1287_v24  ;;  %v1334_v3 = vld [vmem:[%s1676_s1 + $0x1b0] sm:$0xff]   ;;  %v1337_v6 = vld [vmem:[%s1676_s1 + $0x1f8] sm:$0xff]   ;;  %v1342_v10 = vld [vmem:[%s1676_s1 + $0x200] sm:$0xff]  }
  0x19   :  { %1160 = vmatpush3.bf16.msra.mxu1 %v1286_v23  ;;  %v1338_v7 = vld [vmem:[%s1677_s0 + $0x10] ss:$36 sps:$4 sm:$0xff]   ;;  %v1341_v9 = vld [vmem:[%s1676_s1 + $0x1b8] sm:$0xff]   ;;  %v1346_v13 = vld [vmem:[%s1676_s1 + $0x208] sm:$0xff]  }
  0x1a   :  { %1161 = vmatprep.subr.bf16.mxu1 %v1289_v26  ;;  %v1340_v8 = vld [vmem:[%s1677_s0 + $0x14] ss:$36 sps:$4 sm:$0xff]   ;;  %v1345_v12 = vld [vmem:[%s1677_s0 + $0x1c] ss:$36 sps:$4 sm:$0xff]   ;;  %v1351_v17 = vld [vmem:[%s1677_s0 + $0x64] ss:$36 sps:$4 sm:$0xff]  }
  0x1b   :  { %1134 = vmatpush3.bf16.msra.mxu0 %v1288_v25  ;;  %v1343_v11 = vld [vmem:[%s1677_s0 + $0x18] ss:$36 sps:$4 sm:$0xff]   ;;  %v1350_v16 = vld [vmem:[%s1676_s1 + $0x210] sm:$0xff]   ;;  %v1353_v18 = vld [vmem:[%s1677_s0 + $0x60] ss:$36 sps:$4 sm:$0xff]  }
  0x1c   :  { %1135 = vmatprep.subr.bf16.mxu0 %v1291_v28  ;;  %v1347_v14 = vld [vmem:[%s1677_s0 + $0x5c] ss:$36 sps:$4 sm:$0xff]   ;;  %v1356_v22 = vld [vmem:[%s1676_s1 + $0x228] sm:$0xff]   ;;  %v1357_v23 = vld [vmem:[%s1676_s1 + $0x230] sm:$0xff]  }
  0x1d   :  { %1162 = vmatpush3.bf16.msra.mxu1 %v1290_v27  ;;  %v1349_v15 = vld [vmem:[%s1677_s0 + $0x58] ss:$36 sps:$4 sm:$0xff]   ;;  %v1355_v20 = vld [vmem:[%s1676_s1 + $0x220] sm:$0xff]   ;;  %v1360_v25 = vld [vmem:[%s1677_s0 + $0x68] ss:$36 sps:$4 sm:$0xff]  }
  0x1e   :  { %1163 = vmatprep.subr.bf16.mxu1 %v1293_v30  ;;  %v1354_v19 = vld [vmem:[%s1676_s1 + $0x218] sm:$0xff]   ;;  %v1359_v21 = vld [vmem:[%s1677_s0 + $0x20] ss:$36 sps:$4 sm:$0xff]  }
  0x1f   :  { %1136 = vmatpush3.bf16.msra.mxu0 %v1292_v29  ;;  %v1358_v24 = vld [vmem:[%s1676_s1 + $0x238] sm:$0xff]   ;;  %v1007_v27 = vld [vmem:[%s1678_s2] ss:$0 sm:$0xff] }
  0x20   :  { %1177 = vmatprep.subr.bf16.mxu0 %v1298_v34 }
  0x21   :  { %1164 = vmatpush3.bf16.msra.mxu1 %v1297_v33 }
  0x22   :  { %743 = vmatmul.mubr.bf16.vlgmr.msra.gmra.mrb[0].mxu0 %v1294_v31  ;;  %1205 = vmatprep.subr.bf16.mxu1 %v1303_v38 }
  0x23   :  { %1178 = vmatpush3.bf16.msra.mxu0 %v1302_v37  ;;  %750 = vmatprep.mubr.bf16.mxu0 %v1322_v57 }
  0x24   :  { %792 = vmatmul.mubr.bf16.vlgmr.msra.gmra.mrb[0].mxu1 %v1299_v35  ;;  %1179 = vmatprep.subr.bf16.mxu0 %v1305_v40 }
  0x25   :  { %1206 = vmatpush3.bf16.msra.mxu1 %v1304_v39  ;;  %799 = vmatprep.mubr.bf16.mxu1 %v1327_v61 }
  0x26   :  { %1207 = vmatprep.subr.bf16.mxu1 %v1307_v42 }
  0x27   :  { %1180 = vmatpush3.bf16.msra.mxu0 %v1306_v41 }
  0x28   :  { %1181 = vmatprep.subr.bf16.mxu0 %v1309_v44 }
  0x29   :  { %1208 = vmatpush3.bf16.msra.mxu1 %v1308_v43 }
  0x2a   :  { %1209 = vmatprep.subr.bf16.mxu1 %v1311_v46  ;;  %751 = vmatmul.mubr.bf16.gmra.mrb[4].mxu0 %v1325_v59 }
  0x2b   :  { %1182 = vmatpush3.bf16.msra.mxu0 %v1310_v45  ;;  %840 = vmatprep.mubr.bf16.mxu0 %v1340_v8 }
  0x2c   :  { %1183 = vmatprep.subr.bf16.mxu0 %v1313_v48  ;;  %800 = vmatmul.mubr.bf16.gmra.mrb[4].mxu1 %v1330_v63 }
  0x2d   :  { %1210 = vmatpush3.bf16.msra.mxu1 %v1312_v47  ;;  %889 = vmatprep.mubr.bf16.mxu1 %v1345_v12 }
  0x2e   :  { %1211 = vmatprep.subr.bf16.mxu1 %v1315_v50 }
  0x2f   :  { %1184 = vmatpush3.bf16.msra.mxu0 %v1314_v49 }
  0x30   :  { %1185 = vmatprep.subr.bf16.mxu0 %v1317_v52 }
  0x31   :  { %1212 = vmatpush3.bf16.msra.mxu1 %v1316_v51 }
  0x32   :  { %1213 = vmatprep.subr.bf16.mxu1 %v1319_v54 }
  0x33   :  { %1186 = vmatpush3.bf16.msra.mxu0 %v1318_v53 }
  0x34   :  { %1187 = vmatprep.subr.bf16.mxu0 %v1321_v56 }
  0x35   :  { %1214 = vmatpush3.bf16.msra.mxu1 %v1320_v55 }
  0x36   :  { %1215 = vmatprep.subr.bf16.mxu1 %v1326_v60 }
  0x37   :  { %1188 = vmatpush3.bf16.msra.mxu0 %v1324_v58 }
  0x38   :  { %1189 = vmatprep.subr.bf16.mxu0 %v1331_v0 }
  0x39   :  { %1216 = vmatpush3.bf16.msra.mxu1 %v1329_v62 }
  0x3a   :  { %1217 = vmatprep.subr.bf16.mxu1 %v1333_v2 }
  0x3b   :  { %1190 = vmatpush3.bf16.msra.mxu0 %v1332_v1 }
  0x3c   :  { %1191 = vmatprep.subr.bf16.mxu0 %v1335_v4 }
  0x3d   :  { %1218 = vmatpush3.bf16.msra.mxu1 %v1334_v3 }
  0x3e   :  { %1219 = vmatprep.subr.bf16.mxu1 %v1337_v6 }
  0x3f   :  { %1192 = vmatpush3.bf16.msra.mxu0 %v1336_v5 }
  0x40   :  { %1243 = vmatprep.subr.bf16.mxu0 %v1342_v10 }
  0x41   :  { %1220 = vmatpush3.bf16.msra.mxu1 %v1341_v9 }
  0x42   :  { %841 = vmatmul.mubr.bf16.vlgmr.msra.gmra.mrb[8].mxu0 %v1338_v7 }
  0x43   :  { %1244 = vmatpush3.bf16.msra.mxu0 %v1342_v10  ;;  %848 = vmatprep.mubr.bf16.mxu0 %v1347_v14 }
  0x44   :  { %890 = vmatmul.mubr.bf16.vlgmr.msra.gmra.mrb[8].mxu1 %v1343_v11  ;;  %1245 = vmatprep.subr.bf16.mxu0 %v1346_v13 }
  0x45   :  { %897 = vmatprep.mubr.bf16.mxu1 %v1351_v17 }
  0x47   :  { %1246 = vmatpush3.bf16.msra.mxu0 %v1346_v13 }
  0x48   :  { %1247 = vmatprep.subr.bf16.mxu0 %v1350_v16 }
  0x4a   :  { %849 = vmatmul.mubr.bf16.gmra.mrb[12].mxu0 %v1349_v15 }
  0x4b   :  { %1248 = vmatpush3.bf16.msra.mxu0 %v1350_v16  ;;  %1259 = vmatprep.mubr.bf16.mxu0 %v1359_v21 }
  0x4c   :  { %898 = vmatmul.mubr.bf16.gmra.mrb[12].mxu1 %v1353_v18  ;;  %1249 = vmatprep.subr.bf16.mxu0 %v1354_v19 }
  0x4f   :  { %1250 = vmatpush3.bf16.msra.mxu0 %v1354_v19 }
  0x50   :  { %1251 = vmatprep.subr.bf16.mxu0 %v1355_v20 }
  0x53   :  { %1252 = vmatpush3.bf16.msra.mxu0 %v1355_v20 }
  0x54   :  { %1253 = vmatprep.subr.bf16.mxu0 %v1356_v22 }
  0x57   :  { %1254 = vmatpush3.bf16.msra.mxu0 %v1356_v22 }
  0x58   :  { %1255 = vmatprep.subr.bf16.mxu0 %v1357_v23 }
  0x5b   :  { %1256 = vmatpush3.bf16.msra.mxu0 %v1357_v23 }
  0x5c   :  { %1257 = vmatprep.subr.bf16.mxu0 %v1358_v24 }
  0x5f   :  { %1258 = vmatpush3.bf16.msra.mxu0 %v1358_v24 }
  0x62   :  { %1260 = vmatmul.mubr.bf16.vlgmr.msra.gmra.mrb[16].mxu0 %v1360_v25 }
  0xf5   :  { %v1137_v26 = vpop.f32.mrb[0].mxu0 }
  0xf6   :  { %v1138_v28 = vpop.f32.mrb[1].mxu0 }
  0xf7   :  { %v1139_v29 = vadd.f32 %v1138_v28, %v1137_v26  ;;  %v1140_v30 = vpop.f32.mrb[2].mxu0  ;;  %v1165_v31 = vpop.f32.mrb[0].mxu1 }
  0xf8   :  { %v1141_v32 = vpop.f32.mrb[3].mxu0  ;;  %v1166_v35 = vpop.f32.mrb[1].mxu1 }
  0xf9   :  { %v745_v33 = vadd.f32 %v1139_v29, %v1007_v27  ;;  %v1142_v34 = vadd.f32 %v1141_v32, %v1140_v30  ;;  %v1167_v36 = vadd.f32 %v1166_v35, %v1165_v31  ;;  %v1168_v37 = vpop.f32.mrb[2].mxu1 }
  0xfa   :  { %v1169_v39 = vpop.f32.mrb[3].mxu1 }
  0xfb   :  { %v748_v38 = vadd.f32 %v1142_v34, %v1007_v27  ;;  %v794_v40 = vadd.f32 %v1167_v36, %v745_v33  ;;  %v1170_v41 = vadd.f32 %v1169_v39, %v1168_v37 }
  0xfd   :  { %v797_v42 = vadd.f32 %v1170_v41, %v748_v38  ;;  %v1143_v43 = vpop.f32.mrb[4].mxu0 }
  0xfe   :  { %v1144_v44 = vpop.f32.mrb[5].mxu0 }
  0xff   :  { %v1145_v45 = vadd.f32 %v1144_v44, %v1143_v43  ;;  %v1146_v46 = vpop.f32.mrb[6].mxu0  ;;  %v1171_v47 = vpop.f32.mrb[4].mxu1 }
 0x100   :  { %v1147_v48 = vpop.f32.mrb[7].mxu0  ;;  %v1172_v51 = vpop.f32.mrb[5].mxu1 }
 0x101   :  { %v753_v49 = vadd.f32 %v1145_v45, %v1007_v27  ;;  %v1148_v50 = vadd.f32 %v1147_v48, %v1146_v46  ;;  %v1173_v52 = vadd.f32 %v1172_v51, %v1171_v47  ;;  %v1174_v53 = vpop.f32.mrb[6].mxu1 }
 0x102   :  { %v1175_v55 = vpop.f32.mrb[7].mxu1 }
 0x103   :  { %v756_v54 = vadd.f32 %v1148_v50, %v1007_v27  ;;  %v802_v56 = vadd.f32 %v1173_v52, %v753_v49  ;;  %v1176_v57 = vadd.f32 %v1175_v55, %v1174_v53 }
 0x105   :  { %v805_v58 = vadd.f32 %v1176_v57, %v756_v54 }
 0x115   :  { %v1193_v59 = vpop.f32.mrb[8].mxu0 }
 0x116   :  { %v1194_v60 = vpop.f32.mrb[9].mxu0 }
 0x117   :  { %v1195_v61 = vadd.f32 %v1194_v60, %v1193_v59  ;;  %v1196_v62 = vpop.f32.mrb[10].mxu0  ;;  %v1221_v63 = vpop.f32.mrb[8].mxu1 }
 0x118   :  { %v1197_v0 = vpop.f32.mrb[11].mxu0  ;;  %v1222_v3 = vpop.f32.mrb[9].mxu1 }
 0x119   :  { %v843_v1 = vadd.f32 %v1195_v61, %v794_v40  ;;  %v1198_v2 = vadd.f32 %v1197_v0, %v1196_v62  ;;  %v1223_v4 = vadd.f32 %v1222_v3, %v1221_v63  ;;  %v1224_v5 = vpop.f32.mrb[10].mxu1 }
 0x11a   :  { %v1225_v7 = vpop.f32.mrb[11].mxu1 }
 0x11b   :  { %v846_v6 = vadd.f32 %v1198_v2, %v797_v42  ;;  %v1226_v8 = vadd.f32 %v1225_v7, %v1224_v5  ;;  %v892_v9 = vadd.f32 %v1223_v4, %v843_v1 }
 0x11d   :  { %v1199_v10 = vpop.f32.mrb[12].mxu0  ;;  %v895_v12 = vadd.f32 %v1226_v8, %v846_v6 }
 0x11e   :  { %v1200_v11 = vpop.f32.mrb[13].mxu0 }
 0x11f   :  { %v1201_v13 = vadd.f32 %v1200_v11, %v1199_v10  ;;  %v1202_v14 = vpop.f32.mrb[14].mxu0  ;;  %v1227_v15 = vpop.f32.mrb[12].mxu1 }
 0x120   :  { %v1203_v16 = vpop.f32.mrb[15].mxu0  ;;  %v1228_v19 = vpop.f32.mrb[13].mxu1 }
 0x121   :  { %v851_v17 = vadd.f32 %v1201_v13, %v802_v56  ;;  %v1204_v18 = vadd.f32 %v1203_v16, %v1202_v14  ;;  %v1229_v20 = vadd.f32 %v1228_v19, %v1227_v15  ;;  %v1230_v21 = vpop.f32.mrb[14].mxu1 }
 0x122   :  { %v1231_v23 = vpop.f32.mrb[15].mxu1 }
 0x123   :  { %v854_v22 = vadd.f32 %v1204_v18, %v805_v58  ;;  %v1232_v24 = vadd.f32 %v1231_v23, %v1230_v21  ;;  %v900_v25 = vadd.f32 %v1229_v20, %v851_v17 }
 0x125   :  { %v903_v26 = vadd.f32 %v1232_v24, %v854_v22 }
 0x135   :  { %v1261_v27 = vpop.f32.mrb[16].mxu0 }
 0x136   :  { %v949_v28 = vadd.f32 %v1261_v27, %v900_v25  ;;  %v940_v29 = vpop.f32.mrb[17].mxu0 }
 0x137   :  { %v941_v30 = vadd.f32 %v940_v29, %v892_v9  ;;  %v1262_v31 = vpop.f32.mrb[18].mxu0 }
 0x138   :  { %v1100_v32 = vmul.f32 -1.442695, %v949_v28  ;;  %v952_v33 = vadd.f32 %v1262_v31, %v903_v26  ;;  %v943_v34 = vpop.f32.mrb[19].mxu0 }
 0x139   :  { %v1098_v35 = vmul.f32 -1.442695, %v941_v30  ;;  %v944_v36 = vadd.f32 %v943_v34, %v895_v12 }
 0x13a   :  { %1361 = vpow2.f32 %v1100_v32  ;;  %v1101_v37 = vmul.f32 -1.442695, %v952_v33 }
 0x13b   :  { %1363 = vpow2.f32 %v1098_v35  ;;  %v1099_v38 = vmul.f32 -1.442695, %v944_v36 }
 0x13c   :  { %1365 = vpow2.f32 %v1101_v37 }
 0x13d   :  { %1367 = vpow2.f32 %v1099_v38 }
 0x144   :  { %v1362_v39 = vpop.eup %1361 }
 0x145   :  { %v1364_v40 = vpop.eup %1363  ;;  %v969_v41 = vadd.f32 1.0, %v1362_v39 }
 0x146   :  { %v1366_v42 = vpop.eup %1365  ;;  %v967_v43 = vadd.f32 1.0, %v1364_v40 }
 0x147   :  { %v1368_v44 = vpop.eup %1367  ;;  %1369 = vrcp.f32 %v969_v41  ;;  %v970_v45 = vadd.f32 1.0, %v1366_v42 }
 0x148   :  { %1371 = vrcp.f32 %v967_v43  ;;  %v968_v46 = vadd.f32 1.0, %v1368_v44 }
 0x149   :  { %1373 = vrcp.f32 %v970_v45 }
 0x14a   :  { %1375 = vrcp.f32 %v968_v46 }
 0x151   :  { %v1370_v47 = vpop.eup %1369 }
 0x152   :  { %v1372_v48 = vpop.eup %1371  ;;  %v981_v51 = vmul.f32 %v1370_v47, %v949_v28 }
 0x153   :  { %v1374_v49 = vpop.eup %1373  ;;  %v979_v53 = vmul.f32 %v1372_v48, %v941_v30 }
 0x154   :  { %v1376_v50 = vpop.eup %1375  ;;  %v982_v52 = vmul.f32 %v1374_v49, %v952_v33 }
 0x155   :  { %v980_v54 = vmul.f32 %v1376_v50, %v944_v36 }
 0x156   :  { %v1118_v55 = vpack.c.bf16 %v982_v52, %v981_v51 }
 0x157   :  { %v1113_v56 = vpack.c.bf16 %v980_v54, %v979_v53 }
 0x158   :  { %1120 = vst [vmem:[%s1679_s3 + $0x8] sm:$0xff] %v1118_v55  }
 0x159   :  { %1114 = vst [vmem:[%s1679_s3] sm:$0xff] %v1113_v56  }

// kernel: _lambda_.19
= control target key start
LH: loop header
LB: loop body
LE: loop exit
PB: predicated region body
PF: predicated region fallthrough
CT: control target
= control target key end

     0   :  { %v193_v0 = vmov 0.0   ;;  %vm194_vm0 = vmmov 0   ;;  %s248_s1 = inlined_call_operand.vmem [shape: bf16[128,128], index: 1, kind: input, shape index: {}]   ;;  %s249_s0 = inlined_call_operand.vmem [shape: bf16[8,128], index: 0, kind: input, shape index: {}]   ;;  %s250_s2 = inlined_call_operand.vmem [shape: f32[1,128], index: 2, kind: input, shape index: {}]   ;;  %s251_s3 = inlined_call_operand.vmem [shape: bf16[8,128], index: 3, kind: output, shape index: {}]  }
   0x1   :  { %159 = vmatprep.subr.bf16.mxu0 %v193_v0  ;;  %v181_v1 = vld [vmem:[%s248_s1] sm:$0xff]   ;;  %175 = vmatprep.mubr.msk.bf16.mxu0 %vm194_vm0, %v193_v0  ;;  %v182_v2 = vld [vmem:[%s248_s1 + $0x8] sm:$0xff]   ;;  %v183_v3 = vld [vmem:[%s248_s1 + $0x10] sm:$0xff]  }
   0x2   :  { %160 = vmatpush3.bf16.msra.mxu0 %v181_v1  ;;  %v184_v4 = vld [vmem:[%s248_s1 + $0x18] sm:$0xff]   ;;  %v185_v5 = vld [vmem:[%s248_s1 + $0x20] sm:$0xff]   ;;  %v186_v6 = vld [vmem:[%s248_s1 + $0x28] sm:$0xff]  }
   0x3   :  { %161 = vmatprep.subr.bf16.mxu0 %v193_v0  ;;  %v187_v7 = vld [vmem:[%s248_s1 + $0x30] sm:$0xff]   ;;  %v188_v8 = vld [vmem:[%s248_s1 + $0x38] sm:$0xff]   ;;  %v15_v9 = vld [vmem:[%s249_s0] sm:$0xf] }
   0x4   :  { %v140_v10 = vld [vmem:[%s250_s2] ss:$0 sm:$0xff] }
   0x6   :  { %162 = vmatpush3.bf16.msra.mxu0 %v182_v2 }
   0x7   :  { %163 = vmatprep.subr.bf16.mxu0 %v193_v0 }
   0xa   :  { %164 = vmatpush3.bf16.msra.mxu0 %v183_v3 }
   0xb   :  { %165 = vmatprep.subr.bf16.mxu0 %v193_v0 }
   0xe   :  { %166 = vmatpush3.bf16.msra.mxu0 %v184_v4 }
   0xf   :  { %167 = vmatprep.subr.bf16.mxu0 %v193_v0 }
  0x12   :  { %168 = vmatpush3.bf16.msra.mxu0 %v185_v5 }
  0x13   :  { %169 = vmatprep.subr.bf16.mxu0 %v193_v0 }
  0x16   :  { %170 = vmatpush3.bf16.msra.mxu0 %v186_v6 }
  0x17   :  { %171 = vmatprep.subr.bf16.mxu0 %v193_v0 }
  0x1a   :  { %172 = vmatpush3.bf16.msra.mxu0 %v187_v7 }
  0x1b   :  { %173 = vmatprep.subr.bf16.mxu0 %v193_v0 }
  0x1e   :  { %174 = vmatpush3.bf16.msra.mxu0 %v188_v8 }
  0x21   :  { %176 = vmatmul.mubr.bf16.vlgmr.msra.gmra.mrb[0].mxu0 %v15_v9 }
  0xf4   :  { %v121_v11 = vpop.f32.mrb[0].mxu0 }
  0xf5   :  { %v122_v12 = vadd.f32 %v140_v10, %v121_v11  ;;  %v177_v13 = vpop.f32.mrb[1].mxu0 }
  0xf6   :  { %v124_v14 = vpop.f32.mrb[2].mxu0 }
  0xf7   :  { %v149_v15 = vmul.f32 -1.442695, %v122_v12  ;;  %v178_v16 = vpop.f32.mrb[3].mxu0 }
  0xf9   :  { %189 = vpow2.f32 %v149_v15 }
 0x103   :  { %v190_v17 = vpop.eup %189 }
 0x104   :  { %v130_v18 = vadd.f32 1.0, %v190_v17 }
 0x106   :  { %191 = vrcp.f32 %v130_v18 }
 0x110   :  { %v192_v19 = vpop.eup %191 }
 0x111   :  { %v133_v20 = vmul.f32 %v192_v19, %v122_v12 }
 0x113   :  { %v134_v21 = vpack.c.bf16 %v133_v20, %v133_v20 }
 0x115   :  { %135 = vst [vmem:[%s251_s3] sm:$0xf] %v134_v21 }

// kernel: _lambda_.17
= control target key start
LH: loop header
LB: loop body
LE: loop exit
PB: predicated region body
PF: predicated region fallthrough
CT: control target
= control target key end

     0   :  { %s252_s0 = inlined_call_operand.vmem [shape: bf16[9,8,128], index: 0, kind: input, shape index: {}]   ;;  %s253_s1 = inlined_call_operand.vmem [shape: f32[9,1,128], index: 1, kind: input, shape index: {}]   ;;  %s254_s2 = inlined_call_operand.vmem [shape: f32[1,128], index: 2, kind: input, shape index: {}]   ;;  %s255_s3 = inlined_call_operand.vmem [shape: bf16[8,128], index: 3, kind: output, shape index: {}]  }
   0x1   :  { %v177_v0 = vld [vmem:[%s252_s0] sm:$0xff]   ;;  %v153_v5 = vld [vmem:[%s252_s0 + $0x8] sm:$0xff]   ;;  %v159_v10 = vld [vmem:[%s252_s0 + $0x10] sm:$0xff]  }
   0x2   :  { %v149_v1 = vld [vmem:[%s253_s1] ss:$0 sm:$0xff]  ;;  %v152_v2 = vld [vmem:[%s253_s1 + $0x1] ss:$0 sm:$0xff]  ;;  %v178_v3 = vunpack.c.l.bf16 %v177_v0  ;;  %v179_v4 = vunpack.c.h.bf16 %v177_v0  ;;  %v155_v6 = vld [vmem:[%s253_s1 + $0x2] ss:$0 sm:$0xff]  ;;  %v39_v7 = vunpack.c.l.bf16 %v153_v5  ;;  %v52_v8 = vunpack.c.h.bf16 %v153_v5 }
   0x3   :  { %v158_v9 = vld [vmem:[%s253_s1 + $0x3] ss:$0 sm:$0xff]  ;;  %v65_v13 = vunpack.c.l.bf16 %v159_v10  ;;  %v161_v15 = vld [vmem:[%s253_s1 + $0x4] ss:$0 sm:$0xff]  ;;  %v165_v16 = vld [vmem:[%s252_s0 + $0x18] sm:$0xff]   ;;  %v78_v19 = vunpack.c.h.bf16 %v159_v10 }
   0x4   :  { %v23_v11 = vmul.f32 %v178_v3, %v149_v1  ;;  %v35_v12 = vmul.f32 %v179_v4, %v152_v2  ;;  %v48_v14 = vmul.f32 %v155_v6, %v39_v7  ;;  %v61_v18 = vmul.f32 %v158_v9, %v52_v8  ;;  %v164_v20 = vld [vmem:[%s253_s1 + $0x5] ss:$0 sm:$0xff]  ;;  %v167_v24 = vld [vmem:[%s253_s1 + $0x6] ss:$0 sm:$0xff]  ;;  %v171_v25 = vld [vmem:[%s252_s0 + $0x20] sm:$0xf] }
   0x5   :  { %v74_v22 = vmul.f32 %v161_v15, %v65_v13  ;;  %v91_v23 = vunpack.c.l.bf16 %v165_v16  ;;  %v87_v27 = vmul.f32 %v164_v20, %v78_v19  ;;  %v104_v28 = vunpack.c.h.bf16 %v165_v16  ;;  %v170_v29 = vld [vmem:[%s253_s1 + $0x7] ss:$0 sm:$0xff]  ;;  %v173_v33 = vld [vmem:[%s253_s1 + $0x8] ss:$0 sm:$0xff]  ;;  %v174_v39 = vld [vmem:[%s254_s2] ss:$0 sm:$0xff] }
   0x6   :  { %v36_v17 = vadd.f32 %v35_v12, %v23_v11  ;;  %v117_v32 = vunpack.c.l.bf16 %v171_v25 }
   0x7   :  { %v100_v31 = vmul.f32 %v167_v24, %v91_v23  ;;  %v113_v35 = vmul.f32 %v170_v29, %v104_v28 }
   0x8   :  { %v49_v21 = vadd.f32 %v48_v14, %v36_v17  ;;  %v126_v37 = vmul.f32 %v173_v33, %v117_v32 }
   0xa   :  { %v62_v26 = vadd.f32 %v61_v18, %v49_v21 }
   0xc   :  { %v75_v30 = vadd.f32 %v74_v22, %v62_v26 }
   0xe   :  { %v88_v34 = vadd.f32 %v87_v27, %v75_v30 }
  0x10   :  { %v101_v36 = vadd.f32 %v100_v31, %v88_v34 }
  0x12   :  { %v114_v38 = vadd.f32 %v113_v35, %v101_v36 }
  0x14   :  { %v127_v40 = vadd.f32 %v126_v37, %v114_v38 }
  0x16   :  { %v135_v41 = vadd.f32 %v174_v39, %v127_v40 }
  0x18   :  { %v175_v42 = vmul.f32 -1.442695, %v135_v41 }
  0x1a   :  { %180 = vpow2.f32 %v175_v42 }
  0x24   :  { %v181_v43 = vpop.eup %180 }
  0x25   :  { %v139_v44 = vadd.f32 1.0, %v181_v43 }
  0x27   :  { %182 = vrcp.f32 %v139_v44 }
  0x31   :  { %v183_v45 = vpop.eup %182 }
  0x32   :  { %v142_v46 = vmul.f32 %v183_v45, %v135_v41 }
  0x34   :  { %v143_v47 = vpack.c.bf16 %v142_v46, %v142_v46 }
  0x36   :  { %144 = vst [vmem:[%s255_s3] sm:$0xf] %v143_v47 }

// kernel: _lambda_.18
= control target key start
LH: loop header
LB: loop body
LE: loop exit
PB: predicated region body
PF: predicated region fallthrough
CT: control target
= control target key end

     0   :  { %s808_s24 = smov 0   ;;  %s922_s0 = inlined_call_operand.vmem [shape: bf16[2,4,128], index: 0, kind: input, shape index: {}]   ;;  %s923_s1 = inlined_call_operand.vmem [shape: bf16[128,6], index: 1, kind: input, shape index: {}]   ;;  %s924_s2 = inlined_call_operand.vmem [shape: f32[1,6], index: 2, kind: input, shape index: {}]   ;;  %s925_s3 = inlined_call_operand.vmem [shape: bf16[6,128], index: 3, kind: input, shape index: {}]   ;;  %s926_s4 = inlined_call_operand.vmem [shape: f32[1,128], index: 4, kind: input, shape index: {}, may-alias: {4,6}]   ;;  %s927_s5 = inlined_call_operand.vmem [shape: bf16[128,128], index: 5, kind: input, shape index: {}]   ;;  %s928_s6 = inlined_call_operand.vmem [shape: f32[1,128], index: 6, kind: input, shape index: {}, may-alias: {4,6}]   ;;  %s929_s7 = inlined_call_operand.vmem [shape: bf16[2,4,128], index: 7, kind: output, shape index: {}]  }
   0x1 LB: > { %s629_s25 = sadd.s32 4294967295, %s764_s24   ;;  %p633_p0 = scmp.ge.s32.totalorder %s764_s24, 1  ;;  %s764_s24 = sphi %s808_s24, %s17_s24  }
   0x2   : > { %p236_p1 = scmp.lt.s32.totalorder %s764_s24, 3 }
   0x4   : > { %p237_p2 = pnand %p633_p0, %p236_p1 }
   0x5   : > { %v734_v0 = vld [vmem:[%s923_s1] sm:$0xff] (!%p237_p2)   ;;  %v766_v1 = vmov (!%p237_p2), 0.0   ;;  %v735_v2 = vld [vmem:[%s923_s1 + $0x8] sm:$0xff] (!%p237_p2)   ;;  %vm767_vm0 = vmmov (!%p237_p2), 0   ;;  %p266_p3 = scmp.lt.s32.totalorder (!%p237_p2), %s629_s25, 1  ;;  %v736_v3 = vld [vmem:[%s923_s1 + $0x10] sm:$0xff] (!%p237_p2)   ;;  %v457_v51 = vlaneseq (!%p237_p2) }
   0x6   : > { %240 = sbr.rel (%p237_p2) target bundleno = 745 (0x2e9), region = 48  ;;  %678 = vmatprep.subr.bf16.mxu0 (!%p237_p2), %v766_v1  ;;  %698 = vmatprep.subr.bf16.mxu1 (!%p237_p2), %v766_v1  ;;  %v737_v4 = vld [vmem:[%s923_s1 + $0x18] sm:$0xff] (!%p237_p2)   ;;  %vm277_vm1 = vcmask (!%p237_p2), 1043456   ;;  %v738_v9 = vld [vmem:[%s923_s1 + $0x20] sm:$0xff] (!%p237_p2)   ;;  %v739_v12 = vld [vmem:[%s923_s1 + $0x28] sm:$0xff] (!%p237_p2)   ;;  %vm407_vm2 = vcmask (!%p237_p2), 1042432  }
   0x7   : > { %679 = vmatpush3.bf16.msra.mxu0 (!%p237_p2), %v734_v0  ;;  %694 = vmatprep.mubr.msk.bf16.mxu0 (!%p237_p2), %vm767_vm0, %v766_v1  ;;  %v740_v15 = vld [vmem:[%s923_s1 + $0x30] sm:$0xff] (!%p237_p2)   ;;  %v741_v18 = vld [vmem:[%s923_s1 + $0x38] sm:$0xff] (!%p237_p2)   ;;  %v401_v20 = vld [vmem:[%s925_s3] sm:$0x7] (!%p237_p2)  ;;  %vm403_vm3 = vcmask (!%p237_p2), 48128   ;;  %v458_v52 = vshrl.u32 (!%p237_p2), %v457_v51, 7 }
   0x8   : > { %680 = vmatprep.subr.bf16.mxu0 (!%p237_p2), %v766_v1  ;;  %700 = vmatprep.mubr.msk.bf16.mxu1 (!%p237_p2), %vm767_vm0, %v766_v1  ;;  %v409_v21 = vsel (!%p237_p2), %vm407_vm2, %v401_v20, 0  ;;  %v304_v22 = vld [vmem:[%s924_s2] sm:$0x1] (!%p237_p2)  ;;  %v743_v35 = vld [vmem:[%s927_s5 + $0x8] sm:$0xff] (!%p237_p2)   ;;  %v744_v36 = vld [vmem:[%s927_s5 + $0x10] sm:$0xff] (!%p237_p2)  }
   0x9   : > { %699 = vmatpush3.bf16.msra.mxu1 (!%p237_p2), %v409_v21  ;;  %v742_v34 = vld [vmem:[%s927_s5] sm:$0xff] (!%p237_p2)   ;;  %v745_v37 = vld [vmem:[%s927_s5 + $0x18] sm:$0xff] (!%p237_p2)   ;;  %v747_v39 = vld [vmem:[%s927_s5 + $0x28] sm:$0xff] (!%p237_p2)   ;;  %v459_v53 = vsub.s32 (!%p237_p2), 0, %v458_v52 }
   0xa   : > { %704 = vmatprep.subr.bf16.mxu1 (!%p237_p2), %v766_v1  ;;  %v746_v38 = vld [vmem:[%s927_s5 + $0x20] sm:$0xff] (!%p237_p2)   ;;  %v748_v40 = vld [vmem:[%s927_s5 + $0x30] sm:$0xff] (!%p237_p2)   ;;  %v749_v41 = vld [vmem:[%s927_s5 + $0x38] sm:$0xff] (!%p237_p2)  }
   0xb   : > { %681 = vmatpush3.bf16.msra.mxu0 (!%p237_p2), %v735_v2  ;;  %v402_v42 = vld [vmem:[%s926_s4] sm:$0x1] (!%p237_p2) }
   0xc   : > { %682 = vmatprep.subr.bf16.mxu0 (!%p237_p2), %v766_v1  ;;  %v647_v58 = vld [vmem:[%s928_s6] ss:$0 sm:$0xff] (!%p237_p2) }
   0xd   : > { %s931_s25 = smov (!%p266_p3, %s629_s25), 1 }
   0xe   : > { %s634_s9 = sshll.u32 %s931_s25, 1 }
   0xf   : > { %s269_s12 = scalar_lea.vmem %s922_s0, %s634_s9  ;;  %683 = vmatpush3.bf16.msra.mxu0 %v736_v3  ;;  %s273_s8 = scalar_lea.vmem %s929_s7, %s634_s9 }
  0x10   : > { %v844_v5 = vld [vmem:[%s269_s12] sm:$0x3]  ;;  %684 = vmatprep.subr.bf16.mxu0 %v766_v1 }
  0x11   : > { %v276_v6 = vunpack.c.l.bf16 %v844_v5 }
  0x13   : > { %v278_v7 = vsel %vm277_vm1, %v276_v6, 0.0  ;;  %685 = vmatpush3.bf16.msra.mxu0 %v737_v4 }
  0x14   : > { %v279_v8 = vrot.slane %v278_v7, 4  ;;  %686 = vmatprep.subr.bf16.mxu0 %v766_v1 }
  0x16   : > { %v280_v10 = vadd.f32 %v279_v8, %v278_v7 }
  0x17   : > { %687 = vmatpush3.bf16.msra.mxu0 %v738_v9 }
  0x18   : > { %v281_v11 = vrot.slane %v280_v10, 2  ;;  %688 = vmatprep.subr.bf16.mxu0 %v766_v1 }
  0x1a   : > { %v282_v13 = vadd.f32 %v281_v11, %v280_v10 }
  0x1b   : > { %689 = vmatpush3.bf16.msra.mxu0 %v739_v12 }
  0x1c   : > { %v283_v14 = vrot.slane %v282_v13, 1  ;;  %690 = vmatprep.subr.bf16.mxu0 %v766_v1 }
  0x1e   : > { %v284_v16 = vadd.f32 %v283_v14, %v282_v13 }
  0x1f   : > { %691 = vmatpush3.bf16.msra.mxu0 %v740_v15 }
  0x20   : > { %v286_v17 = vmul.f32 0.25, %v284_v16  ;;  %692 = vmatprep.subr.bf16.mxu0 %v766_v1 }
  0x22   : > { %v287_v19 = vpack.c.bf16 %v286_v17, %v286_v17 }
  0x23   : > { %693 = vmatpush3.bf16.msra.mxu0 %v741_v18 }
  0x26   : > { %695 = vmatmul.mubr.bf16.vlgmr.msra.gmra.mrb[0].mxu0 %v287_v19 }
  0xf9   : > { %v387_v23 = vpop.f32.mrb[0].mxu0 }
  0xfa   : > { %v388_v24 = vadd.f32 %v387_v23, %v304_v22  ;;  %v696_v25 = vpop.f32.mrb[1].mxu0 }
  0xfb   : > { %v390_v26 = vpop.f32.mrb[2].mxu0 }
  0xfc   : > { %v644_v27 = vmul.f32 -1.442695, %v388_v24  ;;  %v697_v28 = vpop.f32.mrb[3].mxu0 }
  0xfe   : > { %750 = vpow2.f32 %v644_v27 }
 0x108   : > { %v751_v29 = vpop.eup %750 }
 0x109   : > { %v396_v30 = vadd.f32 1.0, %v751_v29 }
 0x10b   : > { %752 = vrcp.f32 %v396_v30 }
 0x115   : > { %v753_v31 = vpop.eup %752 }
 0x116   : > { %v399_v32 = vmul.f32 %v753_v31, %v388_v24 }
 0x118   : > { %v400_v33 = vpack.c.bf16 %v399_v32, %v399_v32 }
 0x11a   : > { %701 = vmatmul.mubr.msk.bf16.vlgmr.msra.gmra.mrb[0].mxu1 %vm403_vm3, %v400_v33 }
 0x11b   : > { %720 = vmatprep.mubr.msk.bf16.mxu1 %vm767_vm0, %v766_v1  ;;  %705 = vmatpush3.bf16.msra.mxu1 %v742_v34 }
 0x11c   : > { %706 = vmatprep.subr.bf16.mxu1 %v766_v1 }
 0x11f   : > { %707 = vmatpush3.bf16.msra.mxu1 %v743_v35 }
 0x120   : > { %708 = vmatprep.subr.bf16.mxu1 %v766_v1 }
 0x123   : > { %709 = vmatpush3.bf16.msra.mxu1 %v744_v36 }
 0x124   : > { %710 = vmatprep.subr.bf16.mxu1 %v766_v1 }
 0x127   : > { %711 = vmatpush3.bf16.msra.mxu1 %v745_v37 }
 0x128   : > { %712 = vmatprep.subr.bf16.mxu1 %v766_v1 }
 0x12b   : > { %713 = vmatpush3.bf16.msra.mxu1 %v746_v38 }
 0x12c   : > { %714 = vmatprep.subr.bf16.mxu1 %v766_v1 }
 0x12f   : > { %715 = vmatpush3.bf16.msra.mxu1 %v747_v39 }
 0x130   : > { %716 = vmatprep.subr.bf16.mxu1 %v766_v1 }
 0x133   : > { %717 = vmatpush3.bf16.msra.mxu1 %v748_v40 }
 0x134   : > { %718 = vmatprep.subr.bf16.mxu1 %v766_v1 }
 0x137   : > { %719 = vmatpush3.bf16.msra.mxu1 %v749_v41 }
 0x1ed   : > { %v445_v43 = vpop.f32.mrb[0].mxu1 }
 0x1ee   : > { %v446_v44 = vadd.f32 %v445_v43, %v402_v42  ;;  %v702_v45 = vpop.f32.mrb[1].mxu1 }
 0x1ef   : > { %v448_v46 = vpop.f32.mrb[2].mxu1 }
 0x1f0   : > { %v646_v47 = vmul.f32 -1.442695, %v446_v44  ;;  %v703_v48 = vpop.f32.mrb[3].mxu1 }
 0x1f2   : > { %754 = vpow2.f32 %v646_v47 }
 0x1fc   : > { %v755_v49 = vpop.eup %754 }
 0x1fd   : > { %v454_v50 = vadd.f32 1.0, %v755_v49 }
 0x1ff   : > { %756 = vrcp.f32 %v454_v50 }
 0x209   : > { %v757_v54 = vpop.eup %756 }
 0x20a   : > { %v460_v55 = vrot.slane %v757_v54, %v459_v53 }
 0x20c   : > { %v461_v56 = vmul.f32 %v460_v55, %v276_v6 }
 0x20e   : > { %v462_v57 = vpack.c.bf16 %v461_v56, %v461_v56 }
 0x210   : > { %721 = vmatmul.mubr.bf16.vlgmr.msra.gmra.mrb[4].mxu1 %v462_v57 }
 0x2e3   : > { %v568_v59 = vpop.f32.mrb[4].mxu1 }
 0x2e4   : > { %v569_v60 = vadd.f32 %v647_v58, %v568_v59  ;;  %v722_v61 = vpop.f32.mrb[5].mxu1 }
 0x2e5   : > { %v571_v62 = vpop.f32.mrb[6].mxu1 }
 0x2e6   : > { %v574_v63 = vpack.c.bf16 %v569_v60, %v569_v60  ;;  %v723_v0 = vpop.f32.mrb[7].mxu1 }
 0x2e8   : > { %575 = vst [vmem:[%s273_s8] sm:$0x3] %v574_v63 }
 0x2e9 PF: > { %s17_s24 = sadd.s32 1, %s764_s24  }
 0x2ea   : > { %p14_p4 = scmp.ge.s32.totalorder %s17_s24, 4  }
 0x2ec   :  { %16 = sbr.rel (!%p14_p4) target bundleno = 1 (0x1), region = 78 }

// kernel: _lambda_.20
= control target key start
LH: loop header
LB: loop body
LE: loop exit
PB: predicated region body
PF: predicated region fallthrough
CT: control target
= control target key end

     0   :  { %s681_s12 = smov 0   ;;  %s683_s13 = smov 0   ;;  %s768_s0 = inlined_call_operand.vmem [shape: bf16[2,4,4,128], index: 0, kind: input, shape index: {}]   ;;  %s769_s1 = inlined_call_operand.vmem [shape: f32[9,1,128], index: 1, kind: input, shape index: {}]   ;;  %s770_s2 = inlined_call_operand.vmem [shape: f32[1,128], index: 2, kind: input, shape index: {}]   ;;  %s771_s3 = inlined_call_operand.vmem [shape: bf16[2,2,2,128], index: 3, kind: output, shape index: {}]  }
   0x1   :  { %s685_s14 = smov 0  }
   0x2 LB: > { %s25_s15 = sadd.s32 1, %s655_s13  ;;  %p554_p0 = scmp.ge.s32.totalorder %s659_s14, 1  ;;  %s659_s14 = sphi %s685_s14, %s13_s14   ;;  %s655_s13 = sphi %s683_s13, %s773_s13   ;;  %s651_s12 = sphi %s681_s12, %s772_s12  }
   0x3   : > { %p27_p1 = scmp.ge.s32.totalorder %s25_s15, 2  ;;  %p172_p2 = scmp.lt.s32.totalorder %s659_s14, 3 }
   0x5   : > { %s775_s15 = smov (%p27_p1, %s25_s15), 0  ;;  %p173_p3 = pnand %p554_p0, %p172_p2 }
   0x6   : > { %p207_p4 = scmp.lt.s32.totalorder (!%p173_p3), %s651_s12, 1  ;;  %v558_v0 = vld [vmem:[%s769_s1] ss:$0 sm:$0xff] (!%p173_p3)  ;;  %v560_v1 = vld [vmem:[%s769_s1 + $0x1] ss:$0 sm:$0xff] (!%p173_p3) }
   0x7   : > { %176 = sbr.rel (%p173_p3) target bundleno = 77 (0x4d), region = 32  ;;  %v564_v2 = vld [vmem:[%s769_s1 + $0x2] ss:$0 sm:$0xff] (!%p173_p3)  ;;  %v574_v3 = vld [vmem:[%s769_s1 + $0x4] ss:$0 sm:$0xff] (!%p173_p3) }
   0x8   : > { %v570_v13 = vld [vmem:[%s769_s1 + $0x3] ss:$0 sm:$0xff] (!%p173_p3)  ;;  %v580_v16 = vld [vmem:[%s769_s1 + $0x5] ss:$0 sm:$0xff] (!%p173_p3)  ;;  %v590_v38 = vld [vmem:[%s769_s1 + $0x7] ss:$0 sm:$0xff] (!%p173_p3) }
   0x9   : > { %v586_v47 = vld [vmem:[%s769_s1 + $0x6] ss:$0 sm:$0xff] (!%p173_p3)  ;;  %v596_v48 = vld [vmem:[%s769_s1 + $0x8] ss:$0 sm:$0xff] (!%p173_p3) }
   0xe   : > { %s777_s12 = smov (!%p207_p4, %s651_s12), 1 }
   0xf   : > { %s604_s16 = sshll.u32 %s777_s12, 3  ;;  %s557_s17 = sshll.u32 %s777_s12, 1 }
  0x10   : > { %s708_s21 = scalar_lea.vmem %s768_s0, %s604_s16  ;;  %s227_s20 = scalar_lea.vmem %s771_s3, %s557_s17 }
  0x11   : > { %v228_v4 = vld [vmem:[%s708_s21] sm:$0x1]  ;;  %v265_v6 = vld [vmem:[%s708_s21] sm:$0x2]  ;;  %v567_v10 = vld [vmem:[%s708_s21 + $0x2] sm:$0x1] }
  0x12   : > { %v241_v5 = vld [vmem:[%s708_s21] sm:$0x3]  ;;  %v230_v7 = vunpack.c.l.bf16 %v228_v4  ;;  %v267_v9 = vunpack.c.l.bf16 %v265_v6  ;;  %v571_v11 = vld [vmem:[%s708_s21 + $0x2] sm:$0x3]  ;;  %v292_v20 = vunpack.c.l.bf16 %v567_v10  ;;  %v583_v21 = vld [vmem:[%s708_s21 + $0x4] sm:$0x1] }
  0x13   : > { %v243_v8 = vunpack.c.l.bf16 %v241_v5  ;;  %v577_v12 = vld [vmem:[%s708_s21 + $0x2] sm:$0x2]  ;;  %v308_v14 = vunpack.c.l.bf16 %v571_v11  ;;  %v587_v22 = vld [vmem:[%s708_s21 + $0x4] sm:$0x3]  ;;  %v229_v23 = vld [vmem:[%s708_s21 + $0x2] sm:$0x1]  ;;  %v357_v33 = vunpack.c.l.bf16 %v583_v21 }
  0x14   : > { %v332_v15 = vunpack.c.l.bf16 %v577_v12  ;;  %v239_v17 = vmul.f32 %v558_v0, %v230_v7  ;;  %v277_v19 = vmul.f32 %v564_v2, %v267_v9  ;;  %v593_v25 = vld [vmem:[%s708_s21 + $0x4] sm:$0x2]  ;;  %v242_v26 = vld [vmem:[%s708_s21 + $0x2] sm:$0x3]  ;;  %v568_v30 = vld [vmem:[%s708_s21 + $0x4] sm:$0x1]  ;;  %v373_v34 = vunpack.c.l.bf16 %v587_v22 }
  0x15   : > { %v253_v18 = vmul.f32 %v560_v1, %v243_v8  ;;  %v318_v24 = vmul.f32 %v574_v3, %v308_v14  ;;  %v266_v27 = vld [vmem:[%s708_s21 + $0x2] sm:$0x2]  ;;  %v572_v31 = vld [vmem:[%s708_s21 + $0x4] sm:$0x3]  ;;  %v231_v35 = vunpack.c.l.bf16 %v229_v23  ;;  %v302_v37 = vmul.f32 %v570_v13, %v292_v20  ;;  %v588_v55 = vld [vmem:[%s708_s21 + $0x6] sm:$0x3] }
  0x16   : > { %v565_v29 = vrot.slane %v277_v19, 10  ;;  %v342_v32 = vmul.f32 %v580_v16, %v332_v15  ;;  %v244_v39 = vunpack.c.l.bf16 %v242_v26  ;;  %v268_v40 = vunpack.c.l.bf16 %v266_v27  ;;  %v578_v41 = vld [vmem:[%s708_s21 + $0x4] sm:$0x2]  ;;  %v584_v60 = vld [vmem:[%s708_s21 + $0x6] sm:$0x1] }
  0x17   : > { %v561_v28 = vrot.slane %v253_v18, 9  ;;  %v575_v42 = vrot.slane %v318_v24, 9  ;;  %v397_v43 = vunpack.c.l.bf16 %v593_v25  ;;  %v293_v44 = vunpack.c.l.bf16 %v568_v30  ;;  %v594_v4 = vld [vmem:[%s708_s21 + $0x6] sm:$0x2] }
  0x18   : > { %v309_v45 = vunpack.c.l.bf16 %v572_v31  ;;  %v240_v49 = vmul.f32 %v558_v0, %v231_v35  ;;  %v254_v50 = vmul.f32 %v560_v1, %v244_v39  ;;  %v278_v51 = vmul.f32 %v564_v2, %v268_v40 }
  0x19   : > { %v263_v36 = vadd.f32 %v561_v28, %v239_v17  ;;  %v581_v52 = vrot.slane %v342_v32, 10  ;;  %v383_v53 = vmul.f32 %v590_v38, %v373_v34  ;;  %v333_v54 = vunpack.c.l.bf16 %v578_v41 }
  0x1a   : > { %v562_v57 = vrot.slane %v254_v50, 9  ;;  %v566_v58 = vrot.slane %v278_v51, 10  ;;  %v319_v59 = vmul.f32 %v574_v3, %v309_v45  ;;  %v367_v61 = vmul.f32 %v586_v47, %v357_v33 }
  0x1b   : > { %v287_v46 = vadd.f32 %v565_v29, %v263_v36  ;;  %v407_v62 = vmul.f32 %v596_v48, %v397_v43  ;;  %v303_v63 = vmul.f32 %v570_v13, %v293_v44  ;;  %v343_v7 = vmul.f32 %v580_v16, %v333_v54  ;;  %v599_v16 = vld [vmem:[%s770_s2] ss:$0 sm:$0xff] }
  0x1c   : > { %v264_v6 = vadd.f32 %v562_v57, %v240_v49  ;;  %v374_v8 = vunpack.c.l.bf16 %v588_v55  ;;  %v591_v0 = vrot.slane %v383_v53, 9  ;;  %v358_v1 = vunpack.c.l.bf16 %v584_v60 }
  0x1d   : > { %v304_v56 = vadd.f32 %v302_v37, %v287_v46  ;;  %v576_v10 = vrot.slane %v319_v59, 9  ;;  %v398_v11 = vunpack.c.l.bf16 %v594_v4  ;;  %v597_v12 = vrot.slane %v407_v62, 10 }
  0x1e   : > { %v288_v9 = vadd.f32 %v566_v58, %v264_v6  ;;  %v582_v17 = vrot.slane %v343_v7, 10  ;;  %v384_v3 = vmul.f32 %v590_v38, %v374_v8  ;;  %v368_v20 = vmul.f32 %v586_v47, %v358_v1 }
  0x1f   : > { %v328_v5 = vadd.f32 %v575_v42, %v304_v56  ;;  %v408_v13 = vmul.f32 %v596_v48, %v398_v11 }
  0x20   : > { %v305_v15 = vadd.f32 %v303_v63, %v288_v9  ;;  %v592_v23 = vrot.slane %v384_v3, 9 }
  0x21   : > { %v352_v2 = vadd.f32 %v581_v52, %v328_v5  ;;  %v598_v26 = vrot.slane %v408_v13, 10 }
  0x22   : > { %v329_v19 = vadd.f32 %v576_v10, %v305_v15 }
  0x23   : > { %v369_v14 = vadd.f32 %v367_v61, %v352_v2 }
  0x24   : > { %v353_v22 = vadd.f32 %v582_v17, %v329_v19 }
  0x25   : > { %v393_v18 = vadd.f32 %v591_v0, %v369_v14 }
  0x26   : > { %v370_v25 = vadd.f32 %v368_v20, %v353_v22 }
  0x27   : > { %v417_v21 = vadd.f32 %v597_v12, %v393_v18 }
  0x28   : > { %v394_v28 = vadd.f32 %v592_v23, %v370_v25 }
  0x29   : > { %v426_v24 = vadd.f32 %v599_v16, %v417_v21 }
  0x2a   : > { %v418_v29 = vadd.f32 %v598_v26, %v394_v28 }
  0x2b   : > { %v600_v27 = vmul.f32 -1.442695, %v426_v24 }
  0x2c   : > { %v427_v30 = vadd.f32 %v599_v16, %v418_v29 }
  0x2d   : > { %629 = vpow2.f32 %v600_v27 }
  0x2e   : > { %v601_v31 = vmul.f32 -1.442695, %v427_v30 }
  0x30   : > { %631 = vpow2.f32 %v601_v31 }
  0x37   : > { %v630_v32 = vpop.eup %629 }
  0x38   : > { %v434_v33 = vadd.f32 1.0, %v630_v32 }
  0x3a   : > { %633 = vrcp.f32 %v434_v33  ;;  %v632_v34 = vpop.eup %631 }
  0x3b   : > { %v435_v35 = vadd.f32 1.0, %v632_v34 }
  0x3d   : > { %635 = vrcp.f32 %v435_v35 }
  0x44   : > { %v634_v36 = vpop.eup %633 }
  0x45   : > { %v440_v37 = vmul.f32 %v634_v36, %v426_v24 }
  0x47   : > { %v442_v38 = vpack.c.bf16 %v440_v37, %v440_v37  ;;  %v636_v39 = vpop.eup %635 }
  0x48   : > { %v441_v40 = vmul.f32 %v636_v39, %v427_v30 }
  0x49   : > { %444 = vst [vmem:[%s227_s20] sm:$0x1] %v442_v38 }
  0x4a   : > { %v443_v41 = vpack.c.bf16 %v441_v40, %v441_v40 }
  0x4c   : > { %445 = vst [vmem:[%s227_s20 + $0x1] sm:$0x1] %v443_v41 }
  0x4d PF: > { %s13_s14 = sadd.s32 1, %s659_s14   ;;  %s772_s12 = smov %s655_s13 }
  0x4e   : > { %p10_p5 = scmp.ge.s32.totalorder %s13_s14, 4   ;;  %s773_s13 = smov %s775_s15 }
  0x50   :  { %12 = sbr.rel (!%p10_p5) target bundleno = 2 (0x2), region = 78 }

// kernel: _lambda_.23
= control target key start
LH: loop header
LB: loop body
LE: loop exit
PB: predicated region body
PF: predicated region fallthrough
CT: control target
= control target key end

     0   :  { %v255_v3 = vmov 0.0|0.0   ;;  %vm256_vm0 = vmmov 0   ;;  %v257_v6 = vmov 0.0   ;;  %vm19_vm1 = vcmask 1043456   ;;  %s348_s0 = inlined_call_operand.vmem [shape: bf16[2,4,128], index: 0, kind: input, shape index: {}]   ;;  %s349_s1 = inlined_call_operand.vmem [shape: f32[128,128], index: 1, kind: input, shape index: {}]   ;;  %s350_s2 = inlined_call_operand.vmem [shape: f32[1,128], index: 2, kind: input, shape index: {}]   ;;  %s351_s3 = inlined_call_operand.hbm [shape: f32[2,128], index: 3, kind: output, shape index: {}]  }
   0x1   :  { %v37_v0 = vld [vmem:[%s349_s1] sm:$0xff]  ;;  %v38_v1 = vld [vmem:[%s349_s1 + $0x8] sm:$0xff]  ;;  %v39_v2 = vld [vmem:[%s349_s1 + $0x10] sm:$0xff]  ;;  %203 = vmatprep.subr.bf16.mxu0 %v255_v3  ;;  %200 = vmatprep.mubr.msk.f32.mxu0 %vm256_vm0, %v257_v6 }
   0x2   :  { %v204_v4 = vpack.c.bf16 %v38_v1, %v37_v0  ;;  %v40_v5 = vld [vmem:[%s349_s1 + $0x18] sm:$0xff]  ;;  %v41_v8 = vld [vmem:[%s349_s1 + $0x20] sm:$0xff]  ;;  %v42_v9 = vld [vmem:[%s349_s1 + $0x28] sm:$0xff] }
   0x3   :  { %v207_v7 = vpack.c.bf16 %v40_v5, %v39_v2  ;;  %v15_v10 = vld [vmem:[%s348_s0] sm:$0x3]  ;;  %v16_v11 = vld [vmem:[%s348_s0 + $0x2] sm:$0x3] }
   0x4   :  { %205 = vmatpush3.bf16.msra.mxu0 %v204_v4  ;;  %v17_v12 = vunpack.c.l.bf16 %v15_v10  ;;  %v18_v13 = vunpack.c.l.bf16 %v16_v11 }
   0x5   :  { %206 = vmatprep.subr.bf16.mxu0 %v255_v3 }
   0x6   :  { %8 = vsyncpa [#allocation3], 0  ;;  %v210_v14 = vpack.c.bf16 %v42_v9, %v41_v8  ;;  %v43_v15 = vld [vmem:[%s349_s1 + $0x30] sm:$0xff]  ;;  %v44_v16 = vld [vmem:[%s349_s1 + $0x38] sm:$0xff]  ;;  %v20_v17 = vsel %vm19_vm1, %v17_v12, 0.0  ;;  %v27_v18 = vsel %vm19_vm1, %v18_v13, 0.0 }
   0x7   :  { %v21_v19 = vrot.slane %v20_v17, 4  ;;  %v28_v20 = vrot.slane %v27_v18, 4  ;;  %v213_v21 = vpack.c.bf16 %v44_v16, %v43_v15  ;;  %v45_v24 = vld [vmem:[%s349_s1 + $0x40] sm:$0xff]  ;;  %v46_v25 = vld [vmem:[%s349_s1 + $0x48] sm:$0xff]  ;;  %v47_v31 = vld [vmem:[%s349_s1 + $0x50] sm:$0xff]  ;;  %vm62_vm2 = vcmask 1041409  }
   0x8   :  { %208 = vmatpush3.bf16.msra.mxu0 %v207_v7  ;;  %v216_v28 = vpack.c.bf16 %v46_v25, %v45_v24  ;;  %v48_v32 = vld [vmem:[%s349_s1 + $0x58] sm:$0xff]  ;;  %v49_v36 = vld [vmem:[%s349_s1 + $0x60] sm:$0xff]  ;;  %v50_v37 = vld [vmem:[%s349_s1 + $0x68] sm:$0xff]  ;;  %s258_s22 = smov [#allocation2]  }
   0x9   :  { %209 = vmatprep.subr.bf16.mxu0 %v255_v3  ;;  %v22_v22 = vadd.f32 %v21_v19, %v20_v17  ;;  %v29_v23 = vadd.f32 %v28_v20, %v27_v18  ;;  %v219_v33 = vpack.c.bf16 %v48_v32, %v47_v31  ;;  %v222_v38 = vpack.c.bf16 %v50_v37, %v49_v36  ;;  %v51_v41 = vld [vmem:[%s349_s1 + $0x70] sm:$0xff]  ;;  %v52_v42 = vld [vmem:[%s349_s1 + $0x78] sm:$0xff]  ;;  %v150_v47 = vld [vmem:[%s350_s2] ss:$0 sm:$0xff]  ;;  %s142_s23 = sshll.u32 %s258_s22, 4  ;;  %s143_s23 = int_to_ptr.vmem [resolvable:$true] %s142_s23 }
   0xa   :  { %v225_v43 = vpack.c.bf16 %v52_v42, %v51_v41  ;;  %s231_s1 = scalar_lea.vmem %s143_s23, 32  ;;  %p236_p1 = scmp.lt.s32.totalorder %s143_s23, %s143_s23 }
   0xb   :  { %v23_v26 = vrot.slane %v22_v22, 2  ;;  %v30_v27 = vrot.slane %v29_v23, 2  ;;  %p232_p0 = scmp.ne.s32.totalorder %s143_s23, %s231_s1  ;;  %p237_p2 = scmp.lt.s32.totalorder %s231_s1, %s231_s1 }
   0xc   :  { %211 = vmatpush3.bf16.msra.mxu0 %v210_v14 }
   0xd   :  { %212 = vmatprep.subr.bf16.mxu0 %v255_v3  ;;  %v24_v29 = vadd.f32 %v23_v26, %v22_v22  ;;  %v31_v30 = vadd.f32 %v30_v27, %v29_v23  ;;  %p238_p3 = por %p237_p2, %p236_p1 }
   0xf   :  { %v25_v34 = vrot.slane %v24_v29, 1  ;;  %v32_v35 = vrot.slane %v31_v30, 1  ;;  %p239_p4 = pnand %p238_p3, %p232_p0 }
  0x10   :  { %214 = vmatpush3.bf16.msra.mxu0 %v213_v21 }
  0x11   :  { %215 = vmatprep.subr.bf16.mxu0 %v255_v3  ;;  %v26_v39 = vadd.f32 %v25_v34, %v24_v29  ;;  %v33_v40 = vadd.f32 %v32_v35, %v31_v30 }
  0x13   :  { %v35_v44 = vmul.f32 0.25, %v26_v39  ;;  %v36_v45 = vmul.f32 0.25, %v33_v40 }
  0x14   :  { %217 = vmatpush3.bf16.msra.mxu0 %v216_v28 }
  0x15   :  { %218 = vmatprep.subr.bf16.mxu0 %v255_v3  ;;  %v63_v46 = vsel %vm62_vm2, %v36_v45, %v35_v44 }
  0x18   :  { %220 = vmatpush3.bf16.msra.mxu0 %v219_v33 }
  0x19   :  { %221 = vmatprep.subr.bf16.mxu0 %v255_v3 }
  0x1c   :  { %223 = vmatpush3.bf16.msra.mxu0 %v222_v38 }
  0x1d   :  { %224 = vmatprep.subr.bf16.mxu0 %v255_v3 }
  0x20   :  { %226 = vmatpush3.bf16.msra.mxu0 %v225_v43 }
  0x23   :  { %201 = vmatmul.mubr.f32.vlgmr.msra.gmra.mrb[0].mxu0 %v63_v46 }
  0xf6   :  { %v131_v48 = vpop.f32.mrb[0].mxu0 }
  0xf7   :  { %v132_v49 = vadd.f32 %v150_v47, %v131_v48  ;;  %v202_v50 = vpop.f32.mrb[1].mxu0 }
  0xf9   :  { %135 = vst [vmem:[#allocation2] sm:$0x3] %v132_v49 }
  0xfa   :  { %242 = shalt.err (!%p239_p4)
}
  0xfb   :  { %s243_s26 = scalar_lea.hbm %s351_s3, 32 }
  0xfc   :  { %p244_p5 = scmp.ne.s32.totalorder %s351_s3, %s243_s26  ;;  %p247_p6 = scmp.lt.u32.totalorder %s243_s26, %s351_s3 }
  0xfe   :  { %p249_p7 = pnand %p247_p6, %p244_p5 }
 0x100   :  { %252 = shalt.err (!%p249_p7)
}
 0x101   :  { %145 = dma.vmem_to_hbm [thread:$0]  %s143_s23, 32, %s351_s3, [#allocation3]  }
 0x102   :  { %253 = dma.done.wait [#allocation3], 32  }
 0x103   :  { %254 = vsyncadd [#allocation3], 4294967264 }
 0x104   :  { %149 = vsyncpa [#allocation3], 1 }

// kernel: _lambda_.21
= control target key start
LH: loop header
LB: loop body
LE: loop exit
PB: predicated region body
PF: predicated region fallthrough
CT: control target
= control target key end

     0   :  { %s872_s27 = smov 0   ;;  %s989_s0 = inlined_call_operand.vmem [shape: bf16[2,4,128], index: 0, kind: input, shape index: {}]   ;;  %s990_s1 = inlined_call_operand.vmem [shape: bf16[128,8], index: 1, kind: input, shape index: {}]   ;;  %s991_s2 = inlined_call_operand.vmem [shape: f32[1,8], index: 2, kind: input, shape index: {}]   ;;  %s992_s3 = inlined_call_operand.vmem [shape: bf16[8,128], index: 3, kind: input, shape index: {}]   ;;  %s993_s4 = inlined_call_operand.vmem [shape: f32[1,128], index: 4, kind: input, shape index: {}, may-alias: {4,6}]   ;;  %s994_s5 = inlined_call_operand.vmem [shape: bf16[128,128], index: 5, kind: input, shape index: {}]   ;;  %s995_s6 = inlined_call_operand.vmem [shape: f32[1,128], index: 6, kind: input, shape index: {}, may-alias: {4,6}]   ;;  %s996_s7 = inlined_call_operand.vmem [shape: bf16[2,4,128], index: 7, kind: input, shape index: {}]   ;;  %s997_s8 = inlined_call_operand.vmem [shape: bf16[2,4,128], index: 8, kind: output, shape index: {}]  }
   0x1 LB: > { %s687_s28 = sadd.s32 4294967295, %s823_s27   ;;  %p691_p0 = scmp.ge.s32.totalorder %s823_s27, 1  ;;  %s823_s27 = sphi %s872_s27, %s18_s27  }
   0x2   : > { %p270_p1 = scmp.lt.s32.totalorder %s823_s27, 3 }
   0x4   : > { %p271_p2 = pnand %p691_p0, %p270_p1 }
   0x5   : > { %v793_v0 = vld [vmem:[%s990_s1] sm:$0xff] (!%p271_p2)   ;;  %v825_v1 = vmov (!%p271_p2), 0.0   ;;  %v794_v2 = vld [vmem:[%s990_s1 + $0x8] sm:$0xff] (!%p271_p2)   ;;  %vm826_vm0 = vmmov (!%p271_p2), 0   ;;  %p306_p3 = scmp.lt.s32.totalorder (!%p271_p2), %s687_s28, 1  ;;  %v795_v3 = vld [vmem:[%s990_s1 + $0x10] sm:$0xff] (!%p271_p2)   ;;  %v500_v51 = vlaneseq (!%p271_p2) }
   0x6   : > { %274 = sbr.rel (%p271_p2) target bundleno = 747 (0x2eb), region = 52  ;;  %737 = vmatprep.subr.bf16.mxu0 (!%p271_p2), %v825_v1  ;;  %757 = vmatprep.subr.bf16.mxu1 (!%p271_p2), %v825_v1  ;;  %v796_v4 = vld [vmem:[%s990_s1 + $0x18] sm:$0xff] (!%p271_p2)   ;;  %vm321_vm1 = vcmask (!%p271_p2), 1043456   ;;  %v797_v9 = vld [vmem:[%s990_s1 + $0x20] sm:$0xff] (!%p271_p2)   ;;  %v798_v12 = vld [vmem:[%s990_s1 + $0x28] sm:$0xff] (!%p271_p2)   ;;  %vm447_vm2 = vcmask (!%p271_p2), 64512  }
   0x7   : > { %738 = vmatpush3.bf16.msra.mxu0 (!%p271_p2), %v793_v0  ;;  %753 = vmatprep.mubr.msk.bf16.mxu0 (!%p271_p2), %vm826_vm0, %v825_v1  ;;  %v799_v15 = vld [vmem:[%s990_s1 + $0x30] sm:$0xff] (!%p271_p2)   ;;  %v800_v18 = vld [vmem:[%s990_s1 + $0x38] sm:$0xff] (!%p271_p2)   ;;  %v445_v20 = vld [vmem:[%s992_s3] sm:$0xf] (!%p271_p2)  ;;  %v501_v52 = vshrl.u32 (!%p271_p2), %v500_v51, 7 }
   0x8   : > { %739 = vmatprep.subr.bf16.mxu0 (!%p271_p2), %v825_v1  ;;  %759 = vmatprep.mubr.msk.bf16.mxu1 (!%p271_p2), %vm826_vm0, %v825_v1  ;;  %v452_v21 = vsel (!%p271_p2), %vm321_vm1, %v445_v20, 0  ;;  %v348_v22 = vld [vmem:[%s991_s2] sm:$0x1] (!%p271_p2)  ;;  %v802_v35 = vld [vmem:[%s994_s5 + $0x8] sm:$0xff] (!%p271_p2)   ;;  %v803_v36 = vld [vmem:[%s994_s5 + $0x10] sm:$0xff] (!%p271_p2)  }
   0x9   : > { %758 = vmatpush3.bf16.msra.mxu1 (!%p271_p2), %v452_v21  ;;  %v801_v34 = vld [vmem:[%s994_s5] sm:$0xff] (!%p271_p2)   ;;  %v804_v37 = vld [vmem:[%s994_s5 + $0x18] sm:$0xff] (!%p271_p2)   ;;  %v806_v39 = vld [vmem:[%s994_s5 + $0x28] sm:$0xff] (!%p271_p2)   ;;  %v502_v53 = vsub.s32 (!%p271_p2), 0, %v501_v52 }
   0xa   : > { %763 = vmatprep.subr.bf16.mxu1 (!%p271_p2), %v825_v1  ;;  %v805_v38 = vld [vmem:[%s994_s5 + $0x20] sm:$0xff] (!%p271_p2)   ;;  %v807_v40 = vld [vmem:[%s994_s5 + $0x30] sm:$0xff] (!%p271_p2)   ;;  %v808_v41 = vld [vmem:[%s994_s5 + $0x38] sm:$0xff] (!%p271_p2)  }
   0xb   : > { %740 = vmatpush3.bf16.msra.mxu0 (!%p271_p2), %v794_v2  ;;  %v446_v42 = vld [vmem:[%s993_s4] sm:$0x1] (!%p271_p2) }
   0xc   : > { %741 = vmatprep.subr.bf16.mxu0 (!%p271_p2), %v825_v1  ;;  %v706_v59 = vld [vmem:[%s995_s6] ss:$0 sm:$0xff] (!%p271_p2) }
   0xd   : > { %s999_s28 = smov (!%p306_p3, %s687_s28), 1 }
   0xe   : > { %s896_s13 = sshll.u32 %s999_s28, 1 }
   0xf   : > { %s309_s16 = scalar_lea.vmem %s989_s0, %s896_s13  ;;  %742 = vmatpush3.bf16.msra.mxu0 %v795_v3  ;;  %s313_s10 = scalar_lea.vmem %s996_s7, %s896_s13 }
  0x10   : > { %v906_v5 = vld [vmem:[%s309_s16] sm:$0x3]  ;;  %743 = vmatprep.subr.bf16.mxu0 %v825_v1  ;;  %s317_s16 = scalar_lea.vmem %s997_s8, %s896_s13 }
  0x11   : > { %v320_v6 = vunpack.c.l.bf16 %v906_v5  ;;  %v617_v58 = vld [vmem:[%s313_s10] sm:$0x3] }
  0x12   : > { %v618_v60 = vunpack.c.l.bf16 %v617_v58 }
  0x13   : > { %v322_v7 = vsel %vm321_vm1, %v320_v6, 0.0  ;;  %744 = vmatpush3.bf16.msra.mxu0 %v796_v4 }
  0x14   : > { %v323_v8 = vrot.slane %v322_v7, 4  ;;  %745 = vmatprep.subr.bf16.mxu0 %v825_v1 }
  0x16   : > { %v324_v10 = vadd.f32 %v323_v8, %v322_v7 }
  0x17   : > { %746 = vmatpush3.bf16.msra.mxu0 %v797_v9 }
  0x18   : > { %v325_v11 = vrot.slane %v324_v10, 2  ;;  %747 = vmatprep.subr.bf16.mxu0 %v825_v1 }
  0x1a   : > { %v326_v13 = vadd.f32 %v325_v11, %v324_v10 }
  0x1b   : > { %748 = vmatpush3.bf16.msra.mxu0 %v798_v12 }
  0x1c   : > { %v327_v14 = vrot.slane %v326_v13, 1  ;;  %749 = vmatprep.subr.bf16.mxu0 %v825_v1 }
  0x1e   : > { %v328_v16 = vadd.f32 %v327_v14, %v326_v13 }
  0x1f   : > { %750 = vmatpush3.bf16.msra.mxu0 %v799_v15 }
  0x20   : > { %v330_v17 = vmul.f32 0.25, %v328_v16  ;;  %751 = vmatprep.subr.bf16.mxu0 %v825_v1 }
  0x22   : > { %v331_v19 = vpack.c.bf16 %v330_v17, %v330_v17 }
  0x23   : > { %752 = vmatpush3.bf16.msra.mxu0 %v800_v18 }
  0x26   : > { %754 = vmatmul.mubr.bf16.vlgmr.msra.gmra.mrb[0].mxu0 %v331_v19 }
  0xf9   : > { %v431_v23 = vpop.f32.mrb[0].mxu0 }
  0xfa   : > { %v432_v24 = vadd.f32 %v431_v23, %v348_v22  ;;  %v755_v25 = vpop.f32.mrb[1].mxu0 }
  0xfb   : > { %v434_v26 = vpop.f32.mrb[2].mxu0 }
  0xfc   : > { %v703_v27 = vmul.f32 -1.442695, %v432_v24  ;;  %v756_v28 = vpop.f32.mrb[3].mxu0 }
  0xfe   : > { %809 = vpow2.f32 %v703_v27 }
 0x108   : > { %v810_v29 = vpop.eup %809 }
 0x109   : > { %v440_v30 = vadd.f32 1.0, %v810_v29 }
 0x10b   : > { %811 = vrcp.f32 %v440_v30 }
 0x115   : > { %v812_v31 = vpop.eup %811 }
 0x116   : > { %v443_v32 = vmul.f32 %v812_v31, %v432_v24 }
 0x118   : > { %v444_v33 = vpack.c.bf16 %v443_v32, %v443_v32 }
 0x11a   : > { %760 = vmatmul.mubr.msk.bf16.vlgmr.msra.gmra.mrb[0].mxu1 %vm447_vm2, %v444_v33 }
 0x11b   : > { %779 = vmatprep.mubr.msk.bf16.mxu1 %vm826_vm0, %v825_v1  ;;  %764 = vmatpush3.bf16.msra.mxu1 %v801_v34 }
 0x11c   : > { %765 = vmatprep.subr.bf16.mxu1 %v825_v1 }
 0x11f   : > { %766 = vmatpush3.bf16.msra.mxu1 %v802_v35 }
 0x120   : > { %767 = vmatprep.subr.bf16.mxu1 %v825_v1 }
 0x123   : > { %768 = vmatpush3.bf16.msra.mxu1 %v803_v36 }
 0x124   : > { %769 = vmatprep.subr.bf16.mxu1 %v825_v1 }
 0x127   : > { %770 = vmatpush3.bf16.msra.mxu1 %v804_v37 }
 0x128   : > { %771 = vmatprep.subr.bf16.mxu1 %v825_v1 }
 0x12b   : > { %772 = vmatpush3.bf16.msra.mxu1 %v805_v38 }
 0x12c   : > { %773 = vmatprep.subr.bf16.mxu1 %v825_v1 }
 0x12f   : > { %774 = vmatpush3.bf16.msra.mxu1 %v806_v39 }
 0x130   : > { %775 = vmatprep.subr.bf16.mxu1 %v825_v1 }
 0x133   : > { %776 = vmatpush3.bf16.msra.mxu1 %v807_v40 }
 0x134   : > { %777 = vmatprep.subr.bf16.mxu1 %v825_v1 }
 0x137   : > { %778 = vmatpush3.bf16.msra.mxu1 %v808_v41 }
 0x1ed   : > { %v488_v43 = vpop.f32.mrb[0].mxu1 }
 0x1ee   : > { %v489_v44 = vadd.f32 %v488_v43, %v446_v42  ;;  %v761_v45 = vpop.f32.mrb[1].mxu1 }
 0x1ef   : > { %v491_v46 = vpop.f32.mrb[2].mxu1 }
 0x1f0   : > { %v705_v47 = vmul.f32 -1.442695, %v489_v44  ;;  %v762_v48 = vpop.f32.mrb[3].mxu1 }
 0x1f2   : > { %813 = vpow2.f32 %v705_v47 }
 0x1fc   : > { %v814_v49 = vpop.eup %813 }
 0x1fd   : > { %v497_v50 = vadd.f32 1.0, %v814_v49 }
 0x1ff   : > { %815 = vrcp.f32 %v497_v50 }
 0x209   : > { %v816_v54 = vpop.eup %815 }
 0x20a   : > { %v503_v55 = vrot.slane %v816_v54, %v502_v53 }
 0x20c   : > { %v504_v56 = vmul.f32 %v503_v55, %v320_v6 }
 0x20e   : > { %v505_v57 = vpack.c.bf16 %v504_v56, %v504_v56 }
 0x210   : > { %780 = vmatmul.mubr.bf16.vlgmr.msra.gmra.mrb[4].mxu1 %v505_v57 }
 0x2e3   : > { %v611_v61 = vpop.f32.mrb[4].mxu1 }
 0x2e4   : > { %v612_v62 = vadd.f32 %v706_v59, %v611_v61  ;;  %v781_v63 = vpop.f32.mrb[5].mxu1 }
 0x2e5   : > { %v614_v0 = vpop.f32.mrb[6].mxu1 }
 0x2e6   : > { %v619_v1 = vadd.f32 %v618_v60, %v612_v62  ;;  %v782_v2 = vpop.f32.mrb[7].mxu1 }
 0x2e8   : > { %v620_v3 = vpack.c.bf16 %v619_v1, %v619_v1 }
 0x2ea   : > { %621 = vst [vmem:[%s317_s16] sm:$0x3] %v620_v3 }
 0x2eb PF: > { %s18_s27 = sadd.s32 1, %s823_s27  }
 0x2ec   : > { %p15_p4 = scmp.ge.s32.totalorder %s18_s27, 4  }
 0x2ee   :  { %17 = sbr.rel (!%p15_p4) target bundleno = 1 (0x1), region = 85 }

</bundles_post_ra>
